<compile_context>
chip_gen: v6e
topology: v6e:2x2x1
jax: 0.10.0
libtpu: 0.0.40
codegen_flags: <defaults>
</compile_context>

<pallas_src>
import functools

import jax
import jax.numpy as jnp
from jax.experimental import pallas as pl
from jax.experimental.pallas import tpu as pltpu

# --- module hyper-parameters (PyTorch default W=256; small W for the test) ---
D = 8                # number of pts_linears layers
W = 64               # hidden width for the test (module default 256 also supported)
INPUT_CH = 3
INPUT_CH_VIEWS = 3
OUTPUT_CH = 4
SKIPS = (4,)


def _cdiv(a, b):
    return (a + b - 1) // b


def _round_up(x, m):
    return _cdiv(x, m) * m


PAD = _round_up(max(W, INPUT_CH + INPUT_CH_VIEWS, OUTPUT_CH, 128), 128)
FUSE_ALPHA = (W + 1) <= PAD          # fold alpha_linear into feature_linear matmul
assert INPUT_CH + INPUT_CH_VIEWS <= PAD and W <= PAD and W // 2 <= PAD


# ---------------------------------------------------------------------------
# Pallas kernel: full RenderNetwork forward for one tile of N rows.
#   x_ref : (tile_n, PAD) bf16   [lanes 0..2 = pts, lanes 3..5 = views, rest 0]
#   w_ref : (NM, PAD, PAD) bf16  packed / padded / pre-split weights
#   b_ref : (NB_pad, PAD) f32    packed / padded biases
#   o_ref : (tile_n, OUTPUT_CH) f32
# Weight/bias slab ordering MUST match pack_params().
# ---------------------------------------------------------------------------
def _render_kernel(use_viewdirs, x_ref, w_ref, b_ref, o_ref):
    bf16 = jnp.bfloat16
    x = x_ref[...]                               # (tile_n, PAD) bf16

    def mm(a_bf16, k):                           # dense MXU matmul, f32 accumulation
        return jnp.dot(a_bf16, w_ref[k], preferred_element_type=jnp.float32)

    wi = 0   # weight-slab index (static Python counter, mirrors pack_params)
    bi = 0   # bias-slab index

    # ---- pts_linears stack (skip concat replaced by split-weight matmuls) ----
    h = x
    for j in range(D):
        if j >= 1 and (j - 1) in SKIPS:
            acc = mm(x, wi) + mm(h, wi + 1)      # torch.cat([input_pts, h], -1)
            wi += 2
        else:
            acc = mm(h, wi)
            wi += 1
        h = jnp.maximum(acc + b_ref[bi:bi + 1, :], 0.0).astype(bf16)
        bi += 1

    if use_viewdirs:
        if FUSE_ALPHA:
            # fused feature_linear (cols 0..W-1) + alpha_linear (col W)
            feat = mm(h, wi) + b_ref[bi:bi + 1, :]
            alpha = feat[:, W:W + 1]             # pre-ReLU, matches reference
            wi += 1
            bi += 1
        else:
            feat = mm(h, wi) + b_ref[bi:bi + 1, :]
            wi += 1
            bi += 1
            alpha = (mm(h, wi) + b_ref[bi:bi + 1, :])[:, :1]
            wi += 1
            bi += 1
        # views_linears[0]: torch.cat([feature, input_views]) -> split matmuls.
        # The input_views weight rows sit at slab rows INPUT_CH..INPUT_CH+2, so
        # the same x slab is reused here (its pts lanes hit zero weight rows).
        hv = jnp.maximum(
            mm(feat.astype(bf16), wi) + mm(x, wi + 1) + b_ref[bi:bi + 1, :],
            0.0).astype(bf16)
        wi += 2
        bi += 1
        rgb = mm(hv, wi) + b_ref[bi:bi + 1, :]
        # Two direct slice stores instead of a lane concat (numerics-neutral).
        o_ref[:, :3] = rgb[:, :3].astype(o_ref.dtype)
        o_ref[:, 3:4] = alpha.astype(o_ref.dtype)
    else:
        out = mm(h, wi) + b_ref[bi:bi + 1, :]
        o_ref[...] = out[:, :OUTPUT_CH].astype(o_ref.dtype)


# ---------------------------------------------------------------------------
# Parameter init (deterministic, mimics PyTorch nn.Linear default init).
# Stored in PyTorch orientation: weight [out, in], bias [out].
# ---------------------------------------------------------------------------
def init_params(key, use_viewdirs):
    def linear(k, fan_in, fan_out):
        k1, k2 = jax.random.split(k)
        bound = 1.0 / float(fan_in) ** 0.5
        w = jax.random.uniform(k1, (fan_out, fan_in), jnp.float32, -bound, bound)
        b = jax.random.uniform(k2, (fan_out,), jnp.float32, -bound, bound)
        return w, b

    n_layers = D + (4 if use_viewdirs else 1)
    keys = jax.random.split(key, n_layers)

    params = []
    for j in range(D):
        fan_in = INPUT_CH if j == 0 else (W + INPUT_CH if (j - 1) in SKIPS else W)
        params.append(linear(keys[j], fan_in, W))

    if use_viewdirs:
        params.append(linear(keys[D + 0], W, W))                        # feature_linear
        params.append(linear(keys[D + 1], W, 1))                        # alpha_linear
        params.append(linear(keys[D + 2], W + INPUT_CH_VIEWS, W // 2))  # views_linears[0]
        params.append(linear(keys[D + 3], W // 2, 3))                   # rgb_linear
    else:
        params.append(linear(keys[D], W, OUTPUT_CH))                    # output_linear
    return params


# ---------------------------------------------------------------------------
# Pack params into one bf16 weight slab [NM, PAD, PAD] and one f32 bias slab.
# ---------------------------------------------------------------------------
def pack_params(params, use_viewdirs):
    f32 = jnp.float32

    def pad_w(wt, row0=0):   # wt: [in, out] f32 -> [PAD, PAD], rows placed at row0
        z = jnp.zeros((PAD, PAD), f32)
        return z.at[row0:row0 + wt.shape[0], :wt.shape[1]].set(wt)

    def pad_b(b):            # b: [out] f32 -> [PAD]
        return jnp.zeros((PAD,), f32).at[:b.shape[0]].set(b)

    ws, bs = [], []

    # pts_linears (skip layer split into [pts-part, h-part])
    for j in range(D):
        w, b = params[j]
        wt = w.T                                       # [in, out]
        if j >= 1 and (j - 1) in SKIPS:
            ws.append(pad_w(wt[:INPUT_CH]))            # input_pts rows (slab lanes 0..2)
            ws.append(pad_w(wt[INPUT_CH:]))            # h rows
        else:
            ws.append(pad_w(wt))
        bs.append(pad_b(b))

    if use_viewdirs:
        (wf, bf_), (wa, ba) = params[D], params[D + 1]
        (wv, bv_), (wr, br) = params[D + 2], params[D + 3]
        if FUSE_ALPHA:
            # fused feature (cols 0..W-1) + alpha (col W)
            wfa = jnp.zeros((PAD, PAD), f32)
            wfa = wfa.at[:W, :W].set(wf.T).at[:W, W:W + 1].set(wa.T)
            ws.append(wfa)
            bs.append(jnp.zeros((PAD,), f32).at[:W].set(bf_).at[W].set(ba[0]))
        else:
            ws.append(pad_w(wf.T))
            bs.append(pad_b(bf_))
            ws.append(pad_w(wa.T))
            bs.append(pad_b(ba))
        # views_linears[0] split into feature-rows / views-rows (shifted to
        # rows INPUT_CH.. so the kernel can reuse the single input slab)
        wvt = wv.T                                     # [W + 3, W // 2]
        ws.append(pad_w(wvt[:W]))                      # feature part
        ws.append(pad_w(wvt[W:], row0=INPUT_CH))       # input_views part
        bs.append(pad_b(bv_))
        # rgb head, output padded to PAD lanes
        ws.append(pad_w(wr.T))
        bs.append(pad_b(br))
    else:
        wo, bo = params[D]
        ws.append(pad_w(wo.T))
        bs.append(pad_b(bo))

    w_slab = jnp.stack(ws).astype(jnp.bfloat16)        # [NM, PAD, PAD]
    b_slab = jnp.stack(bs)                             # [NB, PAD] f32
    nb = b_slab.shape[0]
    nb_pad = _round_up(nb, 8)                          # sublane-friendly row count
    if nb_pad != nb:
        b_slab = jnp.concatenate(
            [b_slab, jnp.zeros((nb_pad - nb, PAD), f32)], axis=0)
    return w_slab, b_slab


def pack_input(x, n_rows):
    """(N, 6) f32 -> lane-dense (n_rows, PAD) bf16: [pts | views | 0...]."""
    n, c = x.shape
    return jnp.pad(x.astype(jnp.bfloat16), ((0, n_rows - n), (0, PAD - c)))


# ---------------------------------------------------------------------------
# Grid / tile selection.
# ---------------------------------------------------------------------------
def _pick_grid(n, tile_n, min_steps=4):
    """Big tiles to amortize the ~0.35 us per-grid-step overhead, but keep at
    least `min_steps` (even) steps when there is enough work so both v7x
    TensorCores each get >= 2 pipelined steps."""
    n8 = _round_up(max(n, 8), 8)
    tile = _round_up(min(tile_n, n8), 8)
    steps = _cdiv(n8, tile)
    if n8 >= min_steps * 256:                 # enough rows to be worth splitting
        steps = max(steps, min_steps)
        if steps % 2:
            steps += 1                        # balanced split across the two TCs
        tile = _round_up(_cdiv(n8, steps), 8)
        steps = _cdiv(n8, tile)
    return tile, steps


# ---------------------------------------------------------------------------
# Wrapper around pallas_call.
# ---------------------------------------------------------------------------
def render_forward(x, params, use_viewdirs, *, tile_n=2048):
    n, c = x.shape
    assert c == INPUT_CH + INPUT_CH_VIEWS

    w_slab, b_slab = pack_params(params, use_viewdirs)
    tile, steps = _pick_grid(n, tile_n)
    n_pad = tile * steps
    x_pad = pack_input(x, n_pad)

    nm = w_slab.shape[0]
    nb = b_slab.shape[0]
    kernel = functools.partial(_render_kernel, use_viewdirs)

    out = pl.pallas_call(
        kernel,
        out_shape=jax.ShapeDtypeStruct((n_pad, OUTPUT_CH), jnp.float32),
        grid_spec=pltpu.PrefetchScalarGridSpec(
            num_scalar_prefetch=0,
            grid=(steps,),
            in_specs=[
                pl.BlockSpec((tile, PAD), lambda i: (i, 0)),         # activations
                pl.BlockSpec((nm, PAD, PAD), lambda i: (0, 0, 0)),   # weight slab (resident)
                pl.BlockSpec((nb, PAD), lambda i: (0, 0)),           # bias slab (resident)
            ],
            out_specs=pl.BlockSpec((tile, OUTPUT_CH), lambda i: (i, 0)),
        ),
        compiler_params=pltpu.CompilerParams(
            dimension_semantics=("parallel",),
            vmem_limit_bytes=32 * 1024 * 1024),
    )(x_pad, w_slab, b_slab)
    return out[:n] if n_pad != n else out


# ---------------------------------------------------------------------------
# Pure-JAX references.
# ---------------------------------------------------------------------------
def render_reference_f32(x, params, use_viewdirs):
    """Exact f32 mirror of the PyTorch forward."""
    input_pts = x[:, :INPUT_CH]
    input_views = x[:, INPUT_CH:INPUT_CH + INPUT_CH_VIEWS]
    h = input_pts
    for j in range(D):
        w, b = params[j]
        h = jax.nn.relu(h @ w.T + b)
        if j in SKIPS:
            h = jnp.concatenate([input_pts, h], axis=-1)
    if use_viewdirs:
        (wf, bf_), (wa, ba) = params[D], params[D + 1]
        (wv, bv_), (wr, br) = params[D + 2], params[D + 3]
        alpha = h @ wa.T + ba
        feature = h @ wf.T + bf_
        hv = jnp.concatenate([feature, input_views], axis=-1)
        hv = jax.nn.relu(hv @ wv.T + bv_)
        rgb = hv @ wr.T + br
        return jnp.concatenate([rgb, alpha], axis=-1)
    wo, bo = params[D]
    return h @ wo.T + bo


def render_reference_bf16(x, params, use_viewdirs):
    """Mirror of the kernel's numerics: bf16 matmul inputs, f32 accumulation."""
    bf16 = jnp.bfloat16

    def lin(a, w, b):
        return jnp.dot(a.astype(bf16), w.T.astype(bf16),
                       preferred_element_type=jnp.float32) + b

    input_pts = x[:, :INPUT_CH]
    input_views = x[:, INPUT_CH:INPUT_CH + INPUT_CH_VIEWS]
    h = input_pts
    for j in range(D):
        w, b = params[j]
        h = jax.nn.relu(lin(h, w, b))
        if j in SKIPS:
            h = jnp.concatenate([input_pts, h], axis=-1)
    if use_viewdirs:
        (wf, bf_), (wa, ba) = params[D], params[D + 1]
        (wv, bv_), (wr, br) = params[D + 2], params[D + 3]
        alpha = lin(h, wa, ba)
        feature = lin(h, wf, bf_)
        hv = jnp.concatenate([feature, input_views], axis=-1)
        hv = jax.nn.relu(lin(hv, wv, bv_))
        rgb = lin(hv, wr, br)
        return jnp.concatenate([rgb, alpha], axis=-1)
    wo, bo = params[D]
    return lin(h, wo, bo)


if __name__ == "__main__":
    key = jax.random.PRNGKey(0)
    kx, kp1, kp2 = jax.random.split(key, 3)

    for use_vd, kp in ((True, kp1), (False, kp2)):
        params = init_params(kp, use_viewdirs=use_vd)
        for N in (2048, 777):     # multi-step grid path and ragged-N path
            x = jax.random.normal(jax.random.fold_in(kx, N),
                                  (N, INPUT_CH + INPUT_CH_VIEWS), jnp.float32)
            out = render_forward(x, params, use_viewdirs=use_vd)
            jax.block_until_ready(out)
            assert out.shape == (N, OUTPUT_CH)

            # tight check against a reference with matched bf16/f32 numerics
            ref_bf16 = render_reference_bf16(x, params, use_vd)
            assert jnp.allclose(out, ref_bf16, atol=5e-3, rtol=5e-3), (
                f"mismatch vs bf16 reference (use_viewdirs={use_vd}, N={N})")

            # loose sanity check vs the exact f32 PyTorch-equivalent forward
            ref_f32 = render_reference_f32(x, params, use_vd)
            assert jnp.allclose(out, ref_f32, atol=1e-1, rtol=1e-1), (
                f"mismatch vs f32 reference (use_viewdirs={use_vd}, N={N})")

    print("KERNEL_OK")
</pallas_src>

<mosaic_0001>
module attributes {stable_mosaic.version = 11 : i64} {
  func.func @_render_kernel(%arg0: i32, %arg1: memref<512x128xbf16, #tpu.memory_space<vmem>>, %arg2: memref<13x128x128xbf16, #tpu.memory_space<vmem>>, %arg3: memref<16x128xf32, #tpu.memory_space<vmem>>, %arg4: memref<512x4xf32, #tpu.memory_space<vmem>>) attributes {dimension_semantics = [#tpu.dimension_semantics<parallel>], iteration_bounds = array<i64: 4>, scalar_prefetch = 0 : i64, scratch_operands = 0 : i64, tpu.core_type = #tpu.core_type<tc>, window_params = [{transform_indices = @transform_0, window_bounds = array<i64: 512, 128>}, {pipeline_mode = #tpu.pipeline_mode<synchronous>, transform_indices = @transform_1, window_bounds = array<i64: 13, 128, 128>}, {pipeline_mode = #tpu.pipeline_mode<synchronous>, transform_indices = @transform_2, window_bounds = array<i64: 16, 128>}, {transform_indices = @transform_3, window_bounds = array<i64: 512, 4>}]} {
    %c0 = arith.constant 0 : index
    %c0_0 = arith.constant 0 : index
    %0 = vector.load %arg1[%c0, %c0_0] : memref<512x128xbf16, #tpu.memory_space<vmem>>, vector<512x128xbf16>
    %c0_1 = arith.constant 0 : index
    %c0_2 = arith.constant 0 : index
    %c0_3 = arith.constant 0 : index
    %1 = vector.load %arg2[%c0_1, %c0_2, %c0_3] : memref<13x128x128xbf16, #tpu.memory_space<vmem>>, vector<1x128x128xbf16>
    %2 = vector.shape_cast %1 : vector<1x128x128xbf16> to vector<128x128xbf16>
    %cst = arith.constant dense<0.000000e+00> : vector<512x128xf32>
    %3 = tpu.matmul %0, %2, %cst {dimension_numbers = #tpu.dot_dimension_numbers<[1], [0], [0], [1], [0, 0, 1, 1], [], []>} : vector<512x128xbf16>, vector<128x128xbf16>, vector<512x128xf32> -> vector<512x128xf32>
    %c0_4 = arith.constant 0 : index
    %c0_5 = arith.constant 0 : index
    %4 = vector.load %arg3[%c0_4, %c0_5] : memref<16x128xf32, #tpu.memory_space<vmem>>, vector<1x128xf32>
    %5 = vector.broadcast %4 : vector<1x128xf32> to vector<512x128xf32>
    %6 = arith.addf %3, %5 : vector<512x128xf32>
    %cst_6 = arith.constant 0.000000e+00 : f32
    %7 = vector.broadcast %cst_6 : f32 to vector<512x128xf32>
    %8 = arith.maximumf %6, %7 : vector<512x128xf32>
    %9 = arith.truncf %8 : vector<512x128xf32> to vector<512x128xbf16>
    %c1 = arith.constant 1 : index
    %c0_7 = arith.constant 0 : index
    %c0_8 = arith.constant 0 : index
    %10 = vector.load %arg2[%c1, %c0_7, %c0_8] : memref<13x128x128xbf16, #tpu.memory_space<vmem>>, vector<1x128x128xbf16>
    %11 = vector.shape_cast %10 : vector<1x128x128xbf16> to vector<128x128xbf16>
    %cst_9 = arith.constant dense<0.000000e+00> : vector<512x128xf32>
    %12 = tpu.matmul %9, %11, %cst_9 {dimension_numbers = #tpu.dot_dimension_numbers<[1], [0], [0], [1], [0, 0, 1, 1], [], []>} : vector<512x128xbf16>, vector<128x128xbf16>, vector<512x128xf32> -> vector<512x128xf32>
    %c1_10 = arith.constant 1 : index
    %c0_11 = arith.constant 0 : index
    %13 = vector.load %arg3[%c1_10, %c0_11] : memref<16x128xf32, #tpu.memory_space<vmem>>, vector<1x128xf32>
    %14 = vector.broadcast %13 : vector<1x128xf32> to vector<512x128xf32>
    %15 = arith.addf %12, %14 : vector<512x128xf32>
    %cst_12 = arith.constant 0.000000e+00 : f32
    %16 = vector.broadcast %cst_12 : f32 to vector<512x128xf32>
    %17 = arith.maximumf %15, %16 : vector<512x128xf32>
    %18 = arith.truncf %17 : vector<512x128xf32> to vector<512x128xbf16>
    %c2 = arith.constant 2 : index
    %c0_13 = arith.constant 0 : index
    %c0_14 = arith.constant 0 : index
    %19 = vector.load %arg2[%c2, %c0_13, %c0_14] : memref<13x128x128xbf16, #tpu.memory_space<vmem>>, vector<1x128x128xbf16>
    %20 = vector.shape_cast %19 : vector<1x128x128xbf16> to vector<128x128xbf16>
    %cst_15 = arith.constant dense<0.000000e+00> : vector<512x128xf32>
    %21 = tpu.matmul %18, %20, %cst_15 {dimension_numbers = #tpu.dot_dimension_numbers<[1], [0], [0], [1], [0, 0, 1, 1], [], []>} : vector<512x128xbf16>, vector<128x128xbf16>, vector<512x128xf32> -> vector<512x128xf32>
    %c2_16 = arith.constant 2 : index
    %c0_17 = arith.constant 0 : index
    %22 = vector.load %arg3[%c2_16, %c0_17] : memref<16x128xf32, #tpu.memory_space<vmem>>, vector<1x128xf32>
    %23 = vector.broadcast %22 : vector<1x128xf32> to vector<512x128xf32>
    %24 = arith.addf %21, %23 : vector<512x128xf32>
    %cst_18 = arith.constant 0.000000e+00 : f32
    %25 = vector.broadcast %cst_18 : f32 to vector<512x128xf32>
    %26 = arith.maximumf %24, %25 : vector<512x128xf32>
    %27 = arith.truncf %26 : vector<512x128xf32> to vector<512x128xbf16>
    %c3 = arith.constant 3 : index
    %c0_19 = arith.constant 0 : index
    %c0_20 = arith.constant 0 : index
    %28 = vector.load %arg2[%c3, %c0_19, %c0_20] : memref<13x128x128xbf16, #tpu.memory_space<vmem>>, vector<1x128x128xbf16>
    %29 = vector.shape_cast %28 : vector<1x128x128xbf16> to vector<128x128xbf16>
    %cst_21 = arith.constant dense<0.000000e+00> : vector<512x128xf32>
    %30 = tpu.matmul %27, %29, %cst_21 {dimension_numbers = #tpu.dot_dimension_numbers<[1], [0], [0], [1], [0, 0, 1, 1], [], []>} : vector<512x128xbf16>, vector<128x128xbf16>, vector<512x128xf32> -> vector<512x128xf32>
    %c3_22 = arith.constant 3 : index
    %c0_23 = arith.constant 0 : index
    %31 = vector.load %arg3[%c3_22, %c0_23] : memref<16x128xf32, #tpu.memory_space<vmem>>, vector<1x128xf32>
    %32 = vector.broadcast %31 : vector<1x128xf32> to vector<512x128xf32>
    %33 = arith.addf %30, %32 : vector<512x128xf32>
    %cst_24 = arith.constant 0.000000e+00 : f32
    %34 = vector.broadcast %cst_24 : f32 to vector<512x128xf32>
    %35 = arith.maximumf %33, %34 : vector<512x128xf32>
    %36 = arith.truncf %35 : vector<512x128xf32> to vector<512x128xbf16>
    %c4 = arith.constant 4 : index
    %c0_25 = arith.constant 0 : index
    %c0_26 = arith.constant 0 : index
    %37 = vector.load %arg2[%c4, %c0_25, %c0_26] : memref<13x128x128xbf16, #tpu.memory_space<vmem>>, vector<1x128x128xbf16>
    %38 = vector.shape_cast %37 : vector<1x128x128xbf16> to vector<128x128xbf16>
    %cst_27 = arith.constant dense<0.000000e+00> : vector<512x128xf32>
    %39 = tpu.matmul %36, %38, %cst_27 {dimension_numbers = #tpu.dot_dimension_numbers<[1], [0], [0], [1], [0, 0, 1, 1], [], []>} : vector<512x128xbf16>, vector<128x128xbf16>, vector<512x128xf32> -> vector<512x128xf32>
    %c4_28 = arith.constant 4 : index
    %c0_29 = arith.constant 0 : index
    %40 = vector.load %arg3[%c4_28, %c0_29] : memref<16x128xf32, #tpu.memory_space<vmem>>, vector<1x128xf32>
    %41 = vector.broadcast %40 : vector<1x128xf32> to vector<512x128xf32>
    %42 = arith.addf %39, %41 : vector<512x128xf32>
    %cst_30 = arith.constant 0.000000e+00 : f32
    %43 = vector.broadcast %cst_30 : f32 to vector<512x128xf32>
    %44 = arith.maximumf %42, %43 : vector<512x128xf32>
    %45 = arith.truncf %44 : vector<512x128xf32> to vector<512x128xbf16>
    %c5 = arith.constant 5 : index
    %c0_31 = arith.constant 0 : index
    %c0_32 = arith.constant 0 : index
    %46 = vector.load %arg2[%c5, %c0_31, %c0_32] : memref<13x128x128xbf16, #tpu.memory_space<vmem>>, vector<1x128x128xbf16>
    %47 = vector.shape_cast %46 : vector<1x128x128xbf16> to vector<128x128xbf16>
    %cst_33 = arith.constant dense<0.000000e+00> : vector<512x128xf32>
    %48 = tpu.matmul %0, %47, %cst_33 {dimension_numbers = #tpu.dot_dimension_numbers<[1], [0], [0], [1], [0, 0, 1, 1], [], []>} : vector<512x128xbf16>, vector<128x128xbf16>, vector<512x128xf32> -> vector<512x128xf32>
    %c6 = arith.constant 6 : index
    %c0_34 = arith.constant 0 : index
    %c0_35 = arith.constant 0 : index
    %49 = vector.load %arg2[%c6, %c0_34, %c0_35] : memref<13x128x128xbf16, #tpu.memory_space<vmem>>, vector<1x128x128xbf16>
    %50 = vector.shape_cast %49 : vector<1x128x128xbf16> to vector<128x128xbf16>
    %cst_36 = arith.constant dense<0.000000e+00> : vector<512x128xf32>
    %51 = tpu.matmul %45, %50, %cst_36 {dimension_numbers = #tpu.dot_dimension_numbers<[1], [0], [0], [1], [0, 0, 1, 1], [], []>} : vector<512x128xbf16>, vector<128x128xbf16>, vector<512x128xf32> -> vector<512x128xf32>
    %52 = arith.addf %48, %51 : vector<512x128xf32>
    %c5_37 = arith.constant 5 : index
    %c0_38 = arith.constant 0 : index
    %53 = vector.load %arg3[%c5_37, %c0_38] : memref<16x128xf32, #tpu.memory_space<vmem>>, vector<1x128xf32>
    %54 = vector.broadcast %53 : vector<1x128xf32> to vector<512x128xf32>
    %55 = arith.addf %52, %54 : vector<512x128xf32>
    %cst_39 = arith.constant 0.000000e+00 : f32
    %56 = vector.broadcast %cst_39 : f32 to vector<512x128xf32>
    %57 = arith.maximumf %55, %56 : vector<512x128xf32>
    %58 = arith.truncf %57 : vector<512x128xf32> to vector<512x128xbf16>
    %c7 = arith.constant 7 : index
    %c0_40 = arith.constant 0 : index
    %c0_41 = arith.constant 0 : index
    %59 = vector.load %arg2[%c7, %c0_40, %c0_41] : memref<13x128x128xbf16, #tpu.memory_space<vmem>>, vector<1x128x128xbf16>
    %60 = vector.shape_cast %59 : vector<1x128x128xbf16> to vector<128x128xbf16>
    %cst_42 = arith.constant dense<0.000000e+00> : vector<512x128xf32>
    %61 = tpu.matmul %58, %60, %cst_42 {dimension_numbers = #tpu.dot_dimension_numbers<[1], [0], [0], [1], [0, 0, 1, 1], [], []>} : vector<512x128xbf16>, vector<128x128xbf16>, vector<512x128xf32> -> vector<512x128xf32>
    %c6_43 = arith.constant 6 : index
    %c0_44 = arith.constant 0 : index
    %62 = vector.load %arg3[%c6_43, %c0_44] : memref<16x128xf32, #tpu.memory_space<vmem>>, vector<1x128xf32>
    %63 = vector.broadcast %62 : vector<1x128xf32> to vector<512x128xf32>
    %64 = arith.addf %61, %63 : vector<512x128xf32>
    %cst_45 = arith.constant 0.000000e+00 : f32
    %65 = vector.broadcast %cst_45 : f32 to vector<512x128xf32>
    %66 = arith.maximumf %64, %65 : vector<512x128xf32>
    %67 = arith.truncf %66 : vector<512x128xf32> to vector<512x128xbf16>
    %c8 = arith.constant 8 : index
    %c0_46 = arith.constant 0 : index
    %c0_47 = arith.constant 0 : index
    %68 = vector.load %arg2[%c8, %c0_46, %c0_47] : memref<13x128x128xbf16, #tpu.memory_space<vmem>>, vector<1x128x128xbf16>
    %69 = vector.shape_cast %68 : vector<1x128x128xbf16> to vector<128x128xbf16>
    %cst_48 = arith.constant dense<0.000000e+00> : vector<512x128xf32>
    %70 = tpu.matmul %67, %69, %cst_48 {dimension_numbers = #tpu.dot_dimension_numbers<[1], [0], [0], [1], [0, 0, 1, 1], [], []>} : vector<512x128xbf16>, vector<128x128xbf16>, vector<512x128xf32> -> vector<512x128xf32>
    %c7_49 = arith.constant 7 : index
    %c0_50 = arith.constant 0 : index
    %71 = vector.load %arg3[%c7_49, %c0_50] : memref<16x128xf32, #tpu.memory_space<vmem>>, vector<1x128xf32>
    %72 = vector.broadcast %71 : vector<1x128xf32> to vector<512x128xf32>
    %73 = arith.addf %70, %72 : vector<512x128xf32>
    %cst_51 = arith.constant 0.000000e+00 : f32
    %74 = vector.broadcast %cst_51 : f32 to vector<512x128xf32>
    %75 = arith.maximumf %73, %74 : vector<512x128xf32>
    %76 = arith.truncf %75 : vector<512x128xf32> to vector<512x128xbf16>
    %c9 = arith.constant 9 : index
    %c0_52 = arith.constant 0 : index
    %c0_53 = arith.constant 0 : index
    %77 = vector.load %arg2[%c9, %c0_52, %c0_53] : memref<13x128x128xbf16, #tpu.memory_space<vmem>>, vector<1x128x128xbf16>
    %78 = vector.shape_cast %77 : vector<1x128x128xbf16> to vector<128x128xbf16>
    %cst_54 = arith.constant dense<0.000000e+00> : vector<512x128xf32>
    %79 = tpu.matmul %76, %78, %cst_54 {dimension_numbers = #tpu.dot_dimension_numbers<[1], [0], [0], [1], [0, 0, 1, 1], [], []>} : vector<512x128xbf16>, vector<128x128xbf16>, vector<512x128xf32> -> vector<512x128xf32>
    %c8_55 = arith.constant 8 : index
    %c0_56 = arith.constant 0 : index
    %80 = vector.load %arg3[%c8_55, %c0_56] : memref<16x128xf32, #tpu.memory_space<vmem>>, vector<1x128xf32>
    %81 = vector.broadcast %80 : vector<1x128xf32> to vector<512x128xf32>
    %82 = arith.addf %79, %81 : vector<512x128xf32>
    %83 = vector.extract_strided_slice %82 {offsets = [0, 64], sizes = [512, 1], strides = [1, 1]} : vector<512x128xf32> to vector<512x1xf32>
    %84 = arith.truncf %82 : vector<512x128xf32> to vector<512x128xbf16>
    %c10 = arith.constant 10 : index
    %c0_57 = arith.constant 0 : index
    %c0_58 = arith.constant 0 : index
    %85 = vector.load %arg2[%c10, %c0_57, %c0_58] : memref<13x128x128xbf16, #tpu.memory_space<vmem>>, vector<1x128x128xbf16>
    %86 = vector.shape_cast %85 : vector<1x128x128xbf16> to vector<128x128xbf16>
    %cst_59 = arith.constant dense<0.000000e+00> : vector<512x128xf32>
    %87 = tpu.matmul %84, %86, %cst_59 {dimension_numbers = #tpu.dot_dimension_numbers<[1], [0], [0], [1], [0, 0, 1, 1], [], []>} : vector<512x128xbf16>, vector<128x128xbf16>, vector<512x128xf32> -> vector<512x128xf32>
    %c11 = arith.constant 11 : index
    %c0_60 = arith.constant 0 : index
    %c0_61 = arith.constant 0 : index
    %88 = vector.load %arg2[%c11, %c0_60, %c0_61] : memref<13x128x128xbf16, #tpu.memory_space<vmem>>, vector<1x128x128xbf16>
    %89 = vector.shape_cast %88 : vector<1x128x128xbf16> to vector<128x128xbf16>
    %cst_62 = arith.constant dense<0.000000e+00> : vector<512x128xf32>
    %90 = tpu.matmul %0, %89, %cst_62 {dimension_numbers = #tpu.dot_dimension_numbers<[1], [0], [0], [1], [0, 0, 1, 1], [], []>} : vector<512x128xbf16>, vector<128x128xbf16>, vector<512x128xf32> -> vector<512x128xf32>
    %91 = arith.addf %87, %90 : vector<512x128xf32>
    %c9_63 = arith.constant 9 : index
    %c0_64 = arith.constant 0 : index
    %92 = vector.load %arg3[%c9_63, %c0_64] : memref<16x128xf32, #tpu.memory_space<vmem>>, vector<1x128xf32>
    %93 = vector.broadcast %92 : vector<1x128xf32> to vector<512x128xf32>
    %94 = arith.addf %91, %93 : vector<512x128xf32>
    %cst_65 = arith.constant 0.000000e+00 : f32
    %95 = vector.broadcast %cst_65 : f32 to vector<512x128xf32>
    %96 = arith.maximumf %94, %95 : vector<512x128xf32>
    %97 = arith.truncf %96 : vector<512x128xf32> to vector<512x128xbf16>
    %c12 = arith.constant 12 : index
    %c0_66 = arith.constant 0 : index
    %c0_67 = arith.constant 0 : index
    %98 = vector.load %arg2[%c12, %c0_66, %c0_67] : memref<13x128x128xbf16, #tpu.memory_space<vmem>>, vector<1x128x128xbf16>
    %99 = vector.shape_cast %98 : vector<1x128x128xbf16> to vector<128x128xbf16>
    %cst_68 = arith.constant dense<0.000000e+00> : vector<512x128xf32>
    %100 = tpu.matmul %97, %99, %cst_68 {dimension_numbers = #tpu.dot_dimension_numbers<[1], [0], [0], [1], [0, 0, 1, 1], [], []>} : vector<512x128xbf16>, vector<128x128xbf16>, vector<512x128xf32> -> vector<512x128xf32>
    %c10_69 = arith.constant 10 : index
    %c0_70 = arith.constant 0 : index
    %101 = vector.load %arg3[%c10_69, %c0_70] : memref<16x128xf32, #tpu.memory_space<vmem>>, vector<1x128xf32>
    %102 = vector.broadcast %101 : vector<1x128xf32> to vector<512x128xf32>
    %103 = arith.addf %100, %102 : vector<512x128xf32>
    %104 = vector.extract_strided_slice %103 {offsets = [0, 0], sizes = [512, 3], strides = [1, 1]} : vector<512x128xf32> to vector<512x3xf32>
    %c0_71 = arith.constant 0 : index
    %c0_72 = arith.constant 0 : index
    %105 = vector.load %arg4[%c0_71, %c0_72] : memref<512x4xf32, #tpu.memory_space<vmem>>, vector<512x3xf32>
    tpu.vector_store %arg4[%c0_71, %c0_72], %104 {strides = array<i32>} : memref<512x4xf32, #tpu.memory_space<vmem>>, vector<512x3xf32>,
    %c0_73 = arith.constant 0 : index
    %c3_74 = arith.constant 3 : index
    %106 = vector.load %arg4[%c0_73, %c3_74] : memref<512x4xf32, #tpu.memory_space<vmem>>, vector<512x1xf32>
    tpu.vector_store %arg4[%c0_73, %c3_74], %83 {strides = array<i32>} : memref<512x4xf32, #tpu.memory_space<vmem>>, vector<512x1xf32>,
    return
  }
  func.func @transform_0(%arg0: i32) -> (i32, i32) {
    %c0_i32 = arith.constant 0 : i32
    %c0_i32_0 = arith.constant 0 : i32
    return %arg0, %c0_i32 : i32, i32
  }
  func.func @transform_1(%arg0: i32) -> (i32, i32, i32) {
    %c0_i32 = arith.constant 0 : i32
    %c0_i32_0 = arith.constant 0 : i32
    %c0_i32_1 = arith.constant 0 : i32
    %c0_i32_2 = arith.constant 0 : i32
    return %c0_i32, %c0_i32_0, %c0_i32_1 : i32, i32, i32
  }
  func.func @transform_2(%arg0: i32) -> (i32, i32) {
    %c0_i32 = arith.constant 0 : i32
    %c0_i32_0 = arith.constant 0 : i32
    %c0_i32_1 = arith.constant 0 : i32
    return %c0_i32, %c0_i32_0 : i32, i32
  }
  func.func @transform_3(%arg0: i32) -> (i32, i32) {
    %c0_i32 = arith.constant 0 : i32
    %c0_i32_0 = arith.constant 0 : i32
    return %arg0, %c0_i32 : i32, i32
  }
}

</mosaic_0001>

<bundles_post_ra>
// kernel: tpu_custom_call.1
= control target key start
LH: loop header
LB: loop body
LE: loop exit
PB: predicated region body
PF: predicated region fallthrough
CT: control target
= control target key end

     0   :  { %8 = vsyncpa [#allocation3], 0  ;;  %s10536_s0 = inlined_call_operand.hbm [shape: bf16[2048,128], index: 0, kind: input, shape index: {}]   ;;  %s10537_s1 = inlined_call_operand.hbm [shape: bf16[13,128,128], index: 1, kind: input, shape index: {}]   ;;  %s10538_s2 = inlined_call_operand.hbm [shape: f32[16,128], index: 2, kind: input, shape index: {}]   ;;  %s10539_s3 = inlined_call_operand.vmem [shape: f32[2048,4], index: 3, kind: output, shape index: {}]  }
   0x1   :  { %10 = vsyncpa [#allocation3 + $0x1], 0 }
   0x2   :  { %11 = vsyncpa [#allocation5], 0  ;;  %s8785_s12 = smov 0   ;;  %s8787_s13 = smov 0  }
   0x3   :  { %s8789_s14 = smov 0   ;;  %s8791_s15 = smov 0  }
   0x4 LB: > { %s6631_s16 = sadd.s32 4294967295, %s8755_s15   ;;  %p37_p0 = scmp.ne.s32.totalorder %s8747_s13, %s8743_s12  ;;  %s8755_s15 = sphi %s8791_s15, %s10555_s15   ;;  %s8751_s14 = sphi %s8789_s14, %s10554_s14   ;;  %s8747_s13 = sphi %s8787_s13, %s10553_s13   ;;  %s8743_s12 = sphi %s8785_s12, %s10552_s12  }
   0x5   : > { %p8807_p1 = scmp.eq.s32.totalorder %s6631_s16, 0  ;;  %p6633_p2 = scmp.ge.s32.totalorder %s8755_s15, 1 }
   0x6   : > { %p116_p3 = scmp.lt.s32.totalorder %s8755_s15, 5  ;;  %s8757_s20 = smov [#allocation4]  }
   0x7   : > { %s10544_s17 = scalar_select %p8807_p1, 1, 0 }
   0x8   : > { %p8815_p4 = por %p8807_p1, %p37_p0  ;;  %p8819_p5 = pnand %p6633_p2, %p116_p3 }
   0x9   : > { %s128_s21 = sshll.u32 %s8757_s20, 4  ;;  %s8758_s23 = smov [#allocation6]   ;;  %s129_s21 = int_to_ptr.vmem [resolvable:$true] %s128_s21 }
   0xa   : > { %s10545_s18 = scalar_select %p8815_p4, 1, 0 }
   0xb   : > { %s10546_s19 = scalar_select %p8819_p5, 1, 0 }
   0xc   : > { %p8382_p6 = pneg %p8819_p5  ;;  %s141_s24 = sshll.u32 %s8758_s23, 4  ;;  %s142_s24 = int_to_ptr.vmem [resolvable:$true] %s141_s24 }
   0xd   : > { %s8648_s25 = scalar_lea.vmem %s129_s21, 13312  ;;  %p8656_p12 = scmp.lt.s32.totalorder %s129_s21, %s129_s21 }
   0xe   : > { %p8827_p7 = pnand %p8382_p6, %p8807_p1  ;;  %p8649_p9 = scmp.ne.s32.totalorder %s129_s21, %s8648_s25 }
   0xf   : > { %p8657_p13 = scmp.lt.s32.totalorder %s8648_s25, %s8648_s25 }
  0x10   : > { %p8639_p8 = pneg %p8827_p7 }
  0x11   : > { %p8658_p0 = por %p8657_p13, %p8656_p12 }
  0x12   : > { %p8651_p10 = pnand %p8649_p9, %p8639_p8 }
  0x14   : > { %p8652_p11 = pneg %p8651_p10 }
  0x16   : > { %p8659_p2 = pnand %p8658_p0, %p8652_p11 }
  0x18   : > { %8662 = shalt.err (!%p8659_p2)
}
  0x19   : > { %s8759_s26 = smov 64   ;;  %s8760_s27 = smov 4  }
  0x1a   : > { %8385 = dma.hbm_to_vmem [thread:$0]  (!%p8827_p7), %s10537_s1, 13312, %s129_s21, [#allocation5], %s8759_s26, %s8759_s26, %s8760_s27  }
  0x1b   : > { %s8674_s30 = scalar_lea.vmem %s142_s24, 256  ;;  %p8682_p10 = scmp.lt.s32.totalorder %s142_s24, %s142_s24 }
  0x1c   : > { %p8675_p3 = scmp.ne.s32.totalorder %s142_s24, %s8674_s30  ;;  %p8683_p11 = scmp.lt.s32.totalorder %s8674_s30, %s8674_s30 }
  0x1e   : > { %p8677_p6 = pnand %p8675_p3, %p8639_p8  ;;  %p8684_p12 = por %p8683_p11, %p8682_p10 }
  0x20   : > { %p8678_p9 = pneg %p8677_p6 }
  0x22   : > { %p8685_p13 = pnand %p8684_p12, %p8678_p9 }
  0x24   : > { %8688 = shalt.err (!%p8685_p13)
}
  0x25   : > { %s8761_s4 = smov 128   ;;  %s8762_s5 = smov 8  }
  0x26   : > { %8388 = dma.hbm_to_vmem [thread:$0]  (!%p8827_p7), %s10538_s2, 256, %s142_s24, [#allocation5], %s8761_s4, %s8761_s4, %s8762_s5  }
  0x27   : > { %s8853_s8 = sadd.s32 1, %s8755_s15   ;;  %s24_s10 = sadd.s32 1, %s8751_s14 }
  0x28   : > { %s21_s9 = ssub.s32 %s8755_s15, %s8853_s8  ;;  %p31_p0 = scmp.ne.s32.totalorder %s8751_s14, %s8747_s13 }
  0x29   : > { %p22_p8 = scmp.eq.s32.totalorder %s21_s9, 0  ;;  %p32_p2 = scmp.eq.s32.totalorder %s8755_s15, 0 }
  0x2a   : > { %p8395_p6 = scmp.lt.s32.totalorder %s8755_s15, 4  ;;  %s155_s12 = sand.u32 1, %s8751_s14  }
  0x2b   : > { %s8862_s11 = scalar_select %p22_p8, %s8751_s14, %s24_s10  }
  0x2c   : > { %p33_p3 = por %p32_p2, %p31_p0  ;;  %s6795_s20 = sshll.u32 %s8755_s15, 12 }
  0x2d   : > { %s6637_s21 = sshll.u32 %s155_s12, 8  ;;  %s8870_s25 = scalar_lea.hbm %s10536_s0, %s6795_s20 }
  0x2e   : > { %s159_s24 = scalar_lea.vmem [#allocation2], %s6637_s21  ;;  %p8872_p7 = pnand %p8395_p6, %p33_p3 }
  0x2f   : > { %s166_s28 = sshll.u32 %s159_s24, 4  ;;  %s8878_s30 = scalar_lea.sflag [#allocation3], %s155_s12  ;;  %s8876_s28 = int_to_ptr.vmem [resolvable:$true] %s166_s28 }
  0x30   : > { %s8689_s4 = scalar_lea.hbm %s8870_s25, 4096  ;;  %p8691_p10 = pneg %p8872_p7 }
  0x31   : > { %p8690_p9 = scmp.ne.s32.totalorder %s8870_s25, %s8689_s4  ;;  %s8694_s7 = scalar_lea.hbm %s10536_s0, 16384 }
  0x32   : > { %p8695_p13 = scmp.lt.s32.totalorder %s8870_s25, %s10536_s0  ;;  %p8696_p8 = scmp.lt.s32.totalorder %s8694_s7, %s8689_s4 }
  0x33   : > { %p8692_p11 = pnand %p8691_p10, %p8690_p9 }
  0x34   : > { %p8697_p0 = por %p8696_p8, %p8695_p13 }
  0x35   : > { %p8693_p12 = pneg %p8692_p11 }
  0x37   : > { %p8698_p2 = pnand %p8697_p0, %p8693_p12 }
  0x39   : > { %8701 = shalt.err (!%p8698_p2)
}
  0x3a   : > { %s8702_s12 = scalar_lea.vmem %s8876_s28, 4096  ;;  %s8763_s20 = smov [#allocation2]  }
  0x3b   : > { %p8703_p3 = scmp.ne.s32.totalorder %s8876_s28, %s8702_s12  ;;  %s8707_s21 = sshll.u32 %s8763_s20, 4  ;;  %s8708_s21 = int_to_ptr.vmem [resolvable:$false] %s8707_s21 }
  0x3c   : > { %s8709_s22 = scalar_lea.vmem %s8708_s21, 8192  ;;  %p8710_p11 = scmp.lt.s32.totalorder %s8876_s28, %s8708_s21 }
  0x3d   : > { %p8705_p6 = pnand %p8703_p3, %p8691_p10  ;;  %p8711_p1 = scmp.lt.s32.totalorder %s8709_s22, %s8702_s12 }
  0x3f   : > { %p8706_p9 = pneg %p8705_p6  ;;  %p8712_p4 = por %p8711_p1, %p8710_p11 }
  0x41   : > { %p8713_p5 = pnand %p8712_p4, %p8706_p9 }
  0x43   : > { %8716 = shalt.err (!%p8713_p5)
}
  0x44   : > { %8392 = dma.hbm_to_vmem [thread:$0]  (!%p8872_p7), %s8870_s25, 4096, %s8876_s28, %s8878_s30, %s8759_s26, %s8759_s26, %s8760_s27  }
  0x45   : > { %p10549_p10 = scmp.ne.s32.totalorder %s10546_s19, 0 }
  0x46   : > { %s180_s23 = sand.u32 (!%p10549_p10), 1, %s8747_s13   ;;  %p10550_p1 = scmp.ne.s32.totalorder (!%p10549_p10), %s10545_s18, 0 }
  0x47   : > { %178 = sbr.rel (%p10549_p10) target bundleno = 2498 (0x9c2), region = 32  ;;  %s6641_s24 = sshll.u32 (!%p10549_p10), %s180_s23, 8 }
  0x48   : > { %s181_s4 = scalar_lea.sflag (!%p10549_p10), [#allocation3], %s180_s23  ;;  %s8905_s5 = scalar_lea.vmem (!%p10549_p10), [#allocation2], %s6641_s24 }
  0x4c   : > { %8734 = dma.done.wait (%p10550_p1), %s181_s4, 4096  }
  0x4d   : > { %8736 = vsyncadd (%p10550_p1), %s181_s4, 4294963200  ;;  %p10551_p4 = scmp.ne.s32.totalorder %s10544_s17, 0 }
  0x4f   : > { %8738 = dma.done.wait (%p10551_p4), [#allocation5], 13568  }
  0x50   : > { %8740 = vsyncadd (%p10551_p4), [#allocation5], 4294953728  ;;  %v8437_v0 = vld [vmem:[#allocation4 + $0x38] sm:$0xff]   ;;  %v8438_v1 = vld [vmem:[#allocation4 + $0x30] sm:$0xff]   ;;  %s8764_s17 = smov 67   ;;  %s6644_s18 = sshll.u32 %s6631_s16, 6 }
  0x51   : > { %7316 = vmatprep.subr.bf16.mxu0 %v8437_v0  ;;  %8356 = vmatprep.subr.bf16.mxu1 %v8437_v0  ;;  %v8439_v2 = vld [vmem:[#allocation4 + $0x28] sm:$0xff]   ;;  %v8440_v3 = vld [vmem:[#allocation4 + $0x20] sm:$0xff]   ;;  %v8441_v5 = vld [vmem:[#allocation4 + $0x18] sm:$0xff]   ;;  %p217_p5 = scmp.lt.s32.totalorder %s6644_s18, 255  ;;  %vm6159_vm0 = vcmask 23552   ;;  %vm6480_vm1 = vcmask 31768  }
  0x52   : > { %7317 = vmatpush3.bf16.msra.mxu0 %v8437_v0  ;;  %8364 = vmatpush3.bf16.msra.mxu1 %v8437_v0  ;;  %v8445_v4 = vld [vmem:[%s8905_s5] sm:$0xff]   ;;  %v8442_v6 = vld [vmem:[#allocation4 + $0x10] sm:$0xff]   ;;  %v8443_v7 = vld [vmem:[#allocation4 + $0x8] sm:$0xff]  }
  0x53   : > { %7318 = vmatprep.subr.bf16.mxu0 %v8438_v1  ;;  %8357 = vmatprep.subr.bf16.mxu1 %v8438_v1  ;;  %v8444_v8 = vld [vmem:[#allocation4] sm:$0xff]   ;;  %v8446_v10 = vld [vmem:[%s8905_s5 + $0x8] sm:$0xff]   ;;  %v8447_v11 = vld [vmem:[%s8905_s5 + $0x10] sm:$0xff]   ;;  %s10557_s18 = smov (!%p217_p5, %s6644_s18), 255 }
  0x54   : > { %7332 = vmatprep.mubr.bf16.mxu0 %v8445_v4  ;;  %v8461_v9 = vld [vmem:[%s8905_s5 + $0x80] sm:$0xff]   ;;  %v8462_v12 = vld [vmem:[%s8905_s5 + $0x88] sm:$0xff]   ;;  %v8463_v13 = vld [vmem:[%s8905_s5 + $0x90] sm:$0xff]   ;;  %s6645_s19 = sshll.u32 %s10557_s18, 3 }
  0x55   : > { %7364 = vmatprep.mubr.bf16.mxu1 %v8461_v9  ;;  %v8448_v14 = vld [vmem:[%s8905_s5 + $0x18] sm:$0xff]   ;;  %v8449_v15 = vld [vmem:[%s8905_s5 + $0x20] sm:$0xff]   ;;  %v8478_v19 = vld [vmem:[#allocation4 + $0x70] sm:$0xff]   ;;  %s10131_s25 = scalar_lea.vmem %s10539_s3, %s6645_s19 }
  0x56   : > { %7319 = vmatpush3.bf16.msra.mxu0 %v8438_v1  ;;  %8365 = vmatpush3.bf16.msra.mxu1 %v8438_v1  ;;  %v8464_v16 = vld [vmem:[%s8905_s5 + $0x98] sm:$0xff]   ;;  %v8465_v17 = vld [vmem:[%s8905_s5 + $0xa0] sm:$0xff]   ;;  %v8450_v20 = vld [vmem:[%s8905_s5 + $0x28] sm:$0xff]  }
  0x57   : > { %7320 = vmatprep.subr.bf16.mxu0 %v8439_v2  ;;  %8358 = vmatprep.subr.bf16.mxu1 %v8439_v2  ;;  %v8477_v18 = vld [vmem:[#allocation4 + $0x78] sm:$0xff]   ;;  %v8466_v21 = vld [vmem:[%s8905_s5 + $0xa8] sm:$0xff]   ;;  %v8451_v22 = vld [vmem:[%s8905_s5 + $0x30] sm:$0xff]  }
  0x58   : > { %v8467_v23 = vld [vmem:[%s8905_s5 + $0xb0] sm:$0xff]   ;;  %v8479_v24 = vld [vmem:[#allocation4 + $0x68] sm:$0xff]   ;;  %v8480_v25 = vld [vmem:[#allocation4 + $0x60] sm:$0xff]  }
  0x59   : > { %v8452_v26 = vld [vmem:[%s8905_s5 + $0x38] sm:$0xff]   ;;  %v8453_v28 = vld [vmem:[%s8905_s5 + $0x40] sm:$0xff]   ;;  %v8482_v31 = vld [vmem:[#allocation4 + $0x50] sm:$0xff]  }
  0x5a   : > { %7321 = vmatpush3.bf16.msra.mxu0 %v8439_v2  ;;  %8366 = vmatpush3.bf16.msra.mxu1 %v8439_v2  ;;  %v8468_v27 = vld [vmem:[%s8905_s5 + $0xb8] sm:$0xff]   ;;  %v8469_v29 = vld [vmem:[%s8905_s5 + $0xc0] sm:$0xff]   ;;  %v8454_v32 = vld [vmem:[%s8905_s5 + $0x48] sm:$0xff]  }
  0x5b   : > { %7322 = vmatprep.subr.bf16.mxu0 %v8440_v3  ;;  %8359 = vmatprep.subr.bf16.mxu1 %v8440_v3  ;;  %v8481_v30 = vld [vmem:[#allocation4 + $0x58] sm:$0xff]   ;;  %v8470_v33 = vld [vmem:[%s8905_s5 + $0xc8] sm:$0xff]   ;;  %v8455_v34 = vld [vmem:[%s8905_s5 + $0x50] sm:$0xff]  }
  0x5c   : > { %v8471_v35 = vld [vmem:[%s8905_s5 + $0xd0] sm:$0xff]   ;;  %v8483_v36 = vld [vmem:[#allocation4 + $0x48] sm:$0xff]   ;;  %v8456_v37 = vld [vmem:[%s8905_s5 + $0x58] sm:$0xff]  }
  0x5d   : > { %v8472_v38 = vld [vmem:[%s8905_s5 + $0xd8] sm:$0xff]   ;;  %v8457_v39 = vld [vmem:[%s8905_s5 + $0x60] sm:$0xff]   ;;  %v8458_v41 = vld [vmem:[%s8905_s5 + $0x68] sm:$0xff]  }
  0x5e   : > { %7323 = vmatpush3.bf16.msra.mxu0 %v8440_v3  ;;  %8367 = vmatpush3.bf16.msra.mxu1 %v8440_v3  ;;  %v8473_v40 = vld [vmem:[%s8905_s5 + $0xe0] sm:$0xff]   ;;  %v8474_v42 = vld [vmem:[%s8905_s5 + $0xe8] sm:$0xff]   ;;  %v8459_v43 = vld [vmem:[%s8905_s5 + $0x70] sm:$0xff]  }
  0x5f   : > { %7324 = vmatprep.subr.bf16.mxu0 %v8441_v5  ;;  %8360 = vmatprep.subr.bf16.mxu1 %v8441_v5  ;;  %v8475_v44 = vld [vmem:[%s8905_s5 + $0xf0] sm:$0xff]   ;;  %v8460_v45 = vld [vmem:[%s8905_s5 + $0x78] sm:$0xff]   ;;  %v8484_v47 = vld [vmem:[#allocation4 + $0x40] sm:$0xff]  }
  0x60   : > { %v8476_v46 = vld [vmem:[%s8905_s5 + $0xf8] sm:$0xff]   ;;  %v8951_v52 = vld [vmem:[#allocation6] ss:$0 sm:$0xff]  ;;  %v8486_v61 = vld [vmem:[#allocation4 + $0xb0] sm:$0xff]  }
  0x61   : > { %v8485_v60 = vld [vmem:[#allocation4 + $0xb8] sm:$0xff]  }
  0x62   : > { %7325 = vmatpush3.bf16.msra.mxu0 %v8441_v5  ;;  %8368 = vmatpush3.bf16.msra.mxu1 %v8441_v5 }
  0x63   : > { %7326 = vmatprep.subr.bf16.mxu0 %v8442_v6  ;;  %8361 = vmatprep.subr.bf16.mxu1 %v8442_v6 }
  0x66   : > { %7327 = vmatpush3.bf16.msra.mxu0 %v8442_v6  ;;  %8369 = vmatpush3.bf16.msra.mxu1 %v8442_v6 }
  0x67   : > { %7328 = vmatprep.subr.bf16.mxu0 %v8443_v7  ;;  %8362 = vmatprep.subr.bf16.mxu1 %v8443_v7 }
  0x6a   : > { %7329 = vmatpush3.bf16.msra.mxu0 %v8443_v7  ;;  %8370 = vmatpush3.bf16.msra.mxu1 %v8443_v7  ;;  %v8487_v7 = vld [vmem:[#allocation4 + $0xa8] sm:$0xff]  }
  0x6b   : > { %7330 = vmatprep.subr.bf16.mxu0 %v8444_v8  ;;  %8363 = vmatprep.subr.bf16.mxu1 %v8444_v8 }
  0x6e   : > { %7331 = vmatpush3.bf16.msra.mxu0 %v8444_v8  ;;  %8371 = vmatpush3.bf16.msra.mxu1 %v8444_v8 }
  0x6f   : > { %7396 = vmatprep.subr.bf16.mxu1 %v8477_v18  ;;  %7476 = vmatprep.subr.bf16.mxu0 %v8485_v60 }
  0x71   : > { %7333 = vmatmul.mubr.bf16.vlgmr.msra.gmra.mxu0 %v8446_v10  ;;  %7365 = vmatmul.mubr.bf16.vlgmr.msra.gmra.mxu1 %v8462_v12 }
  0x72   : > { %7336 = vmatprep.mubr.bf16.mxu0 %v8447_v11  ;;  %7368 = vmatprep.mubr.bf16.mxu1 %v8463_v13 }
  0x73   : > { %7397 = vmatpush3.bf16.msra.mxu1 %v8477_v18  ;;  %7477 = vmatpush3.bf16.msra.mxu0 %v8485_v60 }
  0x74   : > { %7398 = vmatprep.subr.bf16.mxu1 %v8478_v19  ;;  %7478 = vmatprep.subr.bf16.mxu0 %v8486_v61 }
  0x77   : > { %7399 = vmatpush3.bf16.msra.mxu1 %v8478_v19  ;;  %7479 = vmatpush3.bf16.msra.mxu0 %v8486_v61 }
  0x78   : > { %7400 = vmatprep.subr.bf16.mxu1 %v8479_v24  ;;  %7480 = vmatprep.subr.bf16.mxu0 %v8487_v7 }
  0x79   : > { %7337 = vmatmul.mubr.bf16.gmra.mxu0 %v8448_v14  ;;  %7369 = vmatmul.mubr.bf16.gmra.mxu1 %v8464_v16  ;;  %v8488_v16 = vld [vmem:[#allocation4 + $0xa0] sm:$0xff]  }
  0x7a   : > { %7340 = vmatprep.mubr.bf16.mxu0 %v8449_v15  ;;  %7372 = vmatprep.mubr.bf16.mxu1 %v8465_v17 }
  0x7b   : > { %7401 = vmatpush3.bf16.msra.mxu1 %v8479_v24  ;;  %7481 = vmatpush3.bf16.msra.mxu0 %v8487_v7 }
  0x7c   : > { %7402 = vmatprep.subr.bf16.mxu1 %v8480_v25  ;;  %7482 = vmatprep.subr.bf16.mxu0 %v8488_v16 }
  0x7f   : > { %7403 = vmatpush3.bf16.msra.mxu1 %v8480_v25  ;;  %v8489_v25 = vld [vmem:[#allocation4 + $0x98] sm:$0xff]   ;;  %7483 = vmatpush3.bf16.msra.mxu0 %v8488_v16 }
  0x80   : > { %7404 = vmatprep.subr.bf16.mxu1 %v8481_v30  ;;  %7484 = vmatprep.subr.bf16.mxu0 %v8489_v25 }
  0x81   : > { %7341 = vmatmul.mubr.bf16.gmra.mxu0 %v8450_v20  ;;  %7373 = vmatmul.mubr.bf16.gmra.mxu1 %v8466_v21 }
  0x82   : > { %7344 = vmatprep.mubr.bf16.mxu0 %v8451_v22  ;;  %7376 = vmatprep.mubr.bf16.mxu1 %v8467_v23 }
  0x83   : > { %7405 = vmatpush3.bf16.msra.mxu1 %v8481_v30  ;;  %7485 = vmatpush3.bf16.msra.mxu0 %v8489_v25 }
  0x84   : > { %7406 = vmatprep.subr.bf16.mxu1 %v8482_v31 }
  0x87   : > { %7407 = vmatpush3.bf16.msra.mxu1 %v8482_v31 }
  0x88   : > { %7408 = vmatprep.subr.bf16.mxu1 %v8483_v36 }
  0x89   : > { %7345 = vmatmul.mubr.bf16.gmra.mxu0 %v8452_v26  ;;  %7377 = vmatmul.mubr.bf16.gmra.mxu1 %v8468_v27 }
  0x8a   : > { %7348 = vmatprep.mubr.bf16.mxu0 %v8453_v28  ;;  %7380 = vmatprep.mubr.bf16.mxu1 %v8469_v29 }
  0x8b   : > { %7409 = vmatpush3.bf16.msra.mxu1 %v8483_v36 }
  0x8c   : > { %7410 = vmatprep.subr.bf16.mxu1 %v8484_v47 }
  0x8f   : > { %7411 = vmatpush3.bf16.msra.mxu1 %v8484_v47 }
  0x91   : > { %7349 = vmatmul.mubr.bf16.gmra.mxu0 %v8454_v32  ;;  %7381 = vmatmul.mubr.bf16.gmra.mxu1 %v8470_v33 }
  0x92   : > { %7352 = vmatprep.mubr.bf16.mxu0 %v8455_v34  ;;  %7384 = vmatprep.mubr.bf16.mxu1 %v8471_v35  ;;  %v8490_v34 = vld [vmem:[#allocation4 + $0x90] sm:$0xff]  }
  0x93   : > { %7486 = vmatprep.subr.bf16.mxu0 %v8490_v34 }
  0x94   : > { %7487 = vmatpush3.bf16.msra.mxu0 %v8490_v34 }
  0x99   : > { %7353 = vmatmul.mubr.bf16.gmra.mxu0 %v8456_v37  ;;  %7385 = vmatmul.mubr.bf16.gmra.mxu1 %v8472_v38 }
  0x9a   : > { %7356 = vmatprep.mubr.bf16.mxu0 %v8457_v39  ;;  %7388 = vmatprep.mubr.bf16.mxu1 %v8473_v40 }
  0xa1   : > { %7357 = vmatmul.mubr.bf16.gmra.mxu0 %v8458_v41  ;;  %7389 = vmatmul.mubr.bf16.gmra.mxu1 %v8474_v42 }
  0xa2   : > { %7360 = vmatprep.mubr.bf16.mxu0 %v8459_v43  ;;  %7392 = vmatprep.mubr.bf16.mxu1 %v8475_v44  ;;  %v8491_v43 = vld [vmem:[#allocation4 + $0x88] sm:$0xff]  }
  0xa3   : > { %7488 = vmatprep.subr.bf16.mxu0 %v8491_v43 }
  0xa4   : > { %7489 = vmatpush3.bf16.msra.mxu0 %v8491_v43 }
  0xa9   : > { %7361 = vmatmul.mubr.bf16.gmra.mxu0 %v8460_v45  ;;  %7393 = vmatmul.mubr.bf16.gmra.mxu1 %v8476_v46 }
 0x131   : > { %v7334_v48 = vpop.f32.mrf.mxu0  ;;  %v8947_v49 = vpop.f32.mrf.mxu1 }
 0x132   : > { %v591_v57 = vadd.f32 %v7334_v48, %v8951_v52 }
 0x133   : > { %v582_v50 = vpop.f32.mrf.mxu0  ;;  %v8949_v51 = vpop.f32.mrf.mxu1 }
 0x134   : > { %v583_v55 = vadd.f32 %v8951_v52, %v582_v50  ;;  %v839_v4 = vmax.f32 %v591_v57, 0.0 }
 0x135   : > { %v7335_v53 = vpop.f32.mrf.mxu0  ;;  %v8953_v54 = vpop.f32.mrf.mxu1 }
 0x136   : > { %v594_v56 = vadd.f32 %v7335_v53, %v8951_v52  ;;  %v837_v2 = vmax.f32 %v583_v55, 0.0 }
 0x137   : > { %v585_v58 = vpop.f32.mrf.mxu0  ;;  %v8958_v59 = vpop.f32.mrf.mxu1 }
 0x138   : > { %v586_v62 = vadd.f32 %v8951_v52, %v585_v58  ;;  %v840_v63 = vmax.f32 %v594_v56, 0.0 }
 0x139   : > { %v7338_v0 = vpop.f32.mrf.mxu0  ;;  %v8961_v1 = vpop.f32.mrf.mxu1 }
 0x13a   : > { %v838_v3 = vmax.f32 %v586_v62, 0.0  ;;  %v902_v9 = vpack.c.bf16 %v840_v63, %v839_v4  ;;  %v607_v14 = vadd.f32 %v7338_v0, %v8951_v52 }
 0x13b   : > { %v598_v5 = vpop.f32.mrf.mxu0  ;;  %v8963_v6 = vpop.f32.mrf.mxu1 }
 0x13c   : > { %v901_v8 = vpack.c.bf16 %v838_v3, %v837_v2  ;;  %v599_v12 = vadd.f32 %v8951_v52, %v598_v5  ;;  %v843_v23 = vmax.f32 %v607_v14, 0.0 }
 0x13d   : > { %v7339_v10 = vpop.f32.mrf.mxu0  ;;  %v8965_v11 = vpop.f32.mrf.mxu1 }
 0x13e   : > { %v610_v13 = vadd.f32 %v7339_v10, %v8951_v52  ;;  %7412 = vmatprep.mubr.bf16.mxu1 %v901_v8  ;;  %v841_v21 = vmax.f32 %v599_v12, 0.0 }
 0x13f   : > { %v601_v15 = vpop.f32.mrf.mxu0  ;;  %7413 = vmatmul.mubr.bf16.vlgmr.msra.gmra.mxu1 %v902_v9  ;;  %v8971_v20 = vpop.f32.mrf.mxu1 }
 0x140   : > { %v602_v17 = vadd.f32 %v8951_v52, %v601_v15  ;;  %v844_v18 = vmax.f32 %v610_v13, 0.0 }
 0x141   : > { %v7342_v19 = vpop.f32.mrf.mxu0  ;;  %v8973_v29 = vpop.f32.mrf.mxu1 }
 0x142   : > { %v842_v22 = vmax.f32 %v602_v17, 0.0  ;;  %v904_v27 = vpack.c.bf16 %v844_v18, %v843_v23  ;;  %v623_v32 = vadd.f32 %v7342_v19, %v8951_v52 }
 0x143   : > { %v614_v24 = vpop.f32.mrf.mxu0  ;;  %v8979_v38 = vpop.f32.mrf.mxu1 }
 0x144   : > { %v903_v26 = vpack.c.bf16 %v842_v22, %v841_v21  ;;  %v615_v30 = vadd.f32 %v8951_v52, %v614_v24  ;;  %v847_v41 = vmax.f32 %v623_v32, 0.0 }
 0x145   : > { %v7343_v28 = vpop.f32.mrf.mxu0  ;;  %v8981_v47 = vpop.f32.mrf.mxu1 }
 0x146   : > { %v626_v31 = vadd.f32 %v7343_v28, %v8951_v52  ;;  %7416 = vmatprep.mubr.bf16.mxu1 %v903_v26  ;;  %v845_v39 = vmax.f32 %v615_v30, 0.0 }
 0x147   : > { %v617_v33 = vpop.f32.mrf.mxu0  ;;  %7417 = vmatmul.mubr.bf16.gmra.mxu1 %v904_v27  ;;  %v8987_v60 = vpop.f32.mrf.mxu1 }
 0x148   : > { %v618_v35 = vadd.f32 %v8951_v52, %v617_v33  ;;  %v848_v36 = vmax.f32 %v626_v31, 0.0 }
 0x149   : > { %v7346_v37 = vpop.f32.mrf.mxu0  ;;  %v8989_v5 = vpop.f32.mrf.mxu1 }
 0x14a   : > { %v846_v40 = vmax.f32 %v618_v35, 0.0  ;;  %v906_v45 = vpack.c.bf16 %v848_v36, %v847_v41  ;;  %v639_v53 = vadd.f32 %v7346_v37, %v8951_v52 }
 0x14b   : > { %v630_v42 = vpop.f32.mrf.mxu0  ;;  %v8995_v15 = vpop.f32.mrf.mxu1 }
 0x14c   : > { %v905_v44 = vpack.c.bf16 %v846_v40, %v845_v39  ;;  %v631_v48 = vadd.f32 %v8951_v52, %v630_v42  ;;  %v851_v63 = vmax.f32 %v639_v53, 0.0 }
 0x14d   : > { %v7347_v46 = vpop.f32.mrf.mxu0  ;;  %v8997_v24 = vpop.f32.mrf.mxu1 }
 0x14e   : > { %v642_v50 = vadd.f32 %v7347_v46, %v8951_v52  ;;  %7420 = vmatprep.mubr.bf16.mxu1 %v905_v44  ;;  %v849_v61 = vmax.f32 %v631_v48, 0.0 }
 0x14f   : > { %v633_v55 = vpop.f32.mrf.mxu0  ;;  %7421 = vmatmul.mubr.bf16.gmra.mxu1 %v906_v45  ;;  %v9003_v33 = vpop.f32.mrf.mxu1 }
 0x150   : > { %v634_v56 = vadd.f32 %v8951_v52, %v633_v55  ;;  %v852_v57 = vmax.f32 %v642_v50, 0.0 }
 0x151   : > { %v7350_v58 = vpop.f32.mrf.mxu0  ;;  %v9005_v42 = vpop.f32.mrf.mxu1 }
 0x152   : > { %v850_v62 = vmax.f32 %v634_v56, 0.0  ;;  %v908_v3 = vpack.c.bf16 %v852_v57, %v851_v63  ;;  %v655_v9 = vadd.f32 %v7350_v58, %v8951_v52 }
 0x153   : > { %v646_v0 = vpop.f32.mrf.mxu0  ;;  %v9011_v55 = vpop.f32.mrf.mxu1 }
 0x154   : > { %v907_v2 = vpack.c.bf16 %v850_v62, %v849_v61  ;;  %v647_v7 = vadd.f32 %v8951_v52, %v646_v0  ;;  %v855_v18 = vmax.f32 %v655_v9, 0.0  ;;  %v711_v62 = vadd.f32 %v8951_v52, %v8949_v51 }
 0x155   : > { %v7351_v4 = vpop.f32.mrf.mxu0  ;;  %v714_v0 = vadd.f32 %v8951_v52, %v8958_v59 }
 0x156   : > { %v658_v8 = vadd.f32 %v7351_v4, %v8951_v52  ;;  %7424 = vmatprep.mubr.bf16.mxu1 %v907_v2  ;;  %v853_v16 = vmax.f32 %v647_v7, 0.0  ;;  %v9017_v4 = vpop.f32.mrf.mxu1 }
 0x157   : > { %v649_v10 = vpop.f32.mrf.mxu0  ;;  %7425 = vmatmul.mubr.bf16.gmra.mxu1 %v908_v3 }
 0x158   : > { %v650_v12 = vadd.f32 %v8951_v52, %v649_v10  ;;  %v856_v13 = vmax.f32 %v658_v8, 0.0 }
 0x159   : > { %v7354_v14 = vpop.f32.mrf.mxu0 }
 0x15a   : > { %v854_v17 = vmax.f32 %v650_v12, 0.0  ;;  %v910_v22 = vpack.c.bf16 %v856_v13, %v855_v18  ;;  %v671_v27 = vadd.f32 %v7354_v14, %v8951_v52  ;;  %v869_v12 = vmax.f32 %v711_v62, 0.0 }
 0x15b   : > { %v662_v19 = vpop.f32.mrf.mxu0  ;;  %v870_v13 = vmax.f32 %v714_v0, 0.0  ;;  %v770_v0 = vadd.f32 %v8997_v24, %v8951_v52  ;;  %v786_v24 = vadd.f32 %v9017_v4, %v8951_v52 }
 0x15c   : > { %v909_v21 = vpack.c.bf16 %v854_v17, %v853_v16  ;;  %v663_v25 = vadd.f32 %v8951_v52, %v662_v19  ;;  %v859_v36 = vmax.f32 %v671_v27, 0.0  ;;  %v777_v16 = vpop.f32.mrf.mxu1  ;;  %v727_v19 = vadd.f32 %v8951_v52, %v8963_v6 }
 0x15d   : > { %v7355_v23 = vpop.f32.mrf.mxu0  ;;  %v722_v27 = vadd.f32 %v8953_v54, %v8951_v52  ;;  %v735_v54 = vadd.f32 %v8961_v1, %v8951_v52  ;;  %v751_v1 = vadd.f32 %v8973_v29, %v8951_v52  ;;  %v778_v29 = vadd.f32 %v8951_v52, %v777_v16 }
 0x15e   : > { %v674_v26 = vadd.f32 %v7355_v23, %v8951_v52  ;;  %7428 = vmatprep.mubr.bf16.mxu1 %v909_v21  ;;  %v857_v34 = vmax.f32 %v663_v25, 0.0  ;;  %v730_v23 = vadd.f32 %v8951_v52, %v8971_v20  ;;  %v719_v25 = vadd.f32 %v8947_v49, %v8951_v52 }
 0x15f   : > { %v665_v28 = vpop.f32.mrf.mxu0  ;;  %7429 = vmatmul.mubr.bf16.gmra.mxu1 %v910_v22  ;;  %v917_v22 = vpack.c.bf16 %v870_v13, %v869_v12  ;;  %v743_v20 = vadd.f32 %v8951_v52, %v8979_v38  ;;  %v746_v49 = vadd.f32 %v8951_v52, %v8987_v60  ;;  %v759_v38 = vadd.f32 %v8951_v52, %v8995_v15 }
 0x160   : > { %v666_v30 = vadd.f32 %v8951_v52, %v665_v28  ;;  %v860_v31 = vmax.f32 %v674_v26, 0.0  ;;  %v9031_v28 = vpop.f32.mrf.mxu1  ;;  %v871_v6 = vmax.f32 %v719_v25, 0.0  ;;  %v762_v60 = vadd.f32 %v8951_v52, %v9003_v33 }
 0x161   : > { %v7358_v32 = vpop.f32.mrf.mxu0  ;;  %v775_v33 = vadd.f32 %v8951_v52, %v9011_v55 }
 0x162   : > { %v858_v35 = vmax.f32 %v666_v30, 0.0  ;;  %v912_v40 = vpack.c.bf16 %v860_v31, %v859_v36  ;;  %v687_v45 = vadd.f32 %v7358_v32, %v8951_v52  ;;  %v873_v30 = vmax.f32 %v727_v19, 0.0 }
 0x163   : > { %v678_v37 = vpop.f32.mrf.mxu0  ;;  %v874_v31 = vmax.f32 %v730_v23, 0.0  ;;  %v872_v32 = vmax.f32 %v722_v27, 0.0 }
 0x164   : > { %v911_v39 = vpack.c.bf16 %v858_v35, %v857_v34  ;;  %v679_v43 = vadd.f32 %v8951_v52, %v678_v37  ;;  %v863_v58 = vmax.f32 %v687_v45, 0.0  ;;  %v790_v34 = vpop.f32.mrf.mxu1  ;;  %v738_v37 = vadd.f32 %v8965_v11, %v8951_v52 }
 0x165   : > { %v7359_v41 = vpop.f32.mrf.mxu0  ;;  %v919_v35 = vpack.c.bf16 %v874_v31, %v873_v30  ;;  %v918_v36 = vpack.c.bf16 %v872_v32, %v871_v6  ;;  %v754_v11 = vadd.f32 %v8981_v47, %v8951_v52  ;;  %v767_v47 = vadd.f32 %v8989_v5, %v8951_v52 }
 0x166   : > { %v690_v44 = vadd.f32 %v7359_v41, %v8951_v52  ;;  %7432 = vmatprep.mubr.bf16.mxu1 %v911_v39  ;;  %v861_v56 = vmax.f32 %v679_v43, 0.0  ;;  %v7387_v39 = vpop.f32.mrf.mxu1  ;;  %v878_v41 = vmax.f32 %v746_v49, 0.0  ;;  %v875_v43 = vmax.f32 %v735_v54, 0.0 }
 0x167   : > { %v681_v46 = vpop.f32.mrf.mxu0  ;;  %7433 = vmatmul.mubr.bf16.gmra.mxu1 %v912_v40  ;;  %v877_v40 = vmax.f32 %v743_v20, 0.0  ;;  %v791_v55 = vadd.f32 %v8951_v52, %v790_v34  ;;  %v783_v5 = vadd.f32 %v9005_v42, %v8951_v52  ;;  %v799_v42 = vadd.f32 %v9031_v28, %v8951_v52 }
 0x168   : > { %v682_v48 = vadd.f32 %v8951_v52, %v681_v46  ;;  %v864_v50 = vmax.f32 %v690_v44, 0.0  ;;  %v876_v44 = vmax.f32 %v738_v37, 0.0  ;;  %v793_v45 = vpop.f32.mrf.mxu1 }
 0x169   : > { %v7362_v53 = vpop.f32.mrf.mxu0  ;;  %v921_v46 = vpack.c.bf16 %v878_v41, %v877_v40  ;;  %v889_v16 = vmax.f32 %v791_v55, 0.0  ;;  %v891_v31 = vmax.f32 %v799_v42, 0.0 }
 0x16a   : > { %v862_v57 = vmax.f32 %v682_v48, 0.0  ;;  %v914_v2 = vpack.c.bf16 %v864_v50, %v863_v58  ;;  %v703_v9 = vadd.f32 %v7362_v53, %v8951_v52  ;;  %v920_v48 = vpack.c.bf16 %v876_v44, %v875_v43  ;;  %v7390_v50 = vpop.f32.mrf.mxu1  ;;  %v8492_v53 = vld [vmem:[#allocation4 + $0x80] sm:$0xff]  }
 0x16b   : > { %v694_v61 = vpop.f32.mrf.mxu0  ;;  %v879_v58 = vmax.f32 %v751_v1, 0.0  ;;  %7490 = vmatprep.subr.bf16.mxu0 %v8492_v53  ;;  %v8494_v1 = vld [vmem:[#allocation4 + $0xf0] sm:$0xff]  }
 0x16c   : > { %v913_v63 = vpack.c.bf16 %v862_v57, %v861_v56  ;;  %v695_v7 = vadd.f32 %v8951_v52, %v694_v61  ;;  %v867_v18 = vmax.f32 %v703_v9, 0.0  ;;  %v881_v56 = vmax.f32 %v759_v38, 0.0  ;;  %v806_v15 = vpop.f32.mrf.mxu1  ;;  %7491 = vmatpush3.bf16.msra.mxu0 %v8492_v53 }
 0x16d   : > { %v7363_v3 = vpop.f32.mrf.mxu0  ;;  %v882_v57 = vmax.f32 %v762_v60, 0.0  ;;  %v880_v61 = vmax.f32 %v754_v11, 0.0  ;;  %v884_v9 = vmax.f32 %v770_v0, 0.0  ;;  %v8495_v11 = vld [vmem:[#allocation4 + $0xe8] sm:$0xff]  }
 0x16e   : > { %v706_v8 = vadd.f32 %v7363_v3, %v8951_v52  ;;  %7436 = vmatprep.mubr.bf16.mxu1 %v913_v63  ;;  %v865_v59 = vmax.f32 %v695_v7, 0.0  ;;  %v885_v3 = vmax.f32 %v775_v33, 0.0  ;;  %v886_v7 = vmax.f32 %v778_v29, 0.0  ;;  %v8496_v33 = vld [vmem:[#allocation4 + $0xe0] sm:$0xff]  }
 0x16f   : > { %v697_v10 = vpop.f32.mrf.mxu0  ;;  %7437 = vmatmul.mubr.bf16.gmra.mxu1 %v914_v2  ;;  %v923_v62 = vpack.c.bf16 %v882_v57, %v881_v56  ;;  %v922_v63 = vpack.c.bf16 %v880_v61, %v879_v58  ;;  %v7391_v2 = vpop.f32.mrf.mxu1  ;;  %v9073_v56 = vld [vmem:[#allocation6 + $0x1] ss:$0 sm:$0xff] }
 0x170   : > { %v698_v51 = vadd.f32 %v8951_v52, %v697_v10  ;;  %v868_v14 = vmax.f32 %v706_v8, 0.0  ;;  %v883_v8 = vmax.f32 %v767_v47, 0.0  ;;  %v925_v12 = vpack.c.bf16 %v886_v7, %v885_v3 }
 0x171   : > { %v809_v10 = vpop.f32.mrf.mxu1  ;;  %v818_v28 = vadd.f32 %v7391_v2, %v8951_v52 }
 0x172   : > { %v866_v17 = vmax.f32 %v698_v51, 0.0  ;;  %v916_v26 = vpack.c.bf16 %v868_v14, %v867_v18  ;;  %v794_v51 = vadd.f32 %v8951_v52, %v793_v45  ;;  %v924_v13 = vpack.c.bf16 %v884_v9, %v883_v8  ;;  %v8498_v8 = vld [vmem:[#allocation4 + $0xd0] sm:$0xff]  }
 0x173   : > { %v7394_v14 = vpop.f32.mrf.mxu1  ;;  %v888_v18 = vmax.f32 %v786_v24, 0.0  ;;  %v810_v23 = vadd.f32 %v8951_v52, %v809_v10  ;;  %v896_v40 = vmax.f32 %v818_v28, 0.0  ;;  %v8499_v24 = vld [vmem:[#allocation4 + $0xc8] sm:$0xff]  }
 0x174   : > { %v915_v21 = vpack.c.bf16 %v866_v17, %v865_v59  ;;  %v890_v59 = vmax.f32 %v794_v51, 0.0  ;;  %v887_v17 = vmax.f32 %v783_v5, 0.0  ;;  %v831_v44 = vadd.f32 %v7394_v14, %v8951_v52 }
 0x175   : > { %v822_v19 = vpop.f32.mrf.mxu1  ;;  %v894_v30 = vmax.f32 %v810_v23, 0.0 }
 0x176   : > { %7440 = vmatprep.mubr.bf16.mxu1 %v915_v21  ;;  %v807_v21 = vadd.f32 %v8951_v52, %v806_v15  ;;  %v926_v25 = vpack.c.bf16 %v888_v18, %v887_v17  ;;  %v823_v34 = vadd.f32 %v8951_v52, %v822_v19  ;;  %v899_v38 = vmax.f32 %v831_v44, 0.0 }
 0x177   : > { %7441 = vmatmul.mubr.bf16.gmra.mxu1 %v916_v26  ;;  %v802_v26 = vadd.f32 %v7387_v39, %v8951_v52  ;;  %v7395_v4 = vpop.f32.mrf.mxu1 }
 0x178   : > { %7444 = vmatprep.mubr.bf16.mxu1 %v917_v22  ;;  %v927_v22 = vpack.c.bf16 %v890_v59, %v889_v16  ;;  %v893_v27 = vmax.f32 %v807_v21, 0.0  ;;  %v897_v54 = vmax.f32 %v823_v34, 0.0  ;;  %v834_v45 = vadd.f32 %v7395_v4, %v8951_v52 }
 0x179   : > { %v892_v6 = vmax.f32 %v802_v26, 0.0  ;;  %v825_v32 = vpop.f32.mrf.mxu1 }
 0x17a   : > { %v929_v20 = vpack.c.bf16 %v894_v30, %v893_v27 }
 0x17b   : > { %v928_v49 = vpack.c.bf16 %v892_v6, %v891_v31 }
 0x17f   : > { %7445 = vmatmul.mubr.bf16.gmra.mxu1 %v918_v36  ;;  %v815_v36 = vadd.f32 %v7390_v50, %v8951_v52 }
 0x180   : > { %7448 = vmatprep.mubr.bf16.mxu1 %v919_v35  ;;  %v826_v35 = vadd.f32 %v8951_v52, %v825_v32 }
 0x181   : > { %v895_v39 = vmax.f32 %v815_v36, 0.0 }
 0x182   : > { %v898_v37 = vmax.f32 %v826_v35, 0.0 }
 0x183   : > { %v930_v43 = vpack.c.bf16 %v896_v40, %v895_v39 }
 0x184   : > { %v931_v41 = vpack.c.bf16 %v898_v37, %v897_v54 }
 0x187   : > { %7449 = vmatmul.mubr.bf16.gmra.mxu1 %v920_v48  ;;  %v8493_v48 = vld [vmem:[#allocation4 + $0xf8] sm:$0xff]  }
 0x188   : > { %7452 = vmatprep.mubr.bf16.mxu1 %v921_v46  ;;  %v900_v46 = vmax.f32 %v834_v45, 0.0  ;;  %7556 = vmatprep.subr.bf16.mxu1 %v8493_v48 }
 0x189   : > { %7557 = vmatpush3.bf16.msra.mxu1 %v8493_v48 }
 0x18a   : > { %v932_v60 = vpack.c.bf16 %v900_v46, %v899_v38  ;;  %7558 = vmatprep.subr.bf16.mxu1 %v8494_v1 }
 0x18d   : > { %7559 = vmatpush3.bf16.msra.mxu1 %v8494_v1 }
 0x18e   : > { %7560 = vmatprep.subr.bf16.mxu1 %v8495_v11 }
 0x18f   : > { %7453 = vmatmul.mubr.bf16.gmra.mxu1 %v922_v63 }
 0x190   : > { %7456 = vmatprep.mubr.bf16.mxu1 %v923_v62  ;;  %v8497_v62 = vld [vmem:[#allocation4 + $0xd8] sm:$0xff]  }
 0x191   : > { %7561 = vmatpush3.bf16.msra.mxu1 %v8495_v11 }
 0x192   : > { %7562 = vmatprep.subr.bf16.mxu1 %v8496_v33 }
 0x195   : > { %7563 = vmatpush3.bf16.msra.mxu1 %v8496_v33 }
 0x196   : > { %7564 = vmatprep.subr.bf16.mxu1 %v8497_v62 }
 0x197   : > { %7457 = vmatmul.mubr.bf16.gmra.mxu1 %v924_v13 }
 0x198   : > { %7460 = vmatprep.mubr.bf16.mxu1 %v925_v12 }
 0x199   : > { %7565 = vmatpush3.bf16.msra.mxu1 %v8497_v62 }
 0x19a   : > { %7566 = vmatprep.subr.bf16.mxu1 %v8498_v8 }
 0x19d   : > { %7567 = vmatpush3.bf16.msra.mxu1 %v8498_v8 }
 0x19e   : > { %7568 = vmatprep.subr.bf16.mxu1 %v8499_v24 }
 0x19f   : > { %7461 = vmatmul.mubr.bf16.gmra.mxu1 %v926_v25 }
 0x1a0   : > { %7464 = vmatprep.mubr.bf16.mxu1 %v927_v22  ;;  %v8500_v22 = vld [vmem:[#allocation4 + $0xc0] sm:$0xff]  }
 0x1a1   : > { %7569 = vmatpush3.bf16.msra.mxu1 %v8499_v24 }
 0x1a2   : > { %7570 = vmatprep.subr.bf16.mxu1 %v8500_v22 }
 0x1a5   : > { %7571 = vmatpush3.bf16.msra.mxu1 %v8500_v22 }
 0x1a7   : > { %7465 = vmatmul.mubr.bf16.gmra.mxu1 %v928_v49 }
 0x1a8   : > { %7468 = vmatprep.mubr.bf16.mxu1 %v929_v20 }
 0x1af   : > { %7469 = vmatmul.mubr.bf16.gmra.mxu1 %v930_v43 }
 0x1b0   : > { %7472 = vmatprep.mubr.bf16.mxu1 %v931_v41 }
 0x1b7   : > { %7473 = vmatmul.mubr.bf16.gmra.mxu1 %v932_v60 }
 0x1ff   : > { %v7414_v50 = vpop.f32.mrf.mxu1 }
 0x200   : > { %v1046_v61 = vadd.f32 %v7414_v50, %v9073_v56 }
 0x201   : > { %v1037_v53 = vpop.f32.mrf.mxu1 }
 0x202   : > { %v1038_v57 = vadd.f32 %v9073_v56, %v1037_v53  ;;  %v1294_v3 = vmax.f32 %v1046_v61, 0.0 }
 0x203   : > { %v7415_v52 = vpop.f32.mrf.mxu1 }
 0x204   : > { %v1049_v58 = vadd.f32 %v7415_v52, %v9073_v56  ;;  %v1292_v0 = vmax.f32 %v1038_v57, 0.0 }
 0x205   : > { %v1040_v15 = vpop.f32.mrf.mxu1 }
 0x206   : > { %v1041_v29 = vadd.f32 %v9073_v56, %v1040_v15  ;;  %v1295_v63 = vmax.f32 %v1049_v58, 0.0 }
 0x207   : > { %v7418_v47 = vpop.f32.mrf.mxu1 }
 0x208   : > { %v1293_v2 = vmax.f32 %v1041_v29, 0.0  ;;  %v1357_v10 = vpack.c.bf16 %v1295_v63, %v1294_v3  ;;  %v1062_v13 = vadd.f32 %v7418_v47, %v9073_v56 }
 0x209   : > { %v1053_v7 = vpop.f32.mrf.mxu1 }
 0x20a   : > { %v1356_v9 = vpack.c.bf16 %v1293_v2, %v1292_v0  ;;  %v1054_v12 = vadd.f32 %v9073_v56, %v1053_v7  ;;  %v1298_v19 = vmax.f32 %v1062_v13, 0.0 }
 0x20b   : > { %v7419_v55 = vpop.f32.mrf.mxu1 }
 0x20c   : > { %v1065_v51 = vadd.f32 %v7419_v55, %v9073_v56  ;;  %7492 = vmatprep.mubr.bf16.mxu0 %v1356_v9  ;;  %v1296_v17 = vmax.f32 %v1054_v12, 0.0 }
 0x20d   : > { %v1056_v5 = vpop.f32.mrf.mxu1  ;;  %7493 = vmatmul.mubr.bf16.vlgmr.msra.gmra.mxu0 %v1357_v10 }
 0x20e   : > { %v1057_v14 = vadd.f32 %v9073_v56, %v1056_v5  ;;  %v1299_v16 = vmax.f32 %v1065_v51, 0.0 }
 0x20f   : > { %v7422_v59 = vpop.f32.mrf.mxu1 }
 0x210   : > { %v1297_v18 = vmax.f32 %v1057_v14, 0.0  ;;  %v1359_v25 = vpack.c.bf16 %v1299_v16, %v1298_v19  ;;  %v1078_v27 = vadd.f32 %v7422_v59, %v9073_v56 }
 0x211   : > { %v1069_v21 = vpop.f32.mrf.mxu1 }
 0x212   : > { %v1358_v23 = vpack.c.bf16 %v1297_v18, %v1296_v17  ;;  %v1070_v26 = vadd.f32 %v9073_v56, %v1069_v21  ;;  %v1302_v35 = vmax.f32 %v1078_v27, 0.0 }
 0x213   : > { %v7423_v42 = vpop.f32.mrf.mxu1 }
 0x214   : > { %v1081_v4 = vadd.f32 %v7423_v42, %v9073_v56  ;;  %7496 = vmatprep.mubr.bf16.mxu0 %v1358_v23  ;;  %v1300_v34 = vmax.f32 %v1070_v26, 0.0 }
 0x215   : > { %v1072_v30 = vpop.f32.mrf.mxu1  ;;  %7497 = vmatmul.mubr.bf16.gmra.mxu0 %v1359_v25 }
 0x216   : > { %v1073_v31 = vadd.f32 %v9073_v56, %v1072_v30  ;;  %v1303_v6 = vmax.f32 %v1081_v4, 0.0 }
 0x217   : > { %v7426_v32 = vpop.f32.mrf.mxu1 }
 0x218   : > { %v1301_v20 = vmax.f32 %v1073_v31, 0.0  ;;  %v1361_v28 = vpack.c.bf16 %v1303_v6, %v1302_v35  ;;  %v1094_v40 = vadd.f32 %v7426_v32, %v9073_v56 }
 0x219   : > { %v1085_v49 = vpop.f32.mrf.mxu1 }
 0x21a   : > { %v1360_v36 = vpack.c.bf16 %v1301_v20, %v1300_v34  ;;  %v1086_v37 = vadd.f32 %v9073_v56, %v1085_v49  ;;  %v1306_v60 = vmax.f32 %v1094_v40, 0.0 }
 0x21b   : > { %v7427_v54 = vpop.f32.mrf.mxu1 }
 0x21c   : > { %v1097_v39 = vadd.f32 %v7427_v54, %v9073_v56  ;;  %7500 = vmatprep.mubr.bf16.mxu0 %v1360_v36  ;;  %v1304_v38 = vmax.f32 %v1086_v37, 0.0 }
 0x21d   : > { %v1088_v41 = vpop.f32.mrf.mxu1  ;;  %7501 = vmatmul.mubr.bf16.gmra.mxu0 %v1361_v28 }
 0x21e   : > { %v1089_v43 = vadd.f32 %v9073_v56, %v1088_v41  ;;  %v1307_v44 = vmax.f32 %v1097_v39, 0.0 }
 0x21f   : > { %v7430_v45 = vpop.f32.mrf.mxu1 }
 0x220   : > { %v1305_v46 = vmax.f32 %v1089_v43, 0.0  ;;  %v1363_v11 = vpack.c.bf16 %v1307_v44, %v1306_v60  ;;  %v1110_v57 = vadd.f32 %v7430_v45, %v9073_v56 }
 0x221   : > { %v1101_v48 = vpop.f32.mrf.mxu1 }
 0x222   : > { %v1362_v1 = vpack.c.bf16 %v1305_v46, %v1304_v38  ;;  %v1102_v53 = vadd.f32 %v9073_v56, %v1101_v48  ;;  %v1310_v63 = vmax.f32 %v1110_v57, 0.0 }
 0x223   : > { %v7431_v50 = vpop.f32.mrf.mxu1 }
 0x224   : > { %v1113_v52 = vadd.f32 %v7431_v50, %v9073_v56  ;;  %7504 = vmatprep.mubr.bf16.mxu0 %v1362_v1  ;;  %v1308_v62 = vmax.f32 %v1102_v53, 0.0 }
 0x225   : > { %v1104_v58 = vpop.f32.mrf.mxu1  ;;  %7505 = vmatmul.mubr.bf16.gmra.mxu0 %v1363_v11 }
 0x226   : > { %v1105_v61 = vadd.f32 %v9073_v56, %v1104_v58  ;;  %v1311_v15 = vmax.f32 %v1113_v52, 0.0 }
 0x227   : > { %v7434_v33 = vpop.f32.mrf.mxu1 }
 0x228   : > { %v1309_v29 = vmax.f32 %v1105_v61, 0.0  ;;  %v1365_v2 = vpack.c.bf16 %v1311_v15, %v1310_v63  ;;  %v1126_v9 = vadd.f32 %v7434_v33, %v9073_v56 }
 0x229   : > { %v1117_v47 = vpop.f32.mrf.mxu1 }
 0x22a   : > { %v1364_v0 = vpack.c.bf16 %v1309_v29, %v1308_v62  ;;  %v1118_v7 = vadd.f32 %v9073_v56, %v1117_v47  ;;  %v1314_v24 = vmax.f32 %v1126_v9, 0.0 }
 0x22b   : > { %v7435_v3 = vpop.f32.mrf.mxu1 }
 0x22c   : > { %v1129_v8 = vadd.f32 %v7435_v3, %v9073_v56  ;;  %7508 = vmatprep.mubr.bf16.mxu0 %v1364_v0  ;;  %v1312_v13 = vmax.f32 %v1118_v7, 0.0 }
 0x22d   : > { %v1120_v10 = vpop.f32.mrf.mxu1  ;;  %7509 = vmatmul.mubr.bf16.gmra.mxu0 %v1365_v2 }
 0x22e   : > { %v1121_v55 = vadd.f32 %v9073_v56, %v1120_v10  ;;  %v1315_v12 = vmax.f32 %v1129_v8, 0.0 }
 0x22f   : > { %v7438_v51 = vpop.f32.mrf.mxu1 }
 0x230   : > { %v1313_v5 = vmax.f32 %v1121_v55, 0.0  ;;  %v1367_v59 = vpack.c.bf16 %v1315_v12, %v1314_v24  ;;  %v1142_v21 = vadd.f32 %v7438_v51, %v9073_v56 }
 0x231   : > { %v1133_v14 = vpop.f32.mrf.mxu1 }
 0x232   : > { %v1366_v16 = vpack.c.bf16 %v1313_v5, %v1312_v13  ;;  %v1134_v18 = vadd.f32 %v9073_v56, %v1133_v14  ;;  %v1318_v27 = vmax.f32 %v1142_v21, 0.0 }
 0x233   : > { %v7439_v17 = vpop.f32.mrf.mxu1 }
 0x234   : > { %v1145_v19 = vadd.f32 %v7439_v17, %v9073_v56  ;;  %7512 = vmatprep.mubr.bf16.mxu0 %v1366_v16  ;;  %v1316_v26 = vmax.f32 %v1134_v18, 0.0 }
 0x235   : > { %v1136_v22 = vpop.f32.mrf.mxu1  ;;  %7513 = vmatmul.mubr.bf16.gmra.mxu0 %v1367_v59 }
 0x236   : > { %v1137_v23 = vadd.f32 %v9073_v56, %v1136_v22  ;;  %v1319_v25 = vmax.f32 %v1145_v19, 0.0 }
 0x237   : > { %v7442_v42 = vpop.f32.mrf.mxu1 }
 0x238   : > { %v1317_v4 = vmax.f32 %v1137_v23, 0.0  ;;  %v1369_v6 = vpack.c.bf16 %v1319_v25, %v1318_v27  ;;  %v1158_v35 = vadd.f32 %v7442_v42, %v9073_v56 }
 0x239   : > { %v1149_v30 = vpop.f32.mrf.mxu1 }
 0x23a   : > { %v1368_v31 = vpack.c.bf16 %v1317_v4, %v1316_v26  ;;  %v1150_v34 = vadd.f32 %v9073_v56, %v1149_v30  ;;  %v1322_v40 = vmax.f32 %v1158_v35, 0.0 }
 0x23b   : > { %v7443_v32 = vpop.f32.mrf.mxu1 }
 0x23c   : > { %v1161_v20 = vadd.f32 %v7443_v32, %v9073_v56  ;;  %7516 = vmatprep.mubr.bf16.mxu0 %v1368_v31  ;;  %v1320_v37 = vmax.f32 %v1150_v34, 0.0 }
 0x23d   : > { %v1152_v49 = vpop.f32.mrf.mxu1  ;;  %7517 = vmatmul.mubr.bf16.gmra.mxu0 %v1369_v6 }
 0x23e   : > { %v1153_v36 = vadd.f32 %v9073_v56, %v1152_v49  ;;  %v1323_v28 = vmax.f32 %v1161_v20, 0.0 }
 0x23f   : > { %v7446_v54 = vpop.f32.mrf.mxu1 }
 0x240   : > { %v1321_v39 = vmax.f32 %v1153_v36, 0.0  ;;  %v1371_v44 = vpack.c.bf16 %v1323_v28, %v1322_v40  ;;  %v1174_v60 = vadd.f32 %v7446_v54, %v9073_v56 }
 0x241   : > { %v1165_v41 = vpop.f32.mrf.mxu1 }
 0x242   : > { %v1370_v43 = vpack.c.bf16 %v1321_v39, %v1320_v37  ;;  %v1166_v38 = vadd.f32 %v9073_v56, %v1165_v41  ;;  %v1326_v57 = vmax.f32 %v1174_v60, 0.0 }
 0x243   : > { %v7447_v45 = vpop.f32.mrf.mxu1 }
 0x244   : > { %v1177_v46 = vadd.f32 %v7447_v45, %v9073_v56  ;;  %7520 = vmatprep.mubr.bf16.mxu0 %v1370_v43  ;;  %v1324_v53 = vmax.f32 %v1166_v38, 0.0 }
 0x245   : > { %v1168_v48 = vpop.f32.mrf.mxu1  ;;  %7521 = vmatmul.mubr.bf16.gmra.mxu0 %v1371_v44 }
 0x246   : > { %v1169_v1 = vadd.f32 %v9073_v56, %v1168_v48  ;;  %v1327_v11 = vmax.f32 %v1177_v46, 0.0 }
 0x247   : > { %v7450_v50 = vpop.f32.mrf.mxu1 }
 0x248   : > { %v1325_v52 = vmax.f32 %v1169_v1, 0.0  ;;  %v1373_v15 = vpack.c.bf16 %v1327_v11, %v1326_v57  ;;  %v1190_v63 = vadd.f32 %v7450_v50, %v9073_v56 }
 0x249   : > { %v1181_v58 = vpop.f32.mrf.mxu1 }
 0x24a   : > { %v1372_v61 = vpack.c.bf16 %v1325_v52, %v1324_v53  ;;  %v1182_v62 = vadd.f32 %v9073_v56, %v1181_v58  ;;  %v1330_v9 = vmax.f32 %v1190_v63, 0.0 }
 0x24b   : > { %v7451_v33 = vpop.f32.mrf.mxu1 }
 0x24c   : > { %v1193_v29 = vadd.f32 %v7451_v33, %v9073_v56  ;;  %7524 = vmatprep.mubr.bf16.mxu0 %v1372_v61  ;;  %v1328_v7 = vmax.f32 %v1182_v62, 0.0 }
 0x24d   : > { %v1184_v47 = vpop.f32.mrf.mxu1  ;;  %7525 = vmatmul.mubr.bf16.gmra.mxu0 %v1373_v15 }
 0x24e   : > { %v1185_v0 = vadd.f32 %v9073_v56, %v1184_v47  ;;  %v1331_v2 = vmax.f32 %v1193_v29, 0.0 }
 0x24f   : > { %v7454_v3 = vpop.f32.mrf.mxu1 }
 0x250   : > { %v1329_v8 = vmax.f32 %v1185_v0, 0.0  ;;  %v1375_v12 = vpack.c.bf16 %v1331_v2, %v1330_v9  ;;  %v1206_v24 = vadd.f32 %v7454_v3, %v9073_v56 }
 0x251   : > { %v1197_v10 = vpop.f32.mrf.mxu1 }
 0x252   : > { %v1374_v55 = vpack.c.bf16 %v1329_v8, %v1328_v7  ;;  %v1198_v13 = vadd.f32 %v9073_v56, %v1197_v10  ;;  %v1334_v21 = vmax.f32 %v1206_v24, 0.0 }
 0x253   : > { %v7455_v51 = vpop.f32.mrf.mxu1 }
 0x254   : > { %v1209_v5 = vadd.f32 %v7455_v51, %v9073_v56  ;;  %7528 = vmatprep.mubr.bf16.mxu0 %v1374_v55  ;;  %v1332_v18 = vmax.f32 %v1198_v13, 0.0 }
 0x255   : > { %v1200_v14 = vpop.f32.mrf.mxu1  ;;  %7529 = vmatmul.mubr.bf16.gmra.mxu0 %v1375_v12 }
 0x256   : > { %v1201_v16 = vadd.f32 %v9073_v56, %v1200_v14  ;;  %v1335_v59 = vmax.f32 %v1209_v5, 0.0 }
 0x257   : > { %v7458_v17 = vpop.f32.mrf.mxu1 }
 0x258   : > { %v1333_v19 = vmax.f32 %v1201_v16, 0.0  ;;  %v1377_v25 = vpack.c.bf16 %v1335_v59, %v1334_v21  ;;  %v1222_v27 = vadd.f32 %v7458_v17, %v9073_v56 }
 0x259   : > { %v1213_v22 = vpop.f32.mrf.mxu1 }
 0x25a   : > { %v1376_v23 = vpack.c.bf16 %v1333_v19, %v1332_v18  ;;  %v1214_v26 = vadd.f32 %v9073_v56, %v1213_v22  ;;  %v1338_v35 = vmax.f32 %v1222_v27, 0.0 }
 0x25b   : > { %v7459_v42 = vpop.f32.mrf.mxu1 }
 0x25c   : > { %v1225_v4 = vadd.f32 %v7459_v42, %v9073_v56  ;;  %7532 = vmatprep.mubr.bf16.mxu0 %v1376_v23  ;;  %v1336_v34 = vmax.f32 %v1214_v26, 0.0 }
 0x25d   : > { %v1216_v30 = vpop.f32.mrf.mxu1  ;;  %7533 = vmatmul.mubr.bf16.gmra.mxu0 %v1377_v25 }
 0x25e   : > { %v1217_v31 = vadd.f32 %v9073_v56, %v1216_v30  ;;  %v1339_v6 = vmax.f32 %v1225_v4, 0.0 }
 0x25f   : > { %v7462_v32 = vpop.f32.mrf.mxu1 }
 0x260   : > { %v1337_v20 = vmax.f32 %v1217_v31, 0.0  ;;  %v1379_v28 = vpack.c.bf16 %v1339_v6, %v1338_v35  ;;  %v1238_v40 = vadd.f32 %v7462_v32, %v9073_v56  ;;  %v8501_v31 = vld [vmem:[#allocation4 + $0x138] sm:$0xff]   ;;  %v8502_v6 = vld [vmem:[#allocation4 + $0x130] sm:$0xff]   ;;  %v8503_v32 = vld [vmem:[#allocation4 + $0x128] sm:$0xff]  }
 0x261   : > { %v1229_v49 = vpop.f32.mrf.mxu1  ;;  %7636 = vmatprep.subr.bf16.mxu0 %v8501_v31 }
 0x262   : > { %v1378_v36 = vpack.c.bf16 %v1337_v20, %v1336_v34  ;;  %v1230_v37 = vadd.f32 %v9073_v56, %v1229_v49  ;;  %v1342_v60 = vmax.f32 %v1238_v40, 0.0  ;;  %7637 = vmatpush3.bf16.msra.mxu0 %v8501_v31 }
 0x263   : > { %v7463_v54 = vpop.f32.mrf.mxu1  ;;  %7638 = vmatprep.subr.bf16.mxu0 %v8502_v6 }
 0x264   : > { %v1241_v39 = vadd.f32 %v7463_v54, %v9073_v56  ;;  %7536 = vmatprep.mubr.bf16.mxu0 %v1378_v36  ;;  %v1340_v38 = vmax.f32 %v1230_v37, 0.0  ;;  %v8504_v37 = vld [vmem:[#allocation4 + $0x120] sm:$0xff]  }
 0x265   : > { %v1232_v41 = vpop.f32.mrf.mxu1  ;;  %7537 = vmatmul.mubr.bf16.gmra.mxu0 %v1379_v28 }
 0x266   : > { %v1233_v43 = vadd.f32 %v9073_v56, %v1232_v41  ;;  %v1343_v44 = vmax.f32 %v1241_v39, 0.0  ;;  %7639 = vmatpush3.bf16.msra.mxu0 %v8502_v6  ;;  %v8505_v39 = vld [vmem:[#allocation4 + $0x118] sm:$0xff]  }
 0x267   : > { %v7466_v45 = vpop.f32.mrf.mxu1  ;;  %7640 = vmatprep.subr.bf16.mxu0 %v8503_v32 }
 0x268   : > { %v1341_v46 = vmax.f32 %v1233_v43, 0.0  ;;  %v1381_v11 = vpack.c.bf16 %v1343_v44, %v1342_v60  ;;  %v1254_v57 = vadd.f32 %v7466_v45, %v9073_v56  ;;  %v8506_v60 = vld [vmem:[#allocation4 + $0x110] sm:$0xff]  }
 0x269   : > { %v1245_v48 = vpop.f32.mrf.mxu1 }
 0x26a   : > { %v1380_v1 = vpack.c.bf16 %v1341_v46, %v1340_v38  ;;  %v1246_v53 = vadd.f32 %v9073_v56, %v1245_v48  ;;  %v1346_v63 = vmax.f32 %v1254_v57, 0.0  ;;  %7641 = vmatpush3.bf16.msra.mxu0 %v8503_v32 }
 0x26b   : > { %v7467_v50 = vpop.f32.mrf.mxu1  ;;  %7642 = vmatprep.subr.bf16.mxu0 %v8504_v37 }
 0x26c   : > { %v1257_v52 = vadd.f32 %v7467_v50, %v9073_v56  ;;  %7540 = vmatprep.mubr.bf16.mxu0 %v1380_v1  ;;  %v1344_v62 = vmax.f32 %v1246_v53, 0.0 }
 0x26d   : > { %v1248_v58 = vpop.f32.mrf.mxu1  ;;  %7541 = vmatmul.mubr.bf16.gmra.mxu0 %v1381_v11 }
 0x26e   : > { %v1249_v61 = vadd.f32 %v9073_v56, %v1248_v58  ;;  %v1347_v15 = vmax.f32 %v1257_v52, 0.0  ;;  %7643 = vmatpush3.bf16.msra.mxu0 %v8504_v37  ;;  %v8507_v58 = vld [vmem:[#allocation4 + $0x108] sm:$0xff]  }
 0x26f   : > { %v7470_v33 = vpop.f32.mrf.mxu1  ;;  %7644 = vmatprep.subr.bf16.mxu0 %v8505_v39 }
 0x270   : > { %v1345_v29 = vmax.f32 %v1249_v61, 0.0  ;;  %v1383_v2 = vpack.c.bf16 %v1347_v15, %v1346_v63  ;;  %v1270_v9 = vadd.f32 %v7470_v33, %v9073_v56 }
 0x271   : > { %v1261_v47 = vpop.f32.mrf.mxu1 }
 0x272   : > { %v1382_v0 = vpack.c.bf16 %v1345_v29, %v1344_v62  ;;  %v1262_v7 = vadd.f32 %v9073_v56, %v1261_v47  ;;  %v1350_v24 = vmax.f32 %v1270_v9, 0.0  ;;  %7645 = vmatpush3.bf16.msra.mxu0 %v8505_v39 }
 0x273   : > { %v7471_v3 = vpop.f32.mrf.mxu1  ;;  %7646 = vmatprep.subr.bf16.mxu0 %v8506_v60 }
 0x274   : > { %v1273_v8 = vadd.f32 %v7471_v3, %v9073_v56  ;;  %7544 = vmatprep.mubr.bf16.mxu0 %v1382_v0  ;;  %v1348_v13 = vmax.f32 %v1262_v7, 0.0  ;;  %v8508_v0 = vld [vmem:[#allocation4 + $0x100] sm:$0xff]  }
 0x275   : > { %v1264_v10 = vpop.f32.mrf.mxu1  ;;  %7545 = vmatmul.mubr.bf16.gmra.mxu0 %v1383_v2 }
 0x276   : > { %v1265_v55 = vadd.f32 %v9073_v56, %v1264_v10  ;;  %v1351_v12 = vmax.f32 %v1273_v8, 0.0  ;;  %7647 = vmatpush3.bf16.msra.mxu0 %v8506_v60 }
 0x277   : > { %v7474_v51 = vpop.f32.mrf.mxu1  ;;  %7648 = vmatprep.subr.bf16.mxu0 %v8507_v58 }
 0x278   : > { %v1349_v5 = vmax.f32 %v1265_v55, 0.0  ;;  %v1385_v59 = vpack.c.bf16 %v1351_v12, %v1350_v24  ;;  %v1286_v21 = vadd.f32 %v7474_v51, %v9073_v56 }
 0x279   : > { %v1277_v14 = vpop.f32.mrf.mxu1 }
 0x27a   : > { %v1384_v16 = vpack.c.bf16 %v1349_v5, %v1348_v13  ;;  %v1278_v18 = vadd.f32 %v9073_v56, %v1277_v14  ;;  %v1354_v4 = vmax.f32 %v1286_v21, 0.0  ;;  %7649 = vmatpush3.bf16.msra.mxu0 %v8507_v58 }
 0x27b   : > { %v7475_v17 = vpop.f32.mrf.mxu1  ;;  %7650 = vmatprep.subr.bf16.mxu0 %v8508_v0 }
 0x27c   : > { %v1289_v19 = vadd.f32 %v7475_v17, %v9073_v56  ;;  %7548 = vmatprep.mubr.bf16.mxu0 %v1384_v16  ;;  %v1352_v42 = vmax.f32 %v1278_v18, 0.0 }
 0x27d   : > { %v1280_v22 = vpop.f32.mrf.mxu1  ;;  %7549 = vmatmul.mubr.bf16.gmra.mxu0 %v1385_v59 }
 0x27e   : > { %v1281_v23 = vadd.f32 %v9073_v56, %v1280_v22  ;;  %v1355_v25 = vmax.f32 %v1289_v19, 0.0  ;;  %v9139_v56 = vld [vmem:[#allocation6 + $0x2] ss:$0 sm:$0xff]  ;;  %7651 = vmatpush3.bf16.msra.mxu0 %v8508_v0 }
 0x280   : > { %v1353_v26 = vmax.f32 %v1281_v23, 0.0  ;;  %v1387_v30 = vpack.c.bf16 %v1355_v25, %v1354_v4 }
 0x282   : > { %v1386_v27 = vpack.c.bf16 %v1353_v26, %v1352_v42 }
 0x284   : > { %7552 = vmatprep.mubr.bf16.mxu0 %v1386_v27 }
 0x285   : > { %7553 = vmatmul.mubr.bf16.gmra.mxu0 %v1387_v30 }
 0x2cd   : > { %v7494_v34 = vpop.f32.mrf.mxu0 }
 0x2ce   : > { %v1501_v28 = vadd.f32 %v7494_v34, %v9139_v56 }
 0x2cf   : > { %v1492_v20 = vpop.f32.mrf.mxu0 }
 0x2d0   : > { %v1493_v49 = vadd.f32 %v9139_v56, %v1492_v20  ;;  %v1749_v38 = vmax.f32 %v1501_v28, 0.0 }
 0x2d1   : > { %v7495_v35 = vpop.f32.mrf.mxu0 }
 0x2d2   : > { %v1504_v36 = vadd.f32 %v7495_v35, %v9139_v56  ;;  %v1747_v44 = vmax.f32 %v1493_v49, 0.0 }
 0x2d3   : > { %v1495_v54 = vpop.f32.mrf.mxu0 }
 0x2d4   : > { %v1496_v40 = vadd.f32 %v9139_v56, %v1495_v54  ;;  %v1750_v41 = vmax.f32 %v1504_v36, 0.0 }
 0x2d5   : > { %v7498_v43 = vpop.f32.mrf.mxu0 }
 0x2d6   : > { %v1748_v45 = vmax.f32 %v1496_v40, 0.0  ;;  %v1812_v1 = vpack.c.bf16 %v1750_v41, %v1749_v38  ;;  %v1517_v52 = vadd.f32 %v7498_v43, %v9139_v56 }
 0x2d7   : > { %v1508_v46 = vpop.f32.mrf.mxu0 }
 0x2d8   : > { %v1811_v48 = vpack.c.bf16 %v1748_v45, %v1747_v44  ;;  %v1509_v50 = vadd.f32 %v9139_v56, %v1508_v46  ;;  %v1753_v63 = vmax.f32 %v1517_v52, 0.0 }
 0x2d9   : > { %v7499_v11 = vpop.f32.mrf.mxu0 }
 0x2da   : > { %v1520_v53 = vadd.f32 %v7499_v11, %v9139_v56  ;;  %7572 = vmatprep.mubr.bf16.mxu1 %v1811_v48  ;;  %v1751_v62 = vmax.f32 %v1509_v50, 0.0 }
 0x2db   : > { %v1511_v57 = vpop.f32.mrf.mxu0  ;;  %7573 = vmatmul.mubr.bf16.vlgmr.msra.gmra.mxu1 %v1812_v1 }
 0x2dc   : > { %v1512_v61 = vadd.f32 %v9139_v56, %v1511_v57  ;;  %v1754_v15 = vmax.f32 %v1520_v53, 0.0 }
 0x2dd   : > { %v7502_v33 = vpop.f32.mrf.mxu0 }
 0x2de   : > { %v1752_v29 = vmax.f32 %v1512_v61, 0.0  ;;  %v1814_v3 = vpack.c.bf16 %v1754_v15, %v1753_v63  ;;  %v1533_v10 = vadd.f32 %v7502_v33, %v9139_v56 }
 0x2df   : > { %v1524_v47 = vpop.f32.mrf.mxu0 }
 0x2e0   : > { %v1813_v2 = vpack.c.bf16 %v1752_v29, %v1751_v62  ;;  %v1525_v8 = vadd.f32 %v9139_v56, %v1524_v47  ;;  %v1757_v14 = vmax.f32 %v1533_v10, 0.0 }
 0x2e1   : > { %v7503_v7 = vpop.f32.mrf.mxu0 }
 0x2e2   : > { %v1536_v9 = vadd.f32 %v7503_v7, %v9139_v56  ;;  %7576 = vmatprep.mubr.bf16.mxu1 %v1813_v2  ;;  %v1755_v5 = vmax.f32 %v1525_v8, 0.0 }
 0x2e3   : > { %v1527_v55 = vpop.f32.mrf.mxu0  ;;  %7577 = vmatmul.mubr.bf16.gmra.mxu1 %v1814_v3 }
 0x2e4   : > { %v1528_v12 = vadd.f32 %v9139_v56, %v1527_v55  ;;  %v1758_v51 = vmax.f32 %v1536_v9, 0.0 }
 0x2e5   : > { %v7506_v13 = vpop.f32.mrf.mxu0 }
 0x2e6   : > { %v1756_v24 = vmax.f32 %v1528_v12, 0.0  ;;  %v1816_v17 = vpack.c.bf16 %v1758_v51, %v1757_v14  ;;  %v1549_v22 = vadd.f32 %v7506_v13, %v9139_v56 }
 0x2e7   : > { %v1540_v16 = vpop.f32.mrf.mxu0 }
 0x2e8   : > { %v1815_v59 = vpack.c.bf16 %v1756_v24, %v1755_v5  ;;  %v1541_v19 = vadd.f32 %v9139_v56, %v1540_v16  ;;  %v1761_v30 = vmax.f32 %v1549_v22, 0.0 }
 0x2e9   : > { %v7507_v18 = vpop.f32.mrf.mxu0 }
 0x2ea   : > { %v1552_v21 = vadd.f32 %v7507_v18, %v9139_v56  ;;  %7580 = vmatprep.mubr.bf16.mxu1 %v1815_v59  ;;  %v1759_v4 = vmax.f32 %v1541_v19, 0.0 }
 0x2eb   : > { %v1543_v23 = vpop.f32.mrf.mxu0  ;;  %7581 = vmatmul.mubr.bf16.gmra.mxu1 %v1816_v17 }
 0x2ec   : > { %v1544_v25 = vadd.f32 %v9139_v56, %v1543_v23  ;;  %v1762_v42 = vmax.f32 %v1552_v21, 0.0 }
 0x2ed   : > { %v7510_v26 = vpop.f32.mrf.mxu0 }
 0x2ee   : > { %v1760_v27 = vmax.f32 %v1544_v25, 0.0  ;;  %v1818_v32 = vpack.c.bf16 %v1762_v42, %v1761_v30  ;;  %v1565_v49 = vadd.f32 %v7510_v26, %v9139_v56 }
 0x2ef   : > { %v1556_v31 = vpop.f32.mrf.mxu0 }
 0x2f0   : > { %v1817_v6 = vpack.c.bf16 %v1760_v27, %v1759_v4  ;;  %v1557_v20 = vadd.f32 %v9139_v56, %v1556_v31  ;;  %v1765_v41 = vmax.f32 %v1565_v49, 0.0 }
 0x2f1   : > { %v7511_v34 = vpop.f32.mrf.mxu0 }
 0x2f2   : > { %v1568_v35 = vadd.f32 %v7511_v34, %v9139_v56  ;;  %7584 = vmatprep.mubr.bf16.mxu1 %v1817_v6  ;;  %v1763_v39 = vmax.f32 %v1557_v20, 0.0 }
 0x2f3   : > { %v1559_v36 = vpop.f32.mrf.mxu0  ;;  %7585 = vmatmul.mubr.bf16.gmra.mxu1 %v1818_v32 }
 0x2f4   : > { %v1560_v28 = vadd.f32 %v9139_v56, %v1559_v36  ;;  %v1766_v54 = vmax.f32 %v1568_v35, 0.0 }
 0x2f5   : > { %v7514_v37 = vpop.f32.mrf.mxu0 }
 0x2f6   : > { %v1764_v40 = vmax.f32 %v1560_v28, 0.0  ;;  %v1820_v45 = vpack.c.bf16 %v1766_v54, %v1765_v41  ;;  %v1581_v48 = vadd.f32 %v7514_v37, %v9139_v56 }
 0x2f7   : > { %v1572_v43 = vpop.f32.mrf.mxu0 }
 0x2f8   : > { %v1819_v44 = vpack.c.bf16 %v1764_v40, %v1763_v39  ;;  %v1573_v46 = vadd.f32 %v9139_v56, %v1572_v43  ;;  %v1769_v58 = vmax.f32 %v1581_v48, 0.0 }
 0x2f9   : > { %v7515_v38 = vpop.f32.mrf.mxu0 }
 0x2fa   : > { %v1584_v60 = vadd.f32 %v7515_v38, %v9139_v56  ;;  %7588 = vmatprep.mubr.bf16.mxu1 %v1819_v44  ;;  %v1767_v52 = vmax.f32 %v1573_v46, 0.0 }
 0x2fb   : > { %v1575_v1 = vpop.f32.mrf.mxu0  ;;  %7589 = vmatmul.mubr.bf16.gmra.mxu1 %v1820_v45 }
 0x2fc   : > { %v1576_v11 = vadd.f32 %v9139_v56, %v1575_v1  ;;  %v1770_v50 = vmax.f32 %v1584_v60, 0.0 }
 0x2fd   : > { %v7518_v53 = vpop.f32.mrf.mxu0 }
 0x2fe   : > { %v1768_v57 = vmax.f32 %v1576_v11, 0.0  ;;  %v1822_v33 = vpack.c.bf16 %v1770_v50, %v1769_v58  ;;  %v1597_v47 = vadd.f32 %v7518_v53, %v9139_v56 }
 0x2ff   : > { %v1588_v61 = vpop.f32.mrf.mxu0 }
 0x300   : > { %v1821_v15 = vpack.c.bf16 %v1768_v57, %v1767_v52  ;;  %v1589_v29 = vadd.f32 %v9139_v56, %v1588_v61  ;;  %v1773_v10 = vmax.f32 %v1597_v47, 0.0 }
 0x301   : > { %v7519_v62 = vpop.f32.mrf.mxu0 }
 0x302   : > { %v1600_v63 = vadd.f32 %v7519_v62, %v9139_v56  ;;  %7592 = vmatprep.mubr.bf16.mxu1 %v1821_v15  ;;  %v1771_v8 = vmax.f32 %v1589_v29, 0.0 }
 0x303   : > { %v1591_v0 = vpop.f32.mrf.mxu0  ;;  %7593 = vmatmul.mubr.bf16.gmra.mxu1 %v1822_v33 }
 0x304   : > { %v1592_v2 = vadd.f32 %v9139_v56, %v1591_v0  ;;  %v1774_v3 = vmax.f32 %v1600_v63, 0.0 }
 0x305   : > { %v7522_v7 = vpop.f32.mrf.mxu0 }
 0x306   : > { %v1772_v9 = vmax.f32 %v1592_v2, 0.0  ;;  %v1824_v51 = vpack.c.bf16 %v1774_v3, %v1773_v10  ;;  %v1613_v14 = vadd.f32 %v7522_v7, %v9139_v56 }
 0x307   : > { %v1604_v55 = vpop.f32.mrf.mxu0 }
 0x308   : > { %v1823_v12 = vpack.c.bf16 %v1772_v9, %v1771_v8  ;;  %v1605_v5 = vadd.f32 %v9139_v56, %v1604_v55  ;;  %v1777_v22 = vmax.f32 %v1613_v14, 0.0 }
 0x309   : > { %v7523_v13 = vpop.f32.mrf.mxu0 }
 0x30a   : > { %v1616_v24 = vadd.f32 %v7523_v13, %v9139_v56  ;;  %7596 = vmatprep.mubr.bf16.mxu1 %v1823_v12  ;;  %v1775_v19 = vmax.f32 %v1605_v5, 0.0 }
 0x30b   : > { %v1607_v16 = vpop.f32.mrf.mxu0  ;;  %7597 = vmatmul.mubr.bf16.gmra.mxu1 %v1824_v51 }
 0x30c   : > { %v1608_v59 = vadd.f32 %v9139_v56, %v1607_v16  ;;  %v1778_v17 = vmax.f32 %v1616_v24, 0.0 }
 0x30d   : > { %v7526_v18 = vpop.f32.mrf.mxu0 }
 0x30e   : > { %v1776_v21 = vmax.f32 %v1608_v59, 0.0  ;;  %v1826_v42 = vpack.c.bf16 %v1778_v17, %v1777_v22  ;;  %v1629_v30 = vadd.f32 %v7526_v18, %v9139_v56 }
 0x30f   : > { %v1620_v23 = vpop.f32.mrf.mxu0 }
 0x310   : > { %v1825_v25 = vpack.c.bf16 %v1776_v21, %v1775_v19  ;;  %v1621_v4 = vadd.f32 %v9139_v56, %v1620_v23  ;;  %v1781_v49 = vmax.f32 %v1629_v30, 0.0 }
 0x311   : > { %v7527_v26 = vpop.f32.mrf.mxu0 }
 0x312   : > { %v1632_v27 = vadd.f32 %v7527_v26, %v9139_v56  ;;  %7600 = vmatprep.mubr.bf16.mxu1 %v1825_v25  ;;  %v1779_v20 = vmax.f32 %v1621_v4, 0.0 }
 0x313   : > { %v1623_v31 = vpop.f32.mrf.mxu0  ;;  %7601 = vmatmul.mubr.bf16.gmra.mxu1 %v1826_v42 }
 0x314   : > { %v1624_v6 = vadd.f32 %v9139_v56, %v1623_v31  ;;  %v1782_v32 = vmax.f32 %v1632_v27, 0.0 }
 0x315   : > { %v7530_v34 = vpop.f32.mrf.mxu0 }
 0x316   : > { %v1780_v35 = vmax.f32 %v1624_v6, 0.0  ;;  %v1828_v54 = vpack.c.bf16 %v1782_v32, %v1781_v49  ;;  %v1645_v41 = vadd.f32 %v7530_v34, %v9139_v56 }
 0x317   : > { %v1636_v36 = vpop.f32.mrf.mxu0 }
 0x318   : > { %v1827_v28 = vpack.c.bf16 %v1780_v35, %v1779_v20  ;;  %v1637_v39 = vadd.f32 %v9139_v56, %v1636_v36  ;;  %v1785_v48 = vmax.f32 %v1645_v41, 0.0 }
 0x319   : > { %v7531_v37 = vpop.f32.mrf.mxu0 }
 0x31a   : > { %v1648_v40 = vadd.f32 %v7531_v37, %v9139_v56  ;;  %7604 = vmatprep.mubr.bf16.mxu1 %v1827_v28  ;;  %v1783_v46 = vmax.f32 %v1637_v39, 0.0 }
 0x31b   : > { %v1639_v43 = vpop.f32.mrf.mxu0  ;;  %7605 = vmatmul.mubr.bf16.gmra.mxu1 %v1828_v54 }
 0x31c   : > { %v1640_v44 = vadd.f32 %v9139_v56, %v1639_v43  ;;  %v1786_v45 = vmax.f32 %v1648_v40, 0.0 }
 0x31d   : > { %v7534_v38 = vpop.f32.mrf.mxu0 }
 0x31e   : > { %v1784_v60 = vmax.f32 %v1640_v44, 0.0  ;;  %v1830_v50 = vpack.c.bf16 %v1786_v45, %v1785_v48  ;;  %v1661_v58 = vadd.f32 %v7534_v38, %v9139_v56 }
 0x31f   : > { %v1652_v1 = vpop.f32.mrf.mxu0 }
 0x320   : > { %v1829_v11 = vpack.c.bf16 %v1784_v60, %v1783_v46  ;;  %v1653_v52 = vadd.f32 %v9139_v56, %v1652_v1  ;;  %v1789_v47 = vmax.f32 %v1661_v58, 0.0 }
 0x321   : > { %v7535_v53 = vpop.f32.mrf.mxu0 }
 0x322   : > { %v1664_v57 = vadd.f32 %v7535_v53, %v9139_v56  ;;  %7608 = vmatprep.mubr.bf16.mxu1 %v1829_v11  ;;  %v1787_v29 = vmax.f32 %v1653_v52, 0.0 }
 0x323   : > { %v1655_v61 = vpop.f32.mrf.mxu0  ;;  %7609 = vmatmul.mubr.bf16.gmra.mxu1 %v1830_v50 }
 0x324   : > { %v1656_v15 = vadd.f32 %v9139_v56, %v1655_v61  ;;  %v1790_v33 = vmax.f32 %v1664_v57, 0.0 }
 0x325   : > { %v7538_v62 = vpop.f32.mrf.mxu0 }
 0x326   : > { %v1788_v63 = vmax.f32 %v1656_v15, 0.0  ;;  %v1832_v3 = vpack.c.bf16 %v1790_v33, %v1789_v47  ;;  %v1677_v10 = vadd.f32 %v7538_v62, %v9139_v56 }
 0x327   : > { %v1668_v0 = vpop.f32.mrf.mxu0 }
 0x328   : > { %v1831_v2 = vpack.c.bf16 %v1788_v63, %v1787_v29  ;;  %v1669_v8 = vadd.f32 %v9139_v56, %v1668_v0  ;;  %v1793_v14 = vmax.f32 %v1677_v10, 0.0 }
 0x329   : > { %v7539_v7 = vpop.f32.mrf.mxu0 }
 0x32a   : > { %v1680_v9 = vadd.f32 %v7539_v7, %v9139_v56  ;;  %7612 = vmatprep.mubr.bf16.mxu1 %v1831_v2  ;;  %v1791_v5 = vmax.f32 %v1669_v8, 0.0 }
 0x32b   : > { %v1671_v55 = vpop.f32.mrf.mxu0  ;;  %7613 = vmatmul.mubr.bf16.gmra.mxu1 %v1832_v3 }
 0x32c   : > { %v1672_v12 = vadd.f32 %v9139_v56, %v1671_v55  ;;  %v1794_v51 = vmax.f32 %v1680_v9, 0.0 }
 0x32d   : > { %v7542_v13 = vpop.f32.mrf.mxu0 }
 0x32e   : > { %v1792_v24 = vmax.f32 %v1672_v12, 0.0  ;;  %v1834_v17 = vpack.c.bf16 %v1794_v51, %v1793_v14  ;;  %v1693_v22 = vadd.f32 %v7542_v13, %v9139_v56  ;;  %v8509_v12 = vld [vmem:[#allocation4 + $0x1b8] sm:$0xff]   ;;  %v8511_v13 = vld [vmem:[#allocation4 + $0x1b0] sm:$0xff]   ;;  %v9205_v14 = vld [vmem:[#allocation6 + $0x3] ss:$0 sm:$0xff] }
 0x32f   : > { %v1684_v16 = vpop.f32.mrf.mxu0  ;;  %v8510_v51 = vld [vmem:[#allocation4 + $0x178] sm:$0xff]   ;;  %7716 = vmatprep.subr.bf16.mxu1 %v8509_v12 }
 0x330   : > { %v1833_v59 = vpack.c.bf16 %v1792_v24, %v1791_v5  ;;  %v1685_v19 = vadd.f32 %v9139_v56, %v1684_v16  ;;  %v1797_v30 = vmax.f32 %v1693_v22, 0.0  ;;  %7796 = vmatprep.subr.bf16.mxu0 %v8510_v51  ;;  %7717 = vmatpush3.bf16.msra.mxu1 %v8509_v12  ;;  %v8513_v5 = vld [vmem:[#allocation4 + $0x1a8] sm:$0xff]   ;;  %v8517_v22 = vld [vmem:[#allocation4 + $0x198] sm:$0xff]  }
 0x331   : > { %v7543_v18 = vpop.f32.mrf.mxu0  ;;  %7718 = vmatprep.subr.bf16.mxu1 %v8511_v13 }
 0x332   : > { %v1696_v21 = vadd.f32 %v7543_v18, %v9139_v56  ;;  %7616 = vmatprep.mubr.bf16.mxu1 %v1833_v59  ;;  %v1795_v4 = vmax.f32 %v1685_v19, 0.0 }
 0x333   : > { %v1687_v23 = vpop.f32.mrf.mxu0  ;;  %7617 = vmatmul.mubr.bf16.gmra.mxu1 %v1834_v17 }
 0x334   : > { %v1688_v25 = vadd.f32 %v9139_v56, %v1687_v23  ;;  %v1798_v42 = vmax.f32 %v1696_v21, 0.0  ;;  %7719 = vmatpush3.bf16.msra.mxu1 %v8511_v13  ;;  %v8515_v21 = vld [vmem:[#allocation4 + $0x1a0] sm:$0xff]  }
 0x335   : > { %v7546_v26 = vpop.f32.mrf.mxu0  ;;  %7720 = vmatprep.subr.bf16.mxu1 %v8513_v5 }
 0x336   : > { %v1796_v27 = vmax.f32 %v1688_v25, 0.0  ;;  %v1836_v32 = vpack.c.bf16 %v1798_v42, %v1797_v30  ;;  %v1709_v49 = vadd.f32 %v7546_v26, %v9139_v56 }
 0x337   : > { %v1700_v31 = vpop.f32.mrf.mxu0 }
 0x338   : > { %v1835_v6 = vpack.c.bf16 %v1796_v27, %v1795_v4  ;;  %v1701_v20 = vadd.f32 %v9139_v56, %v1700_v31  ;;  %v1801_v41 = vmax.f32 %v1709_v49, 0.0  ;;  %7721 = vmatpush3.bf16.msra.mxu1 %v8513_v5  ;;  %v8519_v31 = vld [vmem:[#allocation4 + $0x190] sm:$0xff]   ;;  %v8522_v5 = vld [vmem:[#allocation4 + $0x148] sm:$0xff]  }
 0x339   : > { %v7547_v34 = vpop.f32.mrf.mxu0  ;;  %7722 = vmatprep.subr.bf16.mxu1 %v8515_v21 }
 0x33a   : > { %v1712_v35 = vadd.f32 %v7547_v34, %v9139_v56  ;;  %7620 = vmatprep.mubr.bf16.mxu1 %v1835_v6  ;;  %v1799_v39 = vmax.f32 %v1701_v20, 0.0  ;;  %v8512_v20 = vld [vmem:[#allocation4 + $0x170] sm:$0xff]  }
 0x33b   : > { %v1703_v36 = vpop.f32.mrf.mxu0  ;;  %7621 = vmatmul.mubr.bf16.gmra.mxu1 %v1836_v32 }
 0x33c   : > { %v1704_v28 = vadd.f32 %v9139_v56, %v1703_v36  ;;  %v1802_v54 = vmax.f32 %v1712_v35, 0.0  ;;  %7723 = vmatpush3.bf16.msra.mxu1 %v8515_v21  ;;  %v8524_v21 = vld [vmem:[#allocation4 + $0x140] sm:$0xff]  }
 0x33d   : > { %v7550_v37 = vpop.f32.mrf.mxu0  ;;  %7724 = vmatprep.subr.bf16.mxu1 %v8517_v22 }
 0x33e   : > { %v1800_v40 = vmax.f32 %v1704_v28, 0.0  ;;  %v1838_v45 = vpack.c.bf16 %v1802_v54, %v1801_v41  ;;  %v1725_v48 = vadd.f32 %v7550_v37, %v9139_v56  ;;  %v8521_v54 = vld [vmem:[#allocation4 + $0x188] sm:$0xff]  }
 0x33f   : > { %v1716_v43 = vpop.f32.mrf.mxu0  ;;  %v8514_v41 = vld [vmem:[#allocation4 + $0x168] sm:$0xff]  }
 0x340   : > { %v1837_v44 = vpack.c.bf16 %v1800_v40, %v1799_v39  ;;  %v1717_v46 = vadd.f32 %v9139_v56, %v1716_v43  ;;  %v1805_v58 = vmax.f32 %v1725_v48, 0.0  ;;  %7725 = vmatpush3.bf16.msra.mxu1 %v8517_v22 }
 0x341   : > { %v7551_v38 = vpop.f32.mrf.mxu0  ;;  %7726 = vmatprep.subr.bf16.mxu1 %v8519_v31 }
 0x342   : > { %v1728_v60 = vadd.f32 %v7551_v38, %v9139_v56  ;;  %7624 = vmatprep.mubr.bf16.mxu1 %v1837_v44  ;;  %v1803_v52 = vmax.f32 %v1717_v46, 0.0  ;;  %v8523_v46 = vld [vmem:[#allocation4 + $0x180] sm:$0xff]  }
 0x343   : > { %v1719_v1 = vpop.f32.mrf.mxu0  ;;  %7625 = vmatmul.mubr.bf16.gmra.mxu1 %v1838_v45 }
 0x344   : > { %v1720_v11 = vadd.f32 %v9139_v56, %v1719_v1  ;;  %v1806_v50 = vmax.f32 %v1728_v60, 0.0  ;;  %7727 = vmatpush3.bf16.msra.mxu1 %v8519_v31 }
 0x345   : > { %v7554_v53 = vpop.f32.mrf.mxu0  ;;  %7728 = vmatprep.subr.bf16.mxu1 %v8521_v54 }
 0x346   : > { %v1804_v57 = vmax.f32 %v1720_v11, 0.0  ;;  %v1840_v33 = vpack.c.bf16 %v1806_v50, %v1805_v58  ;;  %v1741_v47 = vadd.f32 %v7554_v53, %v9139_v56  ;;  %v8516_v11 = vld [vmem:[#allocation4 + $0x160] sm:$0xff]  }
 0x347   : > { %v1732_v61 = vpop.f32.mrf.mxu0 }
 0x348   : > { %v1839_v15 = vpack.c.bf16 %v1804_v57, %v1803_v52  ;;  %v1733_v29 = vadd.f32 %v9139_v56, %v1732_v61  ;;  %v1809_v9 = vmax.f32 %v1741_v47, 0.0  ;;  %7729 = vmatpush3.bf16.msra.mxu1 %v8521_v54 }
 0x349   : > { %v7555_v62 = vpop.f32.mrf.mxu0  ;;  %7730 = vmatprep.subr.bf16.mxu1 %v8523_v46 }
 0x34a   : > { %v1744_v63 = vadd.f32 %v7555_v62, %v9139_v56  ;;  %7628 = vmatprep.mubr.bf16.mxu1 %v1839_v15  ;;  %v1807_v7 = vmax.f32 %v1733_v29, 0.0 }
 0x34b   : > { %v1735_v0 = vpop.f32.mrf.mxu0  ;;  %7629 = vmatmul.mubr.bf16.gmra.mxu1 %v1840_v33  ;;  %v8518_v33 = vld [vmem:[#allocation4 + $0x158] sm:$0xff]  }
 0x34c   : > { %v1736_v2 = vadd.f32 %v9139_v56, %v1735_v0  ;;  %v1810_v3 = vmax.f32 %v1744_v63, 0.0  ;;  %7731 = vmatpush3.bf16.msra.mxu1 %v8523_v46 }
 0x34e   : > { %v1808_v8 = vmax.f32 %v1736_v2, 0.0  ;;  %v1842_v55 = vpack.c.bf16 %v1810_v3, %v1809_v9 }
 0x350   : > { %v1841_v10 = vpack.c.bf16 %v1808_v8, %v1807_v7  ;;  %v8520_v7 = vld [vmem:[#allocation4 + $0x150] sm:$0xff]  }
 0x352   : > { %7632 = vmatprep.mubr.bf16.mxu1 %v1841_v10 }
 0x353   : > { %7633 = vmatmul.mubr.bf16.gmra.mxu1 %v1842_v55 }
 0x39b   : > { %v7574_v24 = vpop.f32.mrf.mxu1 }
 0x39c   : > { %v1956_v18 = vadd.f32 %v7574_v24, %v9205_v14 }
 0x39d   : > { %v1947_v56 = vpop.f32.mrf.mxu1 }
 0x39e   : > { %v1948_v59 = vadd.f32 %v9205_v14, %v1947_v56  ;;  %v2204_v27 = vmax.f32 %v1956_v18, 0.0 }
 0x39f   : > { %v7575_v16 = vpop.f32.mrf.mxu1 }
 0x3a0   : > { %v1959_v17 = vadd.f32 %v7575_v16, %v9205_v14  ;;  %v2202_v26 = vmax.f32 %v1948_v59, 0.0 }
 0x3a1   : > { %v1950_v19 = vpop.f32.mrf.mxu1 }
 0x3a2   : > { %v1951_v23 = vadd.f32 %v9205_v14, %v1950_v19  ;;  %v2205_v25 = vmax.f32 %v1959_v17, 0.0 }
 0x3a3   : > { %v7578_v42 = vpop.f32.mrf.mxu1 }
 0x3a4   : > { %v2203_v4 = vmax.f32 %v1951_v23, 0.0  ;;  %v2267_v32 = vpack.c.bf16 %v2205_v25, %v2204_v27  ;;  %v1972_v36 = vadd.f32 %v7578_v42, %v9205_v14 }
 0x3a5   : > { %v1963_v30 = vpop.f32.mrf.mxu1 }
 0x3a6   : > { %v2266_v6 = vpack.c.bf16 %v2203_v4, %v2202_v26  ;;  %v1964_v35 = vadd.f32 %v9205_v14, %v1963_v30  ;;  %v2208_v45 = vmax.f32 %v1972_v36, 0.0 }
 0x3a7   : > { %v7579_v34 = vpop.f32.mrf.mxu1 }
 0x3a8   : > { %v1975_v49 = vadd.f32 %v7579_v34, %v9205_v14  ;;  %7652 = vmatprep.mubr.bf16.mxu0 %v2266_v6  ;;  %v2206_v43 = vmax.f32 %v1964_v35, 0.0 }
 0x3a9   : > { %v1966_v28 = vpop.f32.mrf.mxu1  ;;  %7653 = vmatmul.mubr.bf16.vlgmr.msra.gmra.mxu0 %v2267_v32 }
 0x3aa   : > { %v1967_v37 = vadd.f32 %v9205_v14, %v1966_v28  ;;  %7797 = vmatpush3.bf16.msra.mxu0 %v8510_v51  ;;  %v2209_v39 = vmax.f32 %v1975_v49, 0.0 }
 0x3ab   : > { %v7582_v40 = vpop.f32.mrf.mxu1  ;;  %7798 = vmatprep.subr.bf16.mxu0 %v8512_v20 }
 0x3ac   : > { %v2207_v44 = vmax.f32 %v1967_v37, 0.0  ;;  %v2269_v48 = vpack.c.bf16 %v2209_v39, %v2208_v45  ;;  %v1988_v52 = vadd.f32 %v7582_v40, %v9205_v14 }
 0x3ad   : > { %v1979_v38 = vpop.f32.mrf.mxu1 }
 0x3ae   : > { %v2268_v60 = vpack.c.bf16 %v2207_v44, %v2206_v43  ;;  %7799 = vmatpush3.bf16.msra.mxu0 %v8512_v20  ;;  %v1980_v50 = vadd.f32 %v9205_v14, %v1979_v38  ;;  %v2212_v63 = vmax.f32 %v1988_v52, 0.0 }
 0x3af   : > { %v7583_v1 = vpop.f32.mrf.mxu1  ;;  %7800 = vmatprep.subr.bf16.mxu0 %v8514_v41 }
 0x3b0   : > { %v1991_v53 = vadd.f32 %v7583_v1, %v9205_v14  ;;  %7656 = vmatprep.mubr.bf16.mxu0 %v2268_v60  ;;  %v2210_v62 = vmax.f32 %v1980_v50, 0.0 }
 0x3b1   : > { %v1982_v57 = vpop.f32.mrf.mxu1  ;;  %7657 = vmatmul.mubr.bf16.gmra.mxu0 %v2269_v48 }
 0x3b2   : > { %v1983_v58 = vadd.f32 %v9205_v14, %v1982_v57  ;;  %7801 = vmatpush3.bf16.msra.mxu0 %v8514_v41  ;;  %v2213_v61 = vmax.f32 %v1991_v53, 0.0 }
 0x3b3   : > { %v7586_v15 = vpop.f32.mrf.mxu1  ;;  %7802 = vmatprep.subr.bf16.mxu0 %v8516_v11 }
 0x3b4   : > { %v2211_v29 = vmax.f32 %v1983_v58, 0.0  ;;  %v2271_v2 = vpack.c.bf16 %v2213_v61, %v2212_v63  ;;  %v2004_v10 = vadd.f32 %v7586_v15, %v9205_v14 }
 0x3b5   : > { %v1995_v47 = vpop.f32.mrf.mxu1 }
 0x3b6   : > { %v2270_v0 = vpack.c.bf16 %v2211_v29, %v2210_v62  ;;  %7803 = vmatpush3.bf16.msra.mxu0 %v8516_v11  ;;  %v1996_v8 = vadd.f32 %v9205_v14, %v1995_v47  ;;  %v2216_v16 = vmax.f32 %v2004_v10, 0.0 }
 0x3b7   : > { %v7587_v3 = vpop.f32.mrf.mxu1  ;;  %7804 = vmatprep.subr.bf16.mxu0 %v8518_v33 }
 0x3b8   : > { %v2007_v9 = vadd.f32 %v7587_v3, %v9205_v14  ;;  %7660 = vmatprep.mubr.bf16.mxu0 %v2270_v0  ;;  %v2214_v24 = vmax.f32 %v1996_v8, 0.0 }
 0x3b9   : > { %v1998_v55 = vpop.f32.mrf.mxu1  ;;  %7661 = vmatmul.mubr.bf16.gmra.mxu0 %v2271_v2 }
 0x3ba   : > { %v1999_v12 = vadd.f32 %v9205_v14, %v1998_v55  ;;  %7805 = vmatpush3.bf16.msra.mxu0 %v8518_v33  ;;  %v2217_v51 = vmax.f32 %v2007_v9, 0.0 }
 0x3bb   : > { %v7590_v13 = vpop.f32.mrf.mxu1  ;;  %7806 = vmatprep.subr.bf16.mxu0 %v8520_v7 }
 0x3bc   : > { %v2215_v56 = vmax.f32 %v1999_v12, 0.0  ;;  %v2273_v18 = vpack.c.bf16 %v2217_v51, %v2216_v16  ;;  %v2020_v25 = vadd.f32 %v7590_v13, %v9205_v14 }
 0x3bd   : > { %v2011_v59 = vpop.f32.mrf.mxu1 }
 0x3be   : > { %v2272_v17 = vpack.c.bf16 %v2215_v56, %v2214_v24  ;;  %7807 = vmatpush3.bf16.msra.mxu0 %v8520_v7  ;;  %v2012_v22 = vadd.f32 %v9205_v14, %v2011_v59  ;;  %v2220_v6 = vmax.f32 %v2020_v25, 0.0 }
 0x3bf   : > { %v7591_v19 = vpop.f32.mrf.mxu1  ;;  %7808 = vmatprep.subr.bf16.mxu0 %v8522_v5 }
 0x3c0   : > { %v2023_v23 = vadd.f32 %v7591_v19, %v9205_v14  ;;  %7664 = vmatprep.mubr.bf16.mxu0 %v2272_v17  ;;  %v2218_v30 = vmax.f32 %v2012_v22, 0.0 }
 0x3c1   : > { %v2014_v42 = vpop.f32.mrf.mxu1  ;;  %7665 = vmatmul.mubr.bf16.gmra.mxu0 %v2273_v18 }
 0x3c2   : > { %v2015_v26 = vadd.f32 %v9205_v14, %v2014_v42  ;;  %7809 = vmatpush3.bf16.msra.mxu0 %v8522_v5  ;;  %v2221_v4 = vmax.f32 %v2023_v23, 0.0 }
 0x3c3   : > { %v7594_v27 = vpop.f32.mrf.mxu1  ;;  %7810 = vmatprep.subr.bf16.mxu0 %v8524_v21 }
 0x3c4   : > { %v2219_v31 = vmax.f32 %v2015_v26, 0.0  ;;  %v2275_v20 = vpack.c.bf16 %v2221_v4, %v2220_v6  ;;  %v2036_v28 = vadd.f32 %v7594_v27, %v9205_v14 }
 0x3c5   : > { %v2027_v32 = vpop.f32.mrf.mxu1 }
 0x3c6   : > { %v2274_v34 = vpack.c.bf16 %v2219_v31, %v2218_v30  ;;  %7811 = vmatpush3.bf16.msra.mxu0 %v8524_v21  ;;  %v2028_v49 = vadd.f32 %v9205_v14, %v2027_v32  ;;  %v2224_v44 = vmax.f32 %v2036_v28, 0.0 }
 0x3c7   : > { %v7595_v35 = vpop.f32.mrf.mxu1 }
 0x3c8   : > { %v2039_v36 = vadd.f32 %v7595_v35, %v9205_v14  ;;  %7668 = vmatprep.mubr.bf16.mxu0 %v2274_v34  ;;  %v2222_v41 = vmax.f32 %v2028_v49, 0.0 }
 0x3c9   : > { %v2030_v54 = vpop.f32.mrf.mxu1  ;;  %7669 = vmatmul.mubr.bf16.gmra.mxu0 %v2275_v20 }
 0x3ca   : > { %v2031_v37 = vadd.f32 %v9205_v14, %v2030_v54  ;;  %v2225_v39 = vmax.f32 %v2039_v36, 0.0 }
 0x3cb   : > { %v7598_v40 = vpop.f32.mrf.mxu1 }
 0x3cc   : > { %v2223_v43 = vmax.f32 %v2031_v37, 0.0  ;;  %v2277_v46 = vpack.c.bf16 %v2225_v39, %v2224_v44  ;;  %v2052_v11 = vadd.f32 %v7598_v40, %v9205_v14 }
 0x3cd   : > { %v2043_v45 = vpop.f32.mrf.mxu1 }
 0x3ce   : > { %v2276_v38 = vpack.c.bf16 %v2223_v43, %v2222_v41  ;;  %v2044_v48 = vadd.f32 %v9205_v14, %v2043_v45  ;;  %v2228_v15 = vmax.f32 %v2052_v11, 0.0 }
 0x3cf   : > { %v7599_v60 = vpop.f32.mrf.mxu1 }
 0x3d0   : > { %v2055_v1 = vadd.f32 %v7599_v60, %v9205_v14  ;;  %7672 = vmatprep.mubr.bf16.mxu0 %v2276_v38  ;;  %v2226_v58 = vmax.f32 %v2044_v48, 0.0 }
 0x3d1   : > { %v2046_v50 = vpop.f32.mrf.mxu1  ;;  %7673 = vmatmul.mubr.bf16.gmra.mxu0 %v2277_v46 }
 0x3d2   : > { %v2047_v53 = vadd.f32 %v9205_v14, %v2046_v50  ;;  %v2229_v52 = vmax.f32 %v2055_v1, 0.0 }
 0x3d3   : > { %v7602_v57 = vpop.f32.mrf.mxu1 }
 0x3d4   : > { %v2227_v61 = vmax.f32 %v2047_v53, 0.0  ;;  %v2279_v29 = vpack.c.bf16 %v2229_v52, %v2228_v15  ;;  %v2068_v2 = vadd.f32 %v7602_v57, %v9205_v14 }
 0x3d5   : > { %v2059_v33 = vpop.f32.mrf.mxu1 }
 0x3d6   : > { %v2278_v62 = vpack.c.bf16 %v2227_v61, %v2226_v58  ;;  %v2060_v47 = vadd.f32 %v9205_v14, %v2059_v33  ;;  %v2232_v12 = vmax.f32 %v2068_v2, 0.0 }
 0x3d7   : > { %v7603_v63 = vpop.f32.mrf.mxu1 }
 0x3d8   : > { %v2071_v0 = vadd.f32 %v7603_v63, %v9205_v14  ;;  %7676 = vmatprep.mubr.bf16.mxu0 %v2278_v62  ;;  %v2230_v10 = vmax.f32 %v2060_v47, 0.0 }
 0x3d9   : > { %v2062_v3 = vpop.f32.mrf.mxu1  ;;  %7677 = vmatmul.mubr.bf16.gmra.mxu0 %v2279_v29 }
 0x3da   : > { %v2063_v7 = vadd.f32 %v9205_v14, %v2062_v3  ;;  %v2233_v8 = vmax.f32 %v2071_v0, 0.0 }
 0x3db   : > { %v7606_v9 = vpop.f32.mrf.mxu1 }
 0x3dc   : > { %v2231_v55 = vmax.f32 %v2063_v7, 0.0  ;;  %v2281_v5 = vpack.c.bf16 %v2233_v8, %v2232_v12  ;;  %v2084_v59 = vadd.f32 %v7606_v9, %v9205_v14 }
 0x3dd   : > { %v2075_v51 = vpop.f32.mrf.mxu1 }
 0x3de   : > { %v2280_v13 = vpack.c.bf16 %v2231_v55, %v2230_v10  ;;  %v2076_v56 = vadd.f32 %v9205_v14, %v2075_v51  ;;  %v2236_v25 = vmax.f32 %v2084_v59, 0.0 }
 0x3df   : > { %v7607_v24 = vpop.f32.mrf.mxu1 }
 0x3e0   : > { %v2087_v16 = vadd.f32 %v7607_v24, %v9205_v14  ;;  %7680 = vmatprep.mubr.bf16.mxu0 %v2280_v13  ;;  %v2234_v22 = vmax.f32 %v2076_v56, 0.0 }
 0x3e1   : > { %v2078_v17 = vpop.f32.mrf.mxu1  ;;  %7681 = vmatmul.mubr.bf16.gmra.mxu0 %v2281_v5 }
 0x3e2   : > { %v2079_v18 = vadd.f32 %v9205_v14, %v2078_v17  ;;  %v2237_v19 = vmax.f32 %v2087_v16, 0.0 }
 0x3e3   : > { %v7610_v21 = vpop.f32.mrf.mxu1 }
 0x3e4   : > { %v2235_v23 = vmax.f32 %v2079_v18, 0.0  ;;  %v2283_v4 = vpack.c.bf16 %v2237_v19, %v2236_v25  ;;  %v2100_v6 = vadd.f32 %v7610_v21, %v9205_v14 }
 0x3e5   : > { %v2091_v42 = vpop.f32.mrf.mxu1 }
 0x3e6   : > { %v2282_v26 = vpack.c.bf16 %v2235_v23, %v2234_v22  ;;  %v2092_v30 = vadd.f32 %v9205_v14, %v2091_v42  ;;  %v2240_v28 = vmax.f32 %v2100_v6, 0.0 }
 0x3e7   : > { %v7611_v27 = vpop.f32.mrf.mxu1 }
 0x3e8   : > { %v2103_v31 = vadd.f32 %v7611_v27, %v9205_v14  ;;  %7684 = vmatprep.mubr.bf16.mxu0 %v2282_v26  ;;  %v2238_v49 = vmax.f32 %v2092_v30, 0.0 }
 0x3e9   : > { %v2094_v32 = vpop.f32.mrf.mxu1  ;;  %7685 = vmatmul.mubr.bf16.gmra.mxu0 %v2283_v4 }
 0x3ea   : > { %v2095_v34 = vadd.f32 %v9205_v14, %v2094_v32  ;;  %v2241_v20 = vmax.f32 %v2103_v31, 0.0 }
 0x3eb   : > { %v7614_v35 = vpop.f32.mrf.mxu1 }
 0x3ec   : > { %v2239_v36 = vmax.f32 %v2095_v34, 0.0  ;;  %v2285_v39 = vpack.c.bf16 %v2241_v20, %v2240_v28  ;;  %v2116_v44 = vadd.f32 %v7614_v35, %v9205_v14 }
 0x3ed   : > { %v2107_v54 = vpop.f32.mrf.mxu1 }
 0x3ee   : > { %v2284_v37 = vpack.c.bf16 %v2239_v36, %v2238_v49  ;;  %v2108_v41 = vadd.f32 %v9205_v14, %v2107_v54  ;;  %v2244_v11 = vmax.f32 %v2116_v44, 0.0 }
 0x3ef   : > { %v7615_v40 = vpop.f32.mrf.mxu1 }
 0x3f0   : > { %v2119_v43 = vadd.f32 %v7615_v40, %v9205_v14  ;;  %7688 = vmatprep.mubr.bf16.mxu0 %v2284_v37  ;;  %v2242_v48 = vmax.f32 %v2108_v41, 0.0 }
 0x3f1   : > { %v2110_v45 = vpop.f32.mrf.mxu1  ;;  %7689 = vmatmul.mubr.bf16.gmra.mxu0 %v2285_v39 }
 0x3f2   : > { %v2111_v38 = vadd.f32 %v9205_v14, %v2110_v45  ;;  %v2245_v46 = vmax.f32 %v2119_v43, 0.0 }
 0x3f3   : > { %v7618_v60 = vpop.f32.mrf.mxu1 }
 0x3f4   : > { %v2243_v1 = vmax.f32 %v2111_v38, 0.0  ;;  %v2287_v52 = vpack.c.bf16 %v2245_v46, %v2244_v11  ;;  %v2132_v15 = vadd.f32 %v7618_v60, %v9205_v14 }
 0x3f5   : > { %v2123_v50 = vpop.f32.mrf.mxu1 }
 0x3f6   : > { %v2286_v53 = vpack.c.bf16 %v2243_v1, %v2242_v48  ;;  %v2124_v58 = vadd.f32 %v9205_v14, %v2123_v50  ;;  %v2248_v2 = vmax.f32 %v2132_v15, 0.0 }
 0x3f7   : > { %v7619_v57 = vpop.f32.mrf.mxu1 }
 0x3f8   : > { %v2135_v61 = vadd.f32 %v7619_v57, %v9205_v14  ;;  %7692 = vmatprep.mubr.bf16.mxu0 %v2286_v53  ;;  %v2246_v47 = vmax.f32 %v2124_v58, 0.0 }
 0x3f9   : > { %v2126_v33 = vpop.f32.mrf.mxu1  ;;  %7693 = vmatmul.mubr.bf16.gmra.mxu0 %v2287_v52 }
 0x3fa   : > { %v2127_v62 = vadd.f32 %v9205_v14, %v2126_v33  ;;  %v2249_v29 = vmax.f32 %v2135_v61, 0.0 }
 0x3fb   : > { %v7622_v63 = vpop.f32.mrf.mxu1 }
 0x3fc   : > { %v2247_v0 = vmax.f32 %v2127_v62, 0.0  ;;  %v2289_v8 = vpack.c.bf16 %v2249_v29, %v2248_v2  ;;  %v2148_v12 = vadd.f32 %v7622_v63, %v9205_v14  ;;  %v8573_v62 = vld [vmem:[%s8905_s5] sm:$0xff]   ;;  %v8574_v29 = vld [vmem:[%s8905_s5 + $0x8] sm:$0xff]   ;;  %v8575_v63 = vld [vmem:[%s8905_s5 + $0x10] sm:$0xff]  }
 0x3fd   : > { %v2139_v3 = vpop.f32.mrf.mxu1  ;;  %v8579_v2 = vld [vmem:[%s8905_s5 + $0x30] sm:$0xff]  }
 0x3fe   : > { %v2288_v7 = vpack.c.bf16 %v2247_v0, %v2246_v47  ;;  %v2140_v10 = vadd.f32 %v9205_v14, %v2139_v3  ;;  %v2252_v59 = vmax.f32 %v2148_v12, 0.0  ;;  %v8577_v47 = vld [vmem:[%s8905_s5 + $0x20] sm:$0xff]   ;;  %v8578_v0 = vld [vmem:[%s8905_s5 + $0x28] sm:$0xff]   ;;  %v8580_v3 = vld [vmem:[%s8905_s5 + $0x38] sm:$0xff]  }
 0x3ff   : > { %v7623_v9 = vpop.f32.mrf.mxu1  ;;  %v8585_v12 = vld [vmem:[%s8905_s5 + $0x60] sm:$0xff]  }
 0x400   : > { %v2151_v55 = vadd.f32 %v7623_v9, %v9205_v14  ;;  %7696 = vmatprep.mubr.bf16.mxu0 %v2288_v7  ;;  %v2250_v56 = vmax.f32 %v2140_v10, 0.0  ;;  %v8581_v7 = vld [vmem:[%s8905_s5 + $0x40] sm:$0xff]   ;;  %v8583_v9 = vld [vmem:[%s8905_s5 + $0x50] sm:$0xff]   ;;  %v8525_v10 = vld [vmem:[#allocation4 + $0x1f8] sm:$0xff]  }
 0x401   : > { %v2142_v51 = vpop.f32.mrf.mxu1  ;;  %7697 = vmatmul.mubr.bf16.gmra.mxu0 %v2289_v8  ;;  %v8582_v8 = vld [vmem:[%s8905_s5 + $0x48] sm:$0xff]   ;;  %7876 = vmatprep.subr.bf16.mxu1 %v8525_v10 }
 0x402   : > { %v2143_v13 = vadd.f32 %v9205_v14, %v2142_v51  ;;  %v2253_v5 = vmax.f32 %v2151_v55, 0.0  ;;  %v8584_v55 = vld [vmem:[%s8905_s5 + $0x58] sm:$0xff]   ;;  %v8586_v51 = vld [vmem:[%s8905_s5 + $0x68] sm:$0xff]  }
 0x403   : > { %v7626_v24 = vpop.f32.mrf.mxu1 }
 0x404   : > { %v2251_v16 = vmax.f32 %v2143_v13, 0.0  ;;  %v2291_v19 = vpack.c.bf16 %v2253_v5, %v2252_v59  ;;  %v2164_v25 = vadd.f32 %v7626_v24, %v9205_v14  ;;  %v8587_v13 = vld [vmem:[%s8905_s5 + $0x70] sm:$0xff]   ;;  %v8588_v5 = vld [vmem:[%s8905_s5 + $0x78] sm:$0xff]   ;;  %v8589_v24 = vld [vmem:[%s8905_s5 + $0x80] sm:$0xff]  }
 0x405   : > { %v2155_v17 = vpop.f32.mrf.mxu1  ;;  %v8591_v59 = vld [vmem:[%s8905_s5 + $0x90] sm:$0xff]  }
 0x406   : > { %v2290_v18 = vpack.c.bf16 %v2251_v16, %v2250_v56  ;;  %v2156_v22 = vadd.f32 %v9205_v14, %v2155_v17  ;;  %v2256_v6 = vmax.f32 %v2164_v25, 0.0  ;;  %v8590_v16 = vld [vmem:[%s8905_s5 + $0x88] sm:$0xff]  }
 0x407   : > { %v7627_v21 = vpop.f32.mrf.mxu1 }
 0x408   : > { %v2167_v23 = vadd.f32 %v7627_v21, %v9205_v14  ;;  %7700 = vmatprep.mubr.bf16.mxu0 %v2290_v18  ;;  %v2254_v30 = vmax.f32 %v2156_v22, 0.0  ;;  %v9290_v18 = vld [vmem:[#allocation6 + $0x4] ss:$0 sm:$0xff] }
 0x409   : > { %v2158_v42 = vpop.f32.mrf.mxu1  ;;  %7701 = vmatmul.mubr.bf16.gmra.mxu0 %v2291_v19 }
 0x40a   : > { %v2159_v26 = vadd.f32 %v9205_v14, %v2158_v42  ;;  %v2257_v4 = vmax.f32 %v2167_v23, 0.0 }
 0x40b   : > { %v7630_v27 = vpop.f32.mrf.mxu1 }
 0x40c   : > { %v2255_v31 = vmax.f32 %v2159_v26, 0.0  ;;  %v2293_v20 = vpack.c.bf16 %v2257_v4, %v2256_v6  ;;  %v2180_v28 = vadd.f32 %v7630_v27, %v9205_v14  ;;  %v8592_v27 = vld [vmem:[%s8905_s5 + $0x98] sm:$0xff]   ;;  %v8593_v6 = vld [vmem:[%s8905_s5 + $0xa0] sm:$0xff]  }
 0x40d   : > { %v2171_v32 = vpop.f32.mrf.mxu1 }
 0x40e   : > { %v2292_v34 = vpack.c.bf16 %v2255_v31, %v2254_v30  ;;  %v2172_v49 = vadd.f32 %v9205_v14, %v2171_v32  ;;  %v2260_v44 = vmax.f32 %v2180_v28, 0.0 }
 0x40f   : > { %v7631_v35 = vpop.f32.mrf.mxu1 }
 0x410   : > { %v2183_v36 = vadd.f32 %v7631_v35, %v9205_v14  ;;  %7704 = vmatprep.mubr.bf16.mxu0 %v2292_v34  ;;  %v2258_v41 = vmax.f32 %v2172_v49, 0.0 }
 0x411   : > { %v2174_v54 = vpop.f32.mrf.mxu1  ;;  %7705 = vmatmul.mubr.bf16.gmra.mxu0 %v2293_v20 }
 0x412   : > { %v2175_v37 = vadd.f32 %v9205_v14, %v2174_v54  ;;  %v2261_v39 = vmax.f32 %v2183_v36, 0.0  ;;  %v8526_v36 = vld [vmem:[#allocation4 + $0x1f0] sm:$0xff]  }
 0x413   : > { %v7634_v40 = vpop.f32.mrf.mxu1 }
 0x414   : > { %v2259_v43 = vmax.f32 %v2175_v37, 0.0  ;;  %v2295_v46 = vpack.c.bf16 %v2261_v39, %v2260_v44  ;;  %v2196_v11 = vadd.f32 %v7634_v40, %v9205_v14  ;;  %v8594_v44 = vld [vmem:[%s8905_s5 + $0xa8] sm:$0xff]  }
 0x415   : > { %v2187_v45 = vpop.f32.mrf.mxu1 }
 0x416   : > { %v2294_v38 = vpack.c.bf16 %v2259_v43, %v2258_v41  ;;  %v2188_v48 = vadd.f32 %v9205_v14, %v2187_v45  ;;  %v2264_v61 = vmax.f32 %v2196_v11, 0.0  ;;  %v8527_v45 = vld [vmem:[#allocation4 + $0x1e8] sm:$0xff]  }
 0x417   : > { %v7635_v60 = vpop.f32.mrf.mxu1 }
 0x418   : > { %v2199_v1 = vadd.f32 %v7635_v60, %v9205_v14  ;;  %7708 = vmatprep.mubr.bf16.mxu0 %v2294_v38  ;;  %v2262_v57 = vmax.f32 %v2188_v48, 0.0  ;;  %v8595_v60 = vld [vmem:[%s8905_s5 + $0xb0] sm:$0xff]  }
 0x419   : > { %v2190_v50 = vpop.f32.mrf.mxu1  ;;  %7709 = vmatmul.mubr.bf16.gmra.mxu0 %v2295_v46 }
 0x41a   : > { %v2191_v53 = vadd.f32 %v9205_v14, %v2190_v50  ;;  %v2265_v52 = vmax.f32 %v2199_v1, 0.0  ;;  %v8576_v14 = vld [vmem:[%s8905_s5 + $0x18] sm:$0xff]  }
 0x41c   : > { %v2263_v58 = vmax.f32 %v2191_v53, 0.0  ;;  %v2297_v33 = vpack.c.bf16 %v2265_v52, %v2264_v61  ;;  %v8528_v52 = vld [vmem:[#allocation4 + $0x1e0] sm:$0xff]  }
 0x41e   : > { %v2296_v15 = vpack.c.bf16 %v2263_v58, %v2262_v57 }
 0x420   : > { %7712 = vmatprep.mubr.bf16.mxu0 %v2296_v15 }
 0x421   : > { %7713 = vmatmul.mubr.bf16.gmra.mxu0 %v2297_v33 }
 0x422   : > { %7812 = vmatprep.mubr.bf16.mxu0 %v8573_v62 }
 0x429   : > { %7813 = vmatmul.mubr.bf16.vlgmr.msra.gmra.mxu0 %v8574_v29 }
 0x42a   : > { %7816 = vmatprep.mubr.bf16.mxu0 %v8575_v63  ;;  %v8596_v63 = vld [vmem:[%s8905_s5 + $0xb8] sm:$0xff]  }
 0x431   : > { %7817 = vmatmul.mubr.bf16.gmra.mxu0 %v8576_v14  ;;  %v8529_v14 = vld [vmem:[#allocation4 + $0x1d8] sm:$0xff]  }
 0x432   : > { %7820 = vmatprep.mubr.bf16.mxu0 %v8577_v47 }
 0x439   : > { %7821 = vmatmul.mubr.bf16.gmra.mxu0 %v8578_v0 }
 0x43a   : > { %7824 = vmatprep.mubr.bf16.mxu0 %v8579_v2  ;;  %v8597_v2 = vld [vmem:[%s8905_s5 + $0xc0] sm:$0xff]  }
 0x441   : > { %7825 = vmatmul.mubr.bf16.gmra.mxu0 %v8580_v3 }
 0x442   : > { %7828 = vmatprep.mubr.bf16.mxu0 %v8581_v7 }
 0x449   : > { %7829 = vmatmul.mubr.bf16.gmra.mxu0 %v8582_v8 }
 0x44a   : > { %7832 = vmatprep.mubr.bf16.mxu0 %v8583_v9 }
 0x451   : > { %7833 = vmatmul.mubr.bf16.gmra.mxu0 %v8584_v55  ;;  %v8530_v55 = vld [vmem:[#allocation4 + $0x1d0] sm:$0xff]  }
 0x452   : > { %7836 = vmatprep.mubr.bf16.mxu0 %v8585_v12 }
 0x459   : > { %7837 = vmatmul.mubr.bf16.gmra.mxu0 %v8586_v51 }
 0x45a   : > { %7840 = vmatprep.mubr.bf16.mxu0 %v8587_v13 }
 0x461   : > { %7841 = vmatmul.mubr.bf16.gmra.mxu0 %v8588_v5 }
 0x462   : > { %7844 = vmatprep.mubr.bf16.mxu0 %v8589_v24 }
 0x469   : > { %v7654_v56 = vpop.f32.mrf.mxu0  ;;  %7845 = vmatmul.mubr.bf16.gmra.mxu0 %v8590_v16 }
 0x46a   : > { %7848 = vmatprep.mubr.bf16.mxu0 %v8591_v59  ;;  %v2411_v23 = vadd.f32 %v7654_v56, %v9290_v18  ;;  %v8598_v59 = vld [vmem:[%s8905_s5 + $0xc8] sm:$0xff]  }
 0x46b   : > { %v2402_v17 = vpop.f32.mrf.mxu0 }
 0x46c   : > { %v2403_v21 = vadd.f32 %v9290_v18, %v2402_v17  ;;  %v2659_v32 = vmax.f32 %v2411_v23, 0.0  ;;  %v8531_v17 = vld [vmem:[#allocation4 + $0x1c8] sm:$0xff]  }
 0x46d   : > { %v7655_v19 = vpop.f32.mrf.mxu0 }
 0x46e   : > { %v2414_v22 = vadd.f32 %v7655_v19, %v9290_v18  ;;  %v2657_v30 = vmax.f32 %v2403_v21, 0.0 }
 0x46f   : > { %v2405_v25 = vpop.f32.mrf.mxu0 }
 0x470   : > { %v2406_v42 = vadd.f32 %v9290_v18, %v2405_v25  ;;  %v2660_v26 = vmax.f32 %v2414_v22, 0.0  ;;  %v8599_v22 = vld [vmem:[%s8905_s5 + $0xd0] sm:$0xff]  }
 0x471   : > { %v7658_v4 = vpop.f32.mrf.mxu0  ;;  %7849 = vmatmul.mubr.bf16.gmra.mxu0 %v8592_v27  ;;  %v8532_v27 = vld [vmem:[#allocation4 + $0x1c0] sm:$0xff]  }
 0x472   : > { %v2658_v31 = vmax.f32 %v2406_v42, 0.0  ;;  %7852 = vmatprep.mubr.bf16.mxu0 %v8593_v6  ;;  %v2722_v35 = vpack.c.bf16 %v2660_v26, %v2659_v32  ;;  %v2427_v37 = vadd.f32 %v7658_v4, %v9290_v18 }
 0x473   : > { %v2418_v34 = vpop.f32.mrf.mxu0 }
 0x474   : > { %v2721_v20 = vpack.c.bf16 %v2658_v31, %v2657_v30  ;;  %v2419_v28 = vadd.f32 %v9290_v18, %v2418_v34  ;;  %v2663_v48 = vmax.f32 %v2427_v37, 0.0 }
 0x475   : > { %v7659_v49 = vpop.f32.mrf.mxu0 }
 0x476   : > { %v2430_v54 = vadd.f32 %v7659_v49, %v9290_v18  ;;  %7732 = vmatprep.mubr.bf16.mxu1 %v2721_v20  ;;  %v2661_v38 = vmax.f32 %v2419_v28, 0.0  ;;  %v8600_v49 = vld [vmem:[%s8905_s5 + $0xd8] sm:$0xff]  }
 0x477   : > { %v2421_v39 = vpop.f32.mrf.mxu0  ;;  %7733 = vmatmul.mubr.bf16.vlgmr.msra.gmra.mxu1 %v2722_v35 }
 0x478   : > { %v2422_v40 = vadd.f32 %v9290_v18, %v2421_v39  ;;  %7877 = vmatpush3.bf16.msra.mxu1 %v8525_v10  ;;  %v2664_v41 = vmax.f32 %v2430_v54, 0.0  ;;  %v8601_v54 = vld [vmem:[%s8905_s5 + $0xe0] sm:$0xff]  }
 0x479   : > { %v7662_v43 = vpop.f32.mrf.mxu0  ;;  %7853 = vmatmul.mubr.bf16.gmra.mxu0 %v8594_v44  ;;  %7878 = vmatprep.subr.bf16.mxu1 %v8526_v36 }
 0x47a   : > { %v2662_v46 = vmax.f32 %v2422_v40, 0.0  ;;  %7856 = vmatprep.mubr.bf16.mxu0 %v8595_v60  ;;  %v2724_v50 = vpack.c.bf16 %v2664_v41, %v2663_v48  ;;  %v2443_v61 = vadd.f32 %v7662_v43, %v9290_v18 }
 0x47b   : > { %v2434_v1 = vpop.f32.mrf.mxu0 }
 0x47c   : > { %v2723_v11 = vpack.c.bf16 %v2662_v46, %v2661_v38  ;;  %7879 = vmatpush3.bf16.msra.mxu1 %v8526_v36  ;;  %v2435_v57 = vadd.f32 %v9290_v18, %v2434_v1  ;;  %v2667_v3 = vmax.f32 %v2443_v61, 0.0 }
 0x47d   : > { %v7663_v53 = vpop.f32.mrf.mxu0  ;;  %7880 = vmatprep.subr.bf16.mxu1 %v8527_v45 }
 0x47e   : > { %v2446_v58 = vadd.f32 %v7663_v53, %v9290_v18  ;;  %7736 = vmatprep.mubr.bf16.mxu1 %v2723_v11  ;;  %v2665_v47 = vmax.f32 %v2435_v57, 0.0  ;;  %v8602_v11 = vld [vmem:[%s8905_s5 + $0xe8] sm:$0xff]  }
 0x47f   : > { %v2437_v15 = vpop.f32.mrf.mxu0  ;;  %7737 = vmatmul.mubr.bf16.gmra.mxu1 %v2724_v50 }
 0x480   : > { %v2438_v33 = vadd.f32 %v9290_v18, %v2437_v15  ;;  %7881 = vmatpush3.bf16.msra.mxu1 %v8527_v45  ;;  %v2668_v62 = vmax.f32 %v2446_v58, 0.0 }
 0x481   : > { %v7666_v29 = vpop.f32.mrf.mxu0  ;;  %7857 = vmatmul.mubr.bf16.gmra.mxu0 %v8596_v63  ;;  %7882 = vmatprep.subr.bf16.mxu1 %v8528_v52 }
 0x482   : > { %v2666_v0 = vmax.f32 %v2438_v33, 0.0  ;;  %7860 = vmatprep.mubr.bf16.mxu0 %v8597_v2  ;;  %v2726_v9 = vpack.c.bf16 %v2668_v62, %v2667_v3  ;;  %v2459_v13 = vadd.f32 %v7666_v29, %v9290_v18  ;;  %v8604_v3 = vld [vmem:[%s8905_s5 + $0xf8] sm:$0xff]  }
 0x483   : > { %v2450_v7 = vpop.f32.mrf.mxu0 }
 0x484   : > { %v2725_v8 = vpack.c.bf16 %v2666_v0, %v2665_v47  ;;  %7883 = vmatpush3.bf16.msra.mxu1 %v8528_v52  ;;  %v2451_v12 = vadd.f32 %v9290_v18, %v2450_v7  ;;  %v2671_v23 = vmax.f32 %v2459_v13, 0.0  ;;  %v8603_v52 = vld [vmem:[%s8905_s5 + $0xf0] sm:$0xff]  }
 0x485   : > { %v7667_v10 = vpop.f32.mrf.mxu0  ;;  %7884 = vmatprep.subr.bf16.mxu1 %v8529_v14 }
 0x486   : > { %v2462_v51 = vadd.f32 %v7667_v10, %v9290_v18  ;;  %7740 = vmatprep.mubr.bf16.mxu1 %v2725_v8  ;;  %v2669_v19 = vmax.f32 %v2451_v12, 0.0 }
 0x487   : > { %v2453_v5 = vpop.f32.mrf.mxu0  ;;  %7741 = vmatmul.mubr.bf16.gmra.mxu1 %v2726_v9 }
 0x488   : > { %v2454_v24 = vadd.f32 %v9290_v18, %v2453_v5  ;;  %7885 = vmatpush3.bf16.msra.mxu1 %v8529_v14  ;;  %v2672_v56 = vmax.f32 %v2462_v51, 0.0 }
 0x489   : > { %v7670_v16 = vpop.f32.mrf.mxu0  ;;  %7861 = vmatmul.mubr.bf16.gmra.mxu0 %v8598_v59  ;;  %7886 = vmatprep.subr.bf16.mxu1 %v8530_v55 }
 0x48a   : > { %v2670_v21 = vmax.f32 %v2454_v24, 0.0  ;;  %7864 = vmatprep.mubr.bf16.mxu0 %v8599_v22  ;;  %v2728_v26 = vpack.c.bf16 %v2672_v56, %v2671_v23  ;;  %v2475_v6 = vadd.f32 %v7670_v16, %v9290_v18 }
 0x48b   : > { %v2466_v25 = vpop.f32.mrf.mxu0 }
 0x48c   : > { %v2727_v42 = vpack.c.bf16 %v2670_v21, %v2669_v19  ;;  %7887 = vmatpush3.bf16.msra.mxu1 %v8530_v55  ;;  %v2467_v30 = vadd.f32 %v9290_v18, %v2466_v25  ;;  %v2675_v37 = vmax.f32 %v2475_v6, 0.0 }
 0x48d   : > { %v7671_v4 = vpop.f32.mrf.mxu0  ;;  %7888 = vmatprep.subr.bf16.mxu1 %v8531_v17 }
 0x48e   : > { %v2478_v31 = vadd.f32 %v7671_v4, %v9290_v18  ;;  %7744 = vmatprep.mubr.bf16.mxu1 %v2727_v42  ;;  %v2673_v36 = vmax.f32 %v2467_v30, 0.0 }
 0x48f   : > { %v2469_v32 = vpop.f32.mrf.mxu0  ;;  %7745 = vmatmul.mubr.bf16.gmra.mxu1 %v2728_v26 }
 0x490   : > { %v2470_v34 = vadd.f32 %v9290_v18, %v2469_v32  ;;  %7889 = vmatpush3.bf16.msra.mxu1 %v8531_v17  ;;  %v2676_v20 = vmax.f32 %v2478_v31, 0.0 }
 0x491   : > { %v7674_v35 = vpop.f32.mrf.mxu0  ;;  %7865 = vmatmul.mubr.bf16.gmra.mxu0 %v8600_v49  ;;  %7890 = vmatprep.subr.bf16.mxu1 %v8532_v27 }
 0x492   : > { %v2674_v28 = vmax.f32 %v2470_v34, 0.0  ;;  %7868 = vmatprep.mubr.bf16.mxu0 %v8601_v54  ;;  %v2730_v41 = vpack.c.bf16 %v2676_v20, %v2675_v37  ;;  %v2491_v38 = vadd.f32 %v7674_v35, %v9290_v18 }
 0x493   : > { %v2482_v39 = vpop.f32.mrf.mxu0 }
 0x494   : > { %v2729_v40 = vpack.c.bf16 %v2674_v28, %v2673_v36  ;;  %7891 = vmatpush3.bf16.msra.mxu1 %v8532_v27  ;;  %v2483_v44 = vadd.f32 %v9290_v18, %v2482_v39  ;;  %v2679_v57 = vmax.f32 %v2491_v38, 0.0 }
 0x495   : > { %v7675_v43 = vpop.f32.mrf.mxu0 }
 0x496   : > { %v2494_v45 = vadd.f32 %v7675_v43, %v9290_v18  ;;  %7748 = vmatprep.mubr.bf16.mxu1 %v2729_v40  ;;  %v2677_v50 = vmax.f32 %v2483_v44, 0.0 }
 0x497   : > { %v2485_v46 = vpop.f32.mrf.mxu0  ;;  %7749 = vmatmul.mubr.bf16.gmra.mxu1 %v2730_v41 }
 0x498   : > { %v2486_v60 = vadd.f32 %v9290_v18, %v2485_v46  ;;  %v2680_v48 = vmax.f32 %v2494_v45, 0.0 }
 0x499   : > { %v7678_v1 = vpop.f32.mrf.mxu0  ;;  %7869 = vmatmul.mubr.bf16.gmra.mxu0 %v8602_v11 }
 0x49a   : > { %v2678_v53 = vmax.f32 %v2486_v60, 0.0  ;;  %7872 = vmatprep.mubr.bf16.mxu0 %v8603_v52  ;;  %v2732_v15 = vpack.c.bf16 %v2680_v48, %v2679_v57  ;;  %v2507_v63 = vadd.f32 %v7678_v1, %v9290_v18 }
 0x49b   : > { %v2498_v58 = vpop.f32.mrf.mxu0 }
 0x49c   : > { %v2731_v61 = vpack.c.bf16 %v2678_v53, %v2677_v50  ;;  %v2499_v62 = vadd.f32 %v9290_v18, %v2498_v58  ;;  %v2683_v9 = vmax.f32 %v2507_v63, 0.0 }
 0x49d   : > { %v7679_v33 = vpop.f32.mrf.mxu0 }
 0x49e   : > { %v2510_v29 = vadd.f32 %v7679_v33, %v9290_v18  ;;  %7752 = vmatprep.mubr.bf16.mxu1 %v2731_v61  ;;  %v2681_v7 = vmax.f32 %v2499_v62, 0.0 }
 0x49f   : > { %v2501_v14 = vpop.f32.mrf.mxu0  ;;  %7753 = vmatmul.mubr.bf16.gmra.mxu1 %v2732_v15 }
 0x4a0   : > { %v2502_v47 = vadd.f32 %v9290_v18, %v2501_v14  ;;  %v2684_v0 = vmax.f32 %v2510_v29, 0.0 }
 0x4a1   : > { %v7682_v2 = vpop.f32.mrf.mxu0  ;;  %7873 = vmatmul.mubr.bf16.gmra.mxu0 %v8604_v3 }
 0x4a2   : > { %v2682_v8 = vmax.f32 %v2502_v47, 0.0  ;;  %v2734_v12 = vpack.c.bf16 %v2684_v0, %v2683_v9  ;;  %v2523_v24 = vadd.f32 %v7682_v2, %v9290_v18 }
 0x4a3   : > { %v2514_v10 = vpop.f32.mrf.mxu0 }
 0x4a4   : > { %v2733_v55 = vpack.c.bf16 %v2682_v8, %v2681_v7  ;;  %v2515_v13 = vadd.f32 %v9290_v18, %v2514_v10  ;;  %v2687_v22 = vmax.f32 %v2523_v24, 0.0 }
 0x4a5   : > { %v7683_v51 = vpop.f32.mrf.mxu0 }
 0x4a6   : > { %v2526_v5 = vadd.f32 %v7683_v51, %v9290_v18  ;;  %7756 = vmatprep.mubr.bf16.mxu1 %v2733_v55  ;;  %v2685_v19 = vmax.f32 %v2515_v13, 0.0 }
 0x4a7   : > { %v2517_v56 = vpop.f32.mrf.mxu0  ;;  %7757 = vmatmul.mubr.bf16.gmra.mxu1 %v2734_v12 }
 0x4a8   : > { %v2518_v16 = vadd.f32 %v9290_v18, %v2517_v56  ;;  %v2688_v59 = vmax.f32 %v2526_v5, 0.0 }
 0x4a9   : > { %v7686_v17 = vpop.f32.mrf.mxu0 }
 0x4aa   : > { %v2686_v21 = vmax.f32 %v2518_v16, 0.0  ;;  %v2736_v42 = vpack.c.bf16 %v2688_v59, %v2687_v22  ;;  %v2539_v30 = vadd.f32 %v7686_v17, %v9290_v18 }
 0x4ab   : > { %v2530_v23 = vpop.f32.mrf.mxu0 }
 0x4ac   : > { %v2735_v25 = vpack.c.bf16 %v2686_v21, %v2685_v19  ;;  %v2531_v4 = vadd.f32 %v9290_v18, %v2530_v23  ;;  %v2691_v49 = vmax.f32 %v2539_v30, 0.0 }
 0x4ad   : > { %v7687_v26 = vpop.f32.mrf.mxu0 }
 0x4ae   : > { %v2542_v27 = vadd.f32 %v7687_v26, %v9290_v18  ;;  %7760 = vmatprep.mubr.bf16.mxu1 %v2735_v25  ;;  %v2689_v20 = vmax.f32 %v2531_v4, 0.0 }
 0x4af   : > { %v2533_v31 = vpop.f32.mrf.mxu0  ;;  %7761 = vmatmul.mubr.bf16.gmra.mxu1 %v2736_v42 }
 0x4b0   : > { %v2534_v6 = vadd.f32 %v9290_v18, %v2533_v31  ;;  %v2692_v32 = vmax.f32 %v2542_v27, 0.0 }
 0x4b1   : > { %v7690_v34 = vpop.f32.mrf.mxu0 }
 0x4b2   : > { %v2690_v35 = vmax.f32 %v2534_v6, 0.0  ;;  %v2738_v54 = vpack.c.bf16 %v2692_v32, %v2691_v49  ;;  %v2555_v41 = vadd.f32 %v7690_v34, %v9290_v18 }
 0x4b3   : > { %v2546_v36 = vpop.f32.mrf.mxu0 }
 0x4b4   : > { %v2737_v28 = vpack.c.bf16 %v2690_v35, %v2689_v20  ;;  %v2547_v39 = vadd.f32 %v9290_v18, %v2546_v36  ;;  %v2695_v48 = vmax.f32 %v2555_v41, 0.0 }
 0x4b5   : > { %v7691_v37 = vpop.f32.mrf.mxu0 }
 0x4b6   : > { %v2558_v40 = vadd.f32 %v7691_v37, %v9290_v18  ;;  %7764 = vmatprep.mubr.bf16.mxu1 %v2737_v28  ;;  %v2693_v46 = vmax.f32 %v2547_v39, 0.0 }
 0x4b7   : > { %v2549_v43 = vpop.f32.mrf.mxu0  ;;  %7765 = vmatmul.mubr.bf16.gmra.mxu1 %v2738_v54 }
 0x4b8   : > { %v2550_v44 = vadd.f32 %v9290_v18, %v2549_v43  ;;  %v2696_v45 = vmax.f32 %v2558_v40, 0.0 }
 0x4b9   : > { %v7694_v38 = vpop.f32.mrf.mxu0 }
 0x4ba   : > { %v2694_v60 = vmax.f32 %v2550_v44, 0.0  ;;  %v2740_v50 = vpack.c.bf16 %v2696_v45, %v2695_v48  ;;  %v2571_v58 = vadd.f32 %v7694_v38, %v9290_v18 }
 0x4bb   : > { %v2562_v1 = vpop.f32.mrf.mxu0 }
 0x4bc   : > { %v2739_v11 = vpack.c.bf16 %v2694_v60, %v2693_v46  ;;  %v2563_v52 = vadd.f32 %v9290_v18, %v2562_v1  ;;  %v2699_v14 = vmax.f32 %v2571_v58, 0.0 }
 0x4bd   : > { %v7695_v53 = vpop.f32.mrf.mxu0 }
 0x4be   : > { %v2574_v57 = vadd.f32 %v7695_v53, %v9290_v18  ;;  %7768 = vmatprep.mubr.bf16.mxu1 %v2739_v11  ;;  %v2697_v29 = vmax.f32 %v2563_v52, 0.0 }
 0x4bf   : > { %v2565_v61 = vpop.f32.mrf.mxu0  ;;  %7769 = vmatmul.mubr.bf16.gmra.mxu1 %v2740_v50 }
 0x4c0   : > { %v2566_v15 = vadd.f32 %v9290_v18, %v2565_v61  ;;  %v2700_v33 = vmax.f32 %v2574_v57, 0.0 }
 0x4c1   : > { %v7698_v62 = vpop.f32.mrf.mxu0 }
 0x4c2   : > { %v2698_v63 = vmax.f32 %v2566_v15, 0.0  ;;  %v2742_v2 = vpack.c.bf16 %v2700_v33, %v2699_v14  ;;  %v2587_v9 = vadd.f32 %v7698_v62, %v9290_v18 }
 0x4c3   : > { %v2578_v47 = vpop.f32.mrf.mxu0 }
 0x4c4   : > { %v2741_v0 = vpack.c.bf16 %v2698_v63, %v2697_v29  ;;  %v2579_v7 = vadd.f32 %v9290_v18, %v2578_v47  ;;  %v2703_v24 = vmax.f32 %v2587_v9, 0.0 }
 0x4c5   : > { %v7699_v3 = vpop.f32.mrf.mxu0 }
 0x4c6   : > { %v2590_v8 = vadd.f32 %v7699_v3, %v9290_v18  ;;  %7772 = vmatprep.mubr.bf16.mxu1 %v2741_v0  ;;  %v2701_v13 = vmax.f32 %v2579_v7, 0.0 }
 0x4c7   : > { %v2581_v10 = vpop.f32.mrf.mxu0  ;;  %7773 = vmatmul.mubr.bf16.gmra.mxu1 %v2742_v2 }
 0x4c8   : > { %v2582_v55 = vadd.f32 %v9290_v18, %v2581_v10  ;;  %v2704_v12 = vmax.f32 %v2590_v8, 0.0 }
 0x4c9   : > { %v7702_v51 = vpop.f32.mrf.mxu0 }
 0x4ca   : > { %v2702_v5 = vmax.f32 %v2582_v55, 0.0  ;;  %v2744_v59 = vpack.c.bf16 %v2704_v12, %v2703_v24  ;;  %v2603_v22 = vadd.f32 %v7702_v51, %v9290_v18 }
 0x4cb   : > { %v2594_v56 = vpop.f32.mrf.mxu0 }
 0x4cc   : > { %v2743_v16 = vpack.c.bf16 %v2702_v5, %v2701_v13  ;;  %v2595_v19 = vadd.f32 %v9290_v18, %v2594_v56  ;;  %v2707_v30 = vmax.f32 %v2603_v22, 0.0 }
 0x4cd   : > { %v7703_v17 = vpop.f32.mrf.mxu0 }
 0x4ce   : > { %v2606_v21 = vadd.f32 %v7703_v17, %v9290_v18  ;;  %7776 = vmatprep.mubr.bf16.mxu1 %v2743_v16  ;;  %v2705_v4 = vmax.f32 %v2595_v19, 0.0 }
 0x4cf   : > { %v2597_v23 = vpop.f32.mrf.mxu0  ;;  %7777 = vmatmul.mubr.bf16.gmra.mxu1 %v2744_v59 }
 0x4d0   : > { %v2598_v25 = vadd.f32 %v9290_v18, %v2597_v23  ;;  %v2708_v42 = vmax.f32 %v2606_v21, 0.0 }
 0x4d1   : > { %v7706_v26 = vpop.f32.mrf.mxu0 }
 0x4d2   : > { %v2706_v27 = vmax.f32 %v2598_v25, 0.0  ;;  %v2746_v32 = vpack.c.bf16 %v2708_v42, %v2707_v30  ;;  %v2619_v49 = vadd.f32 %v7706_v26, %v9290_v18 }
 0x4d3   : > { %v2610_v31 = vpop.f32.mrf.mxu0 }
 0x4d4   : > { %v2745_v6 = vpack.c.bf16 %v2706_v27, %v2705_v4  ;;  %v2611_v20 = vadd.f32 %v9290_v18, %v2610_v31  ;;  %v2711_v41 = vmax.f32 %v2619_v49, 0.0 }
 0x4d5   : > { %v7707_v34 = vpop.f32.mrf.mxu0 }
 0x4d6   : > { %v2622_v35 = vadd.f32 %v7707_v34, %v9290_v18  ;;  %7780 = vmatprep.mubr.bf16.mxu1 %v2745_v6  ;;  %v2709_v39 = vmax.f32 %v2611_v20, 0.0  ;;  %v8533_v20 = vld [vmem:[#allocation4 + $0x238] sm:$0xff]  }
 0x4d7   : > { %v2613_v36 = vpop.f32.mrf.mxu0  ;;  %7781 = vmatmul.mubr.bf16.gmra.mxu1 %v2746_v32  ;;  %7956 = vmatprep.subr.bf16.mxu0 %v8533_v20 }
 0x4d8   : > { %v2614_v28 = vadd.f32 %v9290_v18, %v2613_v36  ;;  %v2712_v54 = vmax.f32 %v2622_v35, 0.0  ;;  %7957 = vmatpush3.bf16.msra.mxu0 %v8533_v20 }
 0x4d9   : > { %v7710_v37 = vpop.f32.mrf.mxu0 }
 0x4da   : > { %v2710_v40 = vmax.f32 %v2614_v28, 0.0  ;;  %v2748_v45 = vpack.c.bf16 %v2712_v54, %v2711_v41  ;;  %v2635_v48 = vadd.f32 %v7710_v37, %v9290_v18  ;;  %v8534_v54 = vld [vmem:[#allocation4 + $0x230] sm:$0xff]  }
 0x4db   : > { %v2626_v43 = vpop.f32.mrf.mxu0  ;;  %7958 = vmatprep.subr.bf16.mxu0 %v8534_v54 }
 0x4dc   : > { %v2747_v44 = vpack.c.bf16 %v2710_v40, %v2709_v39  ;;  %v2627_v46 = vadd.f32 %v9290_v18, %v2626_v43  ;;  %v2715_v58 = vmax.f32 %v2635_v48, 0.0  ;;  %7959 = vmatpush3.bf16.msra.mxu0 %v8534_v54  ;;  %v9425_v48 = vld [vmem:[#allocation6 + $0x5] ss:$0 sm:$0xff] }
 0x4dd   : > { %v7711_v38 = vpop.f32.mrf.mxu0 }
 0x4de   : > { %v2638_v60 = vadd.f32 %v7711_v38, %v9290_v18  ;;  %7784 = vmatprep.mubr.bf16.mxu1 %v2747_v44  ;;  %v2713_v52 = vmax.f32 %v2627_v46, 0.0  ;;  %v8535_v38 = vld [vmem:[#allocation4 + $0x228] sm:$0xff]  }
 0x4df   : > { %v2629_v1 = vpop.f32.mrf.mxu0  ;;  %7785 = vmatmul.mubr.bf16.gmra.mxu1 %v2748_v45  ;;  %7960 = vmatprep.subr.bf16.mxu0 %v8535_v38 }
 0x4e0   : > { %v2630_v11 = vadd.f32 %v9290_v18, %v2629_v1  ;;  %v2716_v50 = vmax.f32 %v2638_v60, 0.0  ;;  %7961 = vmatpush3.bf16.msra.mxu0 %v8535_v38 }
 0x4e1   : > { %v7714_v53 = vpop.f32.mrf.mxu0 }
 0x4e2   : > { %v2714_v57 = vmax.f32 %v2630_v11, 0.0  ;;  %v2750_v33 = vpack.c.bf16 %v2716_v50, %v2715_v58  ;;  %v2651_v14 = vadd.f32 %v7714_v53, %v9290_v18 }
 0x4e3   : > { %v2642_v61 = vpop.f32.mrf.mxu0 }
 0x4e4   : > { %v2749_v15 = vpack.c.bf16 %v2714_v57, %v2713_v52  ;;  %v2643_v29 = vadd.f32 %v9290_v18, %v2642_v61  ;;  %v2719_v9 = vmax.f32 %v2651_v14, 0.0 }
 0x4e5   : > { %v7715_v62 = vpop.f32.mrf.mxu0 }
 0x4e6   : > { %v2654_v63 = vadd.f32 %v7715_v62, %v9290_v18  ;;  %7788 = vmatprep.mubr.bf16.mxu1 %v2749_v15  ;;  %v2717_v7 = vmax.f32 %v2643_v29, 0.0  ;;  %v8536_v15 = vld [vmem:[#allocation4 + $0x220] sm:$0xff]  }
 0x4e7   : > { %v2645_v47 = vpop.f32.mrf.mxu0  ;;  %7789 = vmatmul.mubr.bf16.gmra.mxu1 %v2750_v33  ;;  %v8537_v33 = vld [vmem:[#allocation4 + $0x218] sm:$0xff]   ;;  %7962 = vmatprep.subr.bf16.mxu0 %v8536_v15 }
 0x4e8   : > { %v2646_v0 = vadd.f32 %v9290_v18, %v2645_v47  ;;  %v2720_v2 = vmax.f32 %v2654_v63, 0.0  ;;  %7963 = vmatpush3.bf16.msra.mxu0 %v8536_v15 }
 0x4e9   : > { %v7814_v3 = vpop.f32.mrf.mxu0  ;;  %7964 = vmatprep.subr.bf16.mxu0 %v8537_v33 }
 0x4ea   : > { %v2718_v8 = vmax.f32 %v2646_v0, 0.0  ;;  %v2752_v12 = vpack.c.bf16 %v2720_v2, %v2719_v9  ;;  %v8538_v9 = vld [vmem:[#allocation4 + $0x210] sm:$0xff]  }
 0x4eb   : > { %v3206_v10 = vpop.f32.mrf.mxu0 }
 0x4ec   : > { %v2751_v55 = vpack.c.bf16 %v2718_v8, %v2717_v7  ;;  %7965 = vmatpush3.bf16.msra.mxu0 %v8537_v33 }
 0x4ed   : > { %v7815_v51 = vpop.f32.mrf.mxu0  ;;  %7966 = vmatprep.subr.bf16.mxu0 %v8538_v9 }
 0x4ee   : > { %7792 = vmatprep.mubr.bf16.mxu1 %v2751_v55 }
 0x4ef   : > { %7793 = vmatmul.mubr.bf16.gmra.mxu1 %v2752_v12  ;;  %v3209_v13 = vpop.f32.mrf.mxu0 }
 0x4f0   : > { %7967 = vmatpush3.bf16.msra.mxu0 %v8538_v9 }
 0x4f1   : > { %v9369_v5 = vpop.f32.mrf.mxu0 }
 0x4f3   : > { %v3222_v24 = vpop.f32.mrf.mxu0 }
 0x4f5   : > { %v9371_v56 = vpop.f32.mrf.mxu0 }
 0x4f7   : > { %v9373_v16 = vpop.f32.mrf.mxu0 }
 0x4f9   : > { %v9375_v18 = vpop.f32.mrf.mxu0 }
 0x4fb   : > { %v9377_v59 = vpop.f32.mrf.mxu0 }
 0x4fd   : > { %v9379_v17 = vpop.f32.mrf.mxu0 }
 0x4ff   : > { %v9381_v19 = vpop.f32.mrf.mxu0 }
 0x501   : > { %v9383_v21 = vpop.f32.mrf.mxu0 }
 0x503   : > { %v9385_v22 = vpop.f32.mrf.mxu0 }
 0x505   : > { %v9387_v23 = vpop.f32.mrf.mxu0 }
 0x507   : > { %v9389_v25 = vpop.f32.mrf.mxu0 }
 0x509   : > { %v9391_v42 = vpop.f32.mrf.mxu0 }
 0x50b   : > { %v9393_v26 = vpop.f32.mrf.mxu0 }
 0x50d   : > { %v9395_v4 = vpop.f32.mrf.mxu0 }
 0x50f   : > { %v9397_v27 = vpop.f32.mrf.mxu0 }
 0x511   : > { %v9399_v30 = vpop.f32.mrf.mxu0 }
 0x513   : > { %v9401_v31 = vpop.f32.mrf.mxu0 }
 0x515   : > { %v9403_v6 = vpop.f32.mrf.mxu0 }
 0x517   : > { %v9405_v32 = vpop.f32.mrf.mxu0 }
 0x519   : > { %v9407_v34 = vpop.f32.mrf.mxu0 }
 0x51b   : > { %v9409_v35 = vpop.f32.mrf.mxu0 }
 0x51d   : > { %v9411_v49 = vpop.f32.mrf.mxu0 }
 0x51f   : > { %v9413_v36 = vpop.f32.mrf.mxu0 }
 0x521   : > { %v9415_v28 = vpop.f32.mrf.mxu0 }
 0x523   : > { %v9417_v37 = vpop.f32.mrf.mxu0 }
 0x525   : > { %v9419_v39 = vpop.f32.mrf.mxu0 }
 0x527   : > { %v9421_v40 = vpop.f32.mrf.mxu0 }
 0x529   : > { %v9423_v44 = vpop.f32.mrf.mxu0 }
 0x52b   : > { %v9427_v50 = vpop.f32.mrf.mxu0 }
 0x52d   : > { %v9433_v14 = vpop.f32.mrf.mxu0 }
 0x537   : > { %v7734_v41 = vpop.f32.mrf.mxu1 }
 0x538   : > { %v3215_v46 = vadd.f32 %v7814_v3, %v7734_v41 }
 0x539   : > { %v2869_v43 = vpop.f32.mrf.mxu1 }
 0x53a   : > { %v3207_v45 = vadd.f32 %v3206_v10, %v2869_v43  ;;  %v3468_v58 = vadd.f32 %v9425_v48, %v3215_v46  ;;  %v8539_v43 = vld [vmem:[#allocation4 + $0x208] sm:$0xff]  }
 0x53b   : > { %v7735_v60 = vpop.f32.mrf.mxu1  ;;  %7968 = vmatprep.subr.bf16.mxu0 %v8539_v43 }
 0x53c   : > { %v3218_v1 = vadd.f32 %v7815_v51, %v7735_v60  ;;  %v3466_v53 = vadd.f32 %v9425_v48, %v3207_v45  ;;  %v3532_v3 = vmax.f32 %v3468_v58, 0.0  ;;  %7969 = vmatpush3.bf16.msra.mxu0 %v8539_v43 }
 0x53d   : > { %v2872_v11 = vpop.f32.mrf.mxu1 }
 0x53e   : > { %v3469_v52 = vadd.f32 %v9425_v48, %v3218_v1  ;;  %v3210_v57 = vadd.f32 %v3209_v13, %v2872_v11  ;;  %v3530_v47 = vmax.f32 %v3466_v53, 0.0  ;;  %v9437_v13 = vpop.f32.mrf.mxu0 }
 0x53f   : > { %v7738_v61 = vpop.f32.mrf.mxu1 }
 0x540   : > { %v3467_v62 = vadd.f32 %v9425_v48, %v3210_v57  ;;  %v3533_v29 = vmax.f32 %v3469_v52, 0.0  ;;  %v3231_v7 = vadd.f32 %v9369_v5, %v7738_v61  ;;  %v9444_v46 = vpop.f32.mrf.mxu0  ;;  %v8540_v57 = vld [vmem:[#allocation4 + $0x200] sm:$0xff]  }
 0x541   : > { %v2885_v63 = vpop.f32.mrf.mxu1  ;;  %7970 = vmatprep.subr.bf16.mxu0 %v8540_v57 }
 0x542   : > { %v3531_v0 = vmax.f32 %v3467_v62, 0.0  ;;  %v3223_v2 = vadd.f32 %v3222_v24, %v2885_v63  ;;  %v3595_v12 = vpack.c.bf16 %v3533_v29, %v3532_v3  ;;  %v3472_v5 = vadd.f32 %v9425_v48, %v3231_v7  ;;  %v9449_v62 = vpop.f32.mrf.mxu0  ;;  %7971 = vmatpush3.bf16.msra.mxu0 %v8540_v57 }
 0x543   : > { %v7739_v8 = vpop.f32.mrf.mxu1 }
 0x544   : > { %v3234_v10 = vadd.f32 %v9371_v56, %v7739_v8  ;;  %v3594_v55 = vpack.c.bf16 %v3531_v0, %v3530_v47  ;;  %v3470_v20 = vadd.f32 %v9425_v48, %v3223_v2  ;;  %v9456_v3 = vpop.f32.mrf.mxu0 }
 0x545   : > { %v2888_v51 = vpop.f32.mrf.mxu1 }
 0x546   : > { %v3473_v54 = vadd.f32 %v9425_v48, %v3234_v10  ;;  %v3226_v24 = vadd.f32 %v9373_v16, %v2888_v51  ;;  %7892 = vmatprep.mubr.bf16.mxu1 %v3594_v55  ;;  %v3534_v60 = vmax.f32 %v3470_v20, 0.0  ;;  %v3536_v16 = vmax.f32 %v3472_v5, 0.0 }
 0x547   : > { %v7742_v41 = vpop.f32.mrf.mxu1  ;;  %7893 = vmatmul.mubr.bf16.vlgmr.msra.gmra.mxu1 %v3595_v12 }
 0x548   : > { %v3471_v56 = vadd.f32 %v9425_v48, %v3226_v24  ;;  %v3537_v45 = vmax.f32 %v3473_v54, 0.0  ;;  %v3247_v53 = vadd.f32 %v9375_v18, %v7742_v41  ;;  %v9461_v24 = vpop.f32.mrf.mxu0 }
 0x549   : > { %v2901_v38 = vpop.f32.mrf.mxu1 }
 0x54a   : > { %v3535_v1 = vmax.f32 %v3471_v56, 0.0  ;;  %v3239_v11 = vadd.f32 %v9377_v59, %v2901_v38  ;;  %v3597_v15 = vpack.c.bf16 %v3537_v45, %v3536_v16  ;;  %v3476_v18 = vadd.f32 %v9425_v48, %v3247_v53  ;;  %v9468_v38 = vpop.f32.mrf.mxu0 }
 0x54b   : > { %v7743_v52 = vpop.f32.mrf.mxu1 }
 0x54c   : > { %v3250_v58 = vadd.f32 %v9379_v17, %v7743_v52  ;;  %v3596_v61 = vpack.c.bf16 %v3535_v1, %v3534_v60  ;;  %v3474_v29 = vadd.f32 %v9425_v48, %v3239_v11  ;;  %v3540_v10 = vmax.f32 %v3476_v18, 0.0 }
 0x54d   : > { %v2904_v33 = vpop.f32.mrf.mxu1 }
 0x54e   : > { %v3477_v63 = vadd.f32 %v9425_v48, %v3250_v58  ;;  %v3242_v59 = vadd.f32 %v9381_v19, %v2904_v33  ;;  %7896 = vmatprep.mubr.bf16.mxu1 %v3596_v61  ;;  %v3538_v7 = vmax.f32 %v3474_v29, 0.0 }
 0x54f   : > { %v7746_v47 = vpop.f32.mrf.mxu1  ;;  %7897 = vmatmul.mubr.bf16.gmra.mxu1 %v3597_v15  ;;  %v9473_v15 = vpop.f32.mrf.mxu0 }
 0x550   : > { %v3475_v17 = vadd.f32 %v9425_v48, %v3242_v59  ;;  %v3541_v0 = vmax.f32 %v3477_v63, 0.0  ;;  %v3263_v19 = vadd.f32 %v9383_v21, %v7746_v47 }
 0x551   : > { %v2917_v2 = vpop.f32.mrf.mxu1  ;;  %v9480_v47 = vpop.f32.mrf.mxu0 }
 0x552   : > { %v3539_v8 = vmax.f32 %v3475_v17, 0.0  ;;  %v3255_v9 = vadd.f32 %v9385_v22, %v2917_v2  ;;  %v3599_v20 = vpack.c.bf16 %v3541_v0, %v3540_v10  ;;  %v3480_v22 = vadd.f32 %v9425_v48, %v3263_v19 }
 0x553   : > { %v7747_v55 = vpop.f32.mrf.mxu1 }
 0x554   : > { %v3266_v12 = vadd.f32 %v9387_v23, %v7747_v55  ;;  %v3598_v51 = vpack.c.bf16 %v3539_v8, %v3538_v7  ;;  %v3478_v5 = vadd.f32 %v9425_v48, %v3255_v9  ;;  %v3544_v16 = vmax.f32 %v3480_v22, 0.0 }
 0x555   : > { %v2920_v54 = vpop.f32.mrf.mxu1 }
 0x556   : > { %v3481_v41 = vadd.f32 %v9425_v48, %v3266_v12  ;;  %v3258_v43 = vadd.f32 %v9389_v25, %v2920_v54  ;;  %7900 = vmatprep.mubr.bf16.mxu1 %v3598_v51  ;;  %v3542_v60 = vmax.f32 %v3478_v5, 0.0  ;;  %v9485_v12 = vpop.f32.mrf.mxu0 }
 0x557   : > { %v7750_v56 = vpop.f32.mrf.mxu1  ;;  %7901 = vmatmul.mubr.bf16.gmra.mxu1 %v3599_v20 }
 0x558   : > { %v3479_v21 = vadd.f32 %v9425_v48, %v3258_v43  ;;  %v3545_v45 = vmax.f32 %v3481_v41, 0.0  ;;  %v3279_v53 = vadd.f32 %v9391_v42, %v7750_v56  ;;  %v9492_v43 = vpop.f32.mrf.mxu0 }
 0x559   : > { %v2933_v23 = vpop.f32.mrf.mxu1 }
 0x55a   : > { %v3543_v1 = vmax.f32 %v3479_v21, 0.0  ;;  %v3271_v11 = vadd.f32 %v9393_v26, %v2933_v23  ;;  %v3601_v58 = vpack.c.bf16 %v3545_v45, %v3544_v16  ;;  %v3484_v26 = vadd.f32 %v9425_v48, %v3279_v53  ;;  %v9497_v53 = vpop.f32.mrf.mxu0 }
 0x55b   : > { %v7751_v52 = vpop.f32.mrf.mxu1 }
 0x55c   : > { %v3282_v25 = vadd.f32 %v9395_v4, %v7751_v52  ;;  %v3600_v57 = vpack.c.bf16 %v3543_v1, %v3542_v60  ;;  %v3482_v33 = vadd.f32 %v9425_v48, %v3271_v11  ;;  %v3548_v7 = vmax.f32 %v3484_v26, 0.0 }
 0x55d   : > { %v2936_v61 = vpop.f32.mrf.mxu1 }
 0x55e   : > { %v3485_v29 = vadd.f32 %v9425_v48, %v3282_v25  ;;  %v3274_v63 = vadd.f32 %v9397_v27, %v2936_v61  ;;  %7904 = vmatprep.mubr.bf16.mxu1 %v3600_v57  ;;  %v3546_v17 = vmax.f32 %v3482_v33, 0.0  ;;  %v9504_v33 = vpop.f32.mrf.mxu0 }
 0x55f   : > { %v7754_v59 = vpop.f32.mrf.mxu1  ;;  %7905 = vmatmul.mubr.bf16.gmra.mxu1 %v3601_v58 }
 0x560   : > { %v3483_v42 = vadd.f32 %v9425_v48, %v3274_v63  ;;  %v3549_v18 = vmax.f32 %v3485_v29, 0.0  ;;  %v3295_v8 = vadd.f32 %v9399_v30, %v7754_v59 }
 0x561   : > { %v2949_v4 = vpop.f32.mrf.mxu1 }
 0x562   : > { %v3547_v0 = vmax.f32 %v3483_v42, 0.0  ;;  %v3287_v2 = vadd.f32 %v9401_v31, %v2949_v4  ;;  %v3603_v19 = vpack.c.bf16 %v3549_v18, %v3548_v7  ;;  %v3488_v31 = vadd.f32 %v9425_v48, %v3295_v8 }
 0x563   : > { %v7755_v9 = vpop.f32.mrf.mxu1 }
 0x564   : > { %v3298_v27 = vadd.f32 %v9403_v6, %v7755_v9  ;;  %v3602_v10 = vpack.c.bf16 %v3547_v0, %v3546_v17  ;;  %v3486_v51 = vadd.f32 %v9425_v48, %v3287_v2  ;;  %v3552_v45 = vmax.f32 %v3488_v31, 0.0  ;;  %v9509_v2 = vpop.f32.mrf.mxu0 }
 0x565   : > { %v2952_v55 = vpop.f32.mrf.mxu1 }
 0x566   : > { %v3489_v20 = vadd.f32 %v9425_v48, %v3298_v27  ;;  %v3290_v54 = vadd.f32 %v9405_v32, %v2952_v55  ;;  %7908 = vmatprep.mubr.bf16.mxu1 %v3602_v10  ;;  %v3550_v22 = vmax.f32 %v3486_v51, 0.0 }
 0x567   : > { %v7758_v5 = vpop.f32.mrf.mxu1  ;;  %7909 = vmatmul.mubr.bf16.gmra.mxu1 %v3603_v19  ;;  %v9516_v19 = vpop.f32.mrf.mxu0 }
 0x568   : > { %v3487_v30 = vadd.f32 %v9425_v48, %v3290_v54  ;;  %v3553_v41 = vmax.f32 %v3489_v20, 0.0  ;;  %v3311_v23 = vadd.f32 %v9407_v34, %v7758_v5 }
 0x569   : > { %v2965_v6 = vpop.f32.mrf.mxu1 }
 0x56a   : > { %v3551_v56 = vmax.f32 %v3487_v30, 0.0  ;;  %v3303_v21 = vadd.f32 %v9409_v35, %v2965_v6  ;;  %v3605_v11 = vpack.c.bf16 %v3553_v41, %v3552_v45  ;;  %v3492_v35 = vadd.f32 %v9425_v48, %v3311_v23 }
 0x56b   : > { %v7759_v60 = vpop.f32.mrf.mxu1 }
 0x56c   : > { %v3314_v32 = vadd.f32 %v9411_v49, %v7759_v60  ;;  %v3604_v1 = vpack.c.bf16 %v3551_v56, %v3550_v22  ;;  %v3490_v52 = vadd.f32 %v9425_v48, %v3303_v21  ;;  %v3556_v59 = vmax.f32 %v3492_v35, 0.0  ;;  %v9521_v22 = vpop.f32.mrf.mxu0 }
 0x56d   : > { %v2968_v16 = vpop.f32.mrf.mxu1 }
 0x56e   : > { %v3493_v25 = vadd.f32 %v9425_v48, %v3314_v32  ;;  %v3306_v57 = vadd.f32 %v9413_v36, %v2968_v16  ;;  %7912 = vmatprep.mubr.bf16.mxu1 %v3604_v1  ;;  %v3554_v29 = vmax.f32 %v3490_v52, 0.0  ;;  %v9528_v32 = vpop.f32.mrf.mxu0 }
 0x56f   : > { %v7762_v58 = vpop.f32.mrf.mxu1  ;;  %7913 = vmatmul.mubr.bf16.gmra.mxu1 %v3605_v11 }
 0x570   : > { %v3491_v34 = vadd.f32 %v9425_v48, %v3306_v57  ;;  %v3557_v61 = vmax.f32 %v3493_v25, 0.0  ;;  %v3327_v42 = vadd.f32 %v9415_v28, %v7762_v58 }
 0x571   : > { %v2981_v49 = vpop.f32.mrf.mxu1 }
 0x572   : > { %v3555_v63 = vmax.f32 %v3491_v34, 0.0  ;;  %v3319_v26 = vadd.f32 %v9417_v37, %v2981_v49  ;;  %v3607_v17 = vpack.c.bf16 %v3557_v61, %v3556_v59  ;;  %v3496_v37 = vadd.f32 %v9425_v48, %v3327_v42  ;;  %v9533_v61 = vpop.f32.mrf.mxu0 }
 0x573   : > { %v7763_v18 = vpop.f32.mrf.mxu1 }
 0x574   : > { %v3330_v36 = vadd.f32 %v9419_v39, %v7763_v18  ;;  %v3606_v4 = vpack.c.bf16 %v3555_v63, %v3554_v29  ;;  %v3494_v7 = vadd.f32 %v9425_v48, %v3319_v26  ;;  %v3560_v54 = vmax.f32 %v3496_v37, 0.0  ;;  %v9540_v42 = vpop.f32.mrf.mxu0 }
 0x575   : > { %v2984_v0 = vpop.f32.mrf.mxu1 }
 0x576   : > { %v3497_v8 = vadd.f32 %v9425_v48, %v3330_v36  ;;  %v3322_v9 = vadd.f32 %v9421_v40, %v2984_v0  ;;  %7916 = vmatprep.mubr.bf16.mxu1 %v3606_v4  ;;  %v3558_v55 = vmax.f32 %v3494_v7, 0.0 }
 0x577   : > { %v7766_v27 = vpop.f32.mrf.mxu1  ;;  %7917 = vmatmul.mubr.bf16.gmra.mxu1 %v3607_v17 }
 0x578   : > { %v3495_v28 = vadd.f32 %v9425_v48, %v3322_v9  ;;  %v3561_v10 = vmax.f32 %v3497_v8, 0.0  ;;  %v3343_v31 = vadd.f32 %v9423_v44, %v7766_v27  ;;  %v3414_v27 = vpop.f32.mrf.mxu0 }
 0x579   : > { %v2997_v39 = vpop.f32.mrf.mxu1 }
 0x57a   : > { %v3559_v51 = vmax.f32 %v3495_v28, 0.0  ;;  %v3335_v20 = vadd.f32 %v9427_v50, %v2997_v39  ;;  %v3609_v41 = vpack.c.bf16 %v3561_v10, %v3560_v54  ;;  %v3500_v50 = vadd.f32 %v9425_v48, %v3343_v31 }
 0x57b   : > { %v7767_v5 = vpop.f32.mrf.mxu1 }
 0x57c   : > { %v3346_v40 = vadd.f32 %v9433_v14, %v7767_v5  ;;  %v3608_v30 = vpack.c.bf16 %v3559_v51, %v3558_v55  ;;  %v3498_v56 = vadd.f32 %v9425_v48, %v3335_v20  ;;  %v3564_v52 = vmax.f32 %v3500_v50, 0.0 }
 0x57d   : > { %v3000_v6 = vpop.f32.mrf.mxu1 }
 0x57e   : > { %v3501_v21 = vadd.f32 %v9425_v48, %v3346_v40  ;;  %v3338_v45 = vadd.f32 %v9437_v13, %v3000_v6  ;;  %7920 = vmatprep.mubr.bf16.mxu1 %v3608_v30  ;;  %v3562_v1 = vmax.f32 %v3498_v56, 0.0 }
 0x57f   : > { %v7770_v23 = vpop.f32.mrf.mxu1  ;;  %7921 = vmatmul.mubr.bf16.gmra.mxu1 %v3609_v41 }
 0x580   : > { %v3499_v44 = vadd.f32 %v9425_v48, %v3338_v45  ;;  %v3565_v60 = vmax.f32 %v3501_v21, 0.0  ;;  %v3359_v25 = vadd.f32 %v9444_v46, %v7770_v23 }
 0x581   : > { %v3013_v14 = vpop.f32.mrf.mxu1 }
 0x582   : > { %v3563_v11 = vmax.f32 %v3499_v44, 0.0  ;;  %v3351_v16 = vadd.f32 %v9449_v62, %v3013_v14  ;;  %v3611_v58 = vpack.c.bf16 %v3565_v60, %v3564_v52  ;;  %v3504_v62 = vadd.f32 %v9425_v48, %v3359_v25 }
 0x583   : > { %v7771_v57 = vpop.f32.mrf.mxu1 }
 0x584   : > { %v3362_v13 = vadd.f32 %v9456_v3, %v7771_v57  ;;  %v3610_v35 = vpack.c.bf16 %v3563_v11, %v3562_v1  ;;  %v3502_v49 = vadd.f32 %v9425_v48, %v3351_v16  ;;  %v3568_v17 = vmax.f32 %v3504_v62, 0.0 }
 0x585   : > { %v3016_v34 = vpop.f32.mrf.mxu1 }
 0x586   : > { %v3505_v29 = vadd.f32 %v9425_v48, %v3362_v13  ;;  %v3354_v63 = vadd.f32 %v9461_v24, %v3016_v34  ;;  %7924 = vmatprep.mubr.bf16.mxu1 %v3610_v35  ;;  %v3566_v18 = vmax.f32 %v3502_v49, 0.0 }
 0x587   : > { %v7774_v26 = vpop.f32.mrf.mxu1  ;;  %7925 = vmatmul.mubr.bf16.gmra.mxu1 %v3611_v58 }
 0x588   : > { %v3503_v46 = vadd.f32 %v9425_v48, %v3354_v63  ;;  %v3569_v59 = vmax.f32 %v3505_v29, 0.0  ;;  %v3375_v0 = vadd.f32 %v9468_v38, %v7774_v26 }
 0x589   : > { %v3029_v3 = vpop.f32.mrf.mxu1 }
 0x58a   : > { %v3567_v36 = vmax.f32 %v3503_v46, 0.0  ;;  %v3367_v4 = vadd.f32 %v9473_v15, %v3029_v3  ;;  %v3613_v9 = vpack.c.bf16 %v3569_v59, %v3568_v17  ;;  %v3508_v55 = vadd.f32 %v9425_v48, %v3375_v0 }
 0x58b   : > { %v7775_v7 = vpop.f32.mrf.mxu1 }
 0x58c   : > { %v3378_v24 = vadd.f32 %v9480_v47, %v7775_v7  ;;  %v3612_v8 = vpack.c.bf16 %v3567_v36, %v3566_v18  ;;  %v3506_v28 = vadd.f32 %v9425_v48, %v3367_v4  ;;  %v7867_v47 = vpop.f32.mrf.mxu0  ;;  %v3572_v40 = vmax.f32 %v3508_v55, 0.0 }
 0x58d   : > { %v3032_v37 = vpop.f32.mrf.mxu1 }
 0x58e   : > { %v3509_v10 = vadd.f32 %v9425_v48, %v3378_v24  ;;  %v3370_v39 = vadd.f32 %v9485_v12, %v3032_v37  ;;  %7928 = vmatprep.mubr.bf16.mxu1 %v3612_v8  ;;  %v3570_v54 = vmax.f32 %v3506_v28, 0.0  ;;  %v3417_v45 = vpop.f32.mrf.mxu0 }
 0x58f   : > { %v7778_v15 = vpop.f32.mrf.mxu1  ;;  %7929 = vmatmul.mubr.bf16.gmra.mxu1 %v3613_v9 }
 0x590   : > { %v3507_v38 = vadd.f32 %v9425_v48, %v3370_v39  ;;  %v3573_v51 = vmax.f32 %v3509_v10, 0.0  ;;  %v3391_v30 = vadd.f32 %v9492_v43, %v7778_v15 }
 0x591   : > { %v3045_v20 = vpop.f32.mrf.mxu1 }
 0x592   : > { %v3571_v31 = vmax.f32 %v3507_v38, 0.0  ;;  %v3383_v5 = vadd.f32 %v9497_v53, %v3045_v20  ;;  %v3615_v56 = vpack.c.bf16 %v3573_v51, %v3572_v40  ;;  %v3512_v60 = vadd.f32 %v9425_v48, %v3391_v30 }
 0x593   : > { %v7779_v41 = vpop.f32.mrf.mxu1 }
 0x594   : > { %v3394_v12 = vadd.f32 %v9504_v33, %v7779_v41  ;;  %v3614_v6 = vpack.c.bf16 %v3571_v31, %v3570_v54  ;;  %v3510_v50 = vadd.f32 %v9425_v48, %v3383_v5  ;;  %v7870_v33 = vpop.f32.mrf.mxu0  ;;  %v3576_v25 = vmax.f32 %v3512_v60, 0.0 }
 0x595   : > { %v3048_v21 = vpop.f32.mrf.mxu1 }
 0x596   : > { %v3513_v23 = vadd.f32 %v9425_v48, %v3394_v12  ;;  %v3386_v44 = vadd.f32 %v9509_v2, %v3048_v21  ;;  %7932 = vmatprep.mubr.bf16.mxu1 %v3614_v6  ;;  %v3574_v11 = vmax.f32 %v3510_v50, 0.0  ;;  %v3430_v49 = vpop.f32.mrf.mxu0 }
 0x597   : > { %v7782_v53 = vpop.f32.mrf.mxu1  ;;  %7933 = vmatmul.mubr.bf16.gmra.mxu1 %v3615_v56 }
 0x598   : > { %v3511_v43 = vadd.f32 %v9425_v48, %v3386_v44  ;;  %v3577_v14 = vmax.f32 %v3513_v23, 0.0  ;;  %v3407_v57 = vadd.f32 %v9516_v19, %v7782_v53 }
 0x599   : > { %v3061_v1 = vpop.f32.mrf.mxu1 }
 0x59a   : > { %v3575_v16 = vmax.f32 %v3511_v43, 0.0  ;;  %v3399_v52 = vadd.f32 %v9521_v22, %v3061_v1  ;;  %v3617_v58 = vpack.c.bf16 %v3577_v14, %v3576_v25  ;;  %v3516_v26 = vadd.f32 %v9425_v48, %v3407_v57 }
 0x59b   : > { %v7783_v13 = vpop.f32.mrf.mxu1 }
 0x59c   : > { %v3410_v2 = vadd.f32 %v9528_v32, %v7783_v13  ;;  %v3616_v35 = vpack.c.bf16 %v3575_v16, %v3574_v11  ;;  %v3514_v29 = vadd.f32 %v9425_v48, %v3399_v52  ;;  %v7871_v32 = vpop.f32.mrf.mxu0  ;;  %v3580_v4 = vmax.f32 %v3516_v26, 0.0 }
 0x59d   : > { %v3064_v34 = vpop.f32.mrf.mxu1 }
 0x59e   : > { %v3517_v63 = vadd.f32 %v9425_v48, %v3410_v2  ;;  %v3402_v62 = vadd.f32 %v9533_v61, %v3064_v34  ;;  %7936 = vmatprep.mubr.bf16.mxu1 %v3616_v35  ;;  %v3578_v3 = vmax.f32 %v3514_v29, 0.0  ;;  %v3433_v9 = vpop.f32.mrf.mxu0 }
 0x59f   : > { %v7786_v22 = vpop.f32.mrf.mxu1  ;;  %7937 = vmatmul.mubr.bf16.gmra.mxu1 %v3617_v58 }
 0x5a0   : > { %v3515_v19 = vadd.f32 %v9425_v48, %v3402_v62  ;;  %v3581_v46 = vmax.f32 %v3517_v63, 0.0  ;;  %v3423_v17 = vadd.f32 %v9540_v42, %v7786_v22  ;;  %v7874_v38 = vpop.f32.mrf.mxu0 }
 0x5a1   : > { %v3077_v59 = vpop.f32.mrf.mxu1 }
 0x5a2   : > { %v3579_v18 = vmax.f32 %v3515_v19, 0.0  ;;  %v3415_v36 = vadd.f32 %v3414_v27, %v3077_v59  ;;  %v3619_v61 = vpack.c.bf16 %v3581_v46, %v3580_v4  ;;  %v3520_v39 = vadd.f32 %v9425_v48, %v3423_v17  ;;  %v3446_v12 = vpop.f32.mrf.mxu0 }
 0x5a3   : > { %v7787_v0 = vpop.f32.mrf.mxu1 }
 0x5a4   : > { %v3426_v7 = vadd.f32 %v7867_v47, %v7787_v0  ;;  %v3618_v24 = vpack.c.bf16 %v3579_v18, %v3578_v3  ;;  %v3518_v37 = vadd.f32 %v9425_v48, %v3415_v36  ;;  %v3584_v54 = vmax.f32 %v3520_v39, 0.0  ;;  %v7875_v53 = vpop.f32.mrf.mxu0  ;;  %v8542_v3 = vld [vmem:[#allocation4 + $0x270] sm:$0xff]   ;;  %v8543_v18 = vld [vmem:[#allocation4 + $0x268] sm:$0xff]  }
 0x5a5   : > { %v3080_v8 = vpop.f32.mrf.mxu1 }
 0x5a6   : > { %v3521_v28 = vadd.f32 %v9425_v48, %v3426_v7  ;;  %v3418_v10 = vadd.f32 %v3417_v45, %v3080_v8  ;;  %7940 = vmatprep.mubr.bf16.mxu1 %v3618_v24  ;;  %v3582_v51 = vmax.f32 %v3518_v37, 0.0  ;;  %v3449_v2 = vpop.f32.mrf.mxu0  ;;  %v8544_v8 = vld [vmem:[#allocation4 + $0x260] sm:$0xff]  }
 0x5a7   : > { %v7790_v55 = vpop.f32.mrf.mxu1  ;;  %7941 = vmatmul.mubr.bf16.gmra.mxu1 %v3619_v61 }
 0x5a8   : > { %v3519_v27 = vadd.f32 %v9425_v48, %v3418_v10  ;;  %v3585_v15 = vmax.f32 %v3521_v28, 0.0  ;;  %v3439_v31 = vadd.f32 %v7870_v33, %v7790_v55 }
 0x5a9   : > { %v3093_v42 = vpop.f32.mrf.mxu1 }
 0x5aa   : > { %v3583_v20 = vmax.f32 %v3519_v27, 0.0  ;;  %v3431_v47 = vadd.f32 %v3430_v49, %v3093_v42  ;;  %v3621_v41 = vpack.c.bf16 %v3585_v15, %v3584_v54  ;;  %v3524_v50 = vadd.f32 %v9425_v48, %v3439_v31  ;;  %v8546_v42 = vld [vmem:[#allocation4 + $0x250] sm:$0xff]  }
 0x5ab   : > { %v7791_v5 = vpop.f32.mrf.mxu1 }
 0x5ac   : > { %v3442_v40 = vadd.f32 %v7871_v32, %v7791_v5  ;;  %v3620_v30 = vpack.c.bf16 %v3583_v20, %v3582_v51  ;;  %v3522_v56 = vadd.f32 %v9425_v48, %v3431_v47  ;;  %v3588_v11 = vmax.f32 %v3524_v50, 0.0  ;;  %v8541_v32 = vld [vmem:[#allocation4 + $0x278] sm:$0xff]   ;;  %v8548_v50 = vld [vmem:[#allocation4 + $0x240] sm:$0xff]  }
 0x5ad   : > { %v3096_v6 = vpop.f32.mrf.mxu1  ;;  %8036 = vmatprep.subr.bf16.mxu1 %v8541_v32 }
 0x5ae   : > { %v3525_v21 = vadd.f32 %v9425_v48, %v3442_v40  ;;  %v3434_v45 = vadd.f32 %v3433_v9, %v3096_v6  ;;  %7944 = vmatprep.mubr.bf16.mxu1 %v3620_v30  ;;  %v3586_v14 = vmax.f32 %v3522_v56, 0.0  ;;  %8037 = vmatpush3.bf16.msra.mxu1 %v8541_v32  ;;  %v8545_v9 = vld [vmem:[#allocation4 + $0x258] sm:$0xff]   ;;  %v8547_v40 = vld [vmem:[#allocation4 + $0x248] sm:$0xff]  }
 0x5af   : > { %v7794_v23 = vpop.f32.mrf.mxu1  ;;  %7945 = vmatmul.mubr.bf16.gmra.mxu1 %v3621_v41  ;;  %8038 = vmatprep.subr.bf16.mxu1 %v8542_v3 }
 0x5b0   : > { %v3523_v44 = vadd.f32 %v9425_v48, %v3434_v45  ;;  %v3589_v60 = vmax.f32 %v3525_v21, 0.0  ;;  %v3455_v16 = vadd.f32 %v7874_v38, %v7794_v23 }
 0x5b1   : > { %v3109_v43 = vpop.f32.mrf.mxu1 }
 0x5b2   : > { %v3587_v1 = vmax.f32 %v3523_v44, 0.0  ;;  %v3447_v33 = vadd.f32 %v3446_v12, %v3109_v43  ;;  %v3623_v13 = vpack.c.bf16 %v3589_v60, %v3588_v11  ;;  %v3528_v29 = vadd.f32 %v9425_v48, %v3455_v16  ;;  %8039 = vmatpush3.bf16.msra.mxu1 %v8542_v3 }
 0x5b3   : > { %v7795_v52 = vpop.f32.mrf.mxu1  ;;  %8040 = vmatprep.subr.bf16.mxu1 %v8543_v18 }
 0x5b4   : > { %v3458_v25 = vadd.f32 %v7875_v53, %v7795_v52  ;;  %v3622_v57 = vpack.c.bf16 %v3587_v1, %v3586_v14  ;;  %v3526_v58 = vadd.f32 %v9425_v48, %v3447_v33  ;;  %v3592_v19 = vmax.f32 %v3528_v29, 0.0 }
 0x5b5   : > { %v3112_v35 = vpop.f32.mrf.mxu1 }
 0x5b6   : > { %v3529_v34 = vadd.f32 %v9425_v48, %v3458_v25  ;;  %v3450_v49 = vadd.f32 %v3449_v2, %v3112_v35  ;;  %7948 = vmatprep.mubr.bf16.mxu1 %v3622_v57  ;;  %v3590_v26 = vmax.f32 %v3526_v58, 0.0  ;;  %8041 = vmatpush3.bf16.msra.mxu1 %v8543_v18 }
 0x5b7   : > { %7949 = vmatmul.mubr.bf16.gmra.mxu1 %v3623_v13  ;;  %8042 = vmatprep.subr.bf16.mxu1 %v8544_v8 }
 0x5b8   : > { %v3527_v63 = vadd.f32 %v9425_v48, %v3450_v49  ;;  %v3593_v62 = vmax.f32 %v3529_v34, 0.0  ;;  %v9579_v48 = vld [vmem:[#allocation6 + $0x6] ss:$0 sm:$0xff] }
 0x5ba   : > { %v3591_v22 = vmax.f32 %v3527_v63, 0.0  ;;  %v3625_v59 = vpack.c.bf16 %v3593_v62, %v3592_v19  ;;  %8043 = vmatpush3.bf16.msra.mxu1 %v8544_v8 }
 0x5bb   : > { %8044 = vmatprep.subr.bf16.mxu1 %v8545_v9 }
 0x5bc   : > { %v3624_v46 = vpack.c.bf16 %v3591_v22, %v3590_v26 }
 0x5be   : > { %7952 = vmatprep.mubr.bf16.mxu1 %v3624_v46  ;;  %8045 = vmatpush3.bf16.msra.mxu1 %v8545_v9 }
 0x5bf   : > { %7953 = vmatmul.mubr.bf16.gmra.mxu1 %v3625_v59  ;;  %8046 = vmatprep.subr.bf16.mxu1 %v8546_v42 }
 0x5c2   : > { %8047 = vmatpush3.bf16.msra.mxu1 %v8546_v42 }
 0x5c3   : > { %8048 = vmatprep.subr.bf16.mxu1 %v8547_v40 }
 0x5c6   : > { %8049 = vmatpush3.bf16.msra.mxu1 %v8547_v40 }
 0x5c7   : > { %8050 = vmatprep.subr.bf16.mxu1 %v8548_v50 }
 0x5ca   : > { %8051 = vmatpush3.bf16.msra.mxu1 %v8548_v50 }
 0x607   : > { %v7894_v36 = vpop.f32.mrf.mxu1 }
 0x608   : > { %v3739_v24 = vadd.f32 %v7894_v36, %v9579_v48 }
 0x609   : > { %v3730_v4 = vpop.f32.mrf.mxu1 }
 0x60a   : > { %v3731_v0 = vadd.f32 %v9579_v48, %v3730_v4  ;;  %v3987_v27 = vmax.f32 %v3739_v24, 0.0 }
 0x60b   : > { %v7895_v17 = vpop.f32.mrf.mxu1 }
 0x60c   : > { %v3742_v7 = vadd.f32 %v7895_v17, %v9579_v48  ;;  %v3985_v39 = vmax.f32 %v3731_v0, 0.0 }
 0x60d   : > { %v3733_v61 = vpop.f32.mrf.mxu1 }
 0x60e   : > { %v3734_v37 = vadd.f32 %v9579_v48, %v3733_v61  ;;  %v3988_v28 = vmax.f32 %v3742_v7, 0.0 }
 0x60f   : > { %v7898_v10 = vpop.f32.mrf.mxu1 }
 0x610   : > { %v3986_v55 = vmax.f32 %v3734_v37, 0.0  ;;  %v4050_v51 = vpack.c.bf16 %v3988_v28, %v3987_v27  ;;  %v3755_v31 = vadd.f32 %v7898_v10, %v9579_v48 }
 0x611   : > { %v3746_v15 = vpop.f32.mrf.mxu1 }
 0x612   : > { %v4049_v38 = vpack.c.bf16 %v3986_v55, %v3985_v39  ;;  %v3747_v47 = vadd.f32 %v9579_v48, %v3746_v15  ;;  %v3991_v21 = vmax.f32 %v3755_v31, 0.0 }
 0x613   : > { %v7899_v20 = vpop.f32.mrf.mxu1 }
 0x614   : > { %v3758_v54 = vadd.f32 %v7899_v20, %v9579_v48  ;;  %7972 = vmatprep.mubr.bf16.mxu0 %v4049_v38  ;;  %v3989_v6 = vmax.f32 %v3747_v47, 0.0 }
 0x615   : > { %v3749_v5 = vpop.f32.mrf.mxu1  ;;  %7973 = vmatmul.mubr.bf16.vlgmr.msra.gmra.mxu0 %v4050_v51 }
 0x616   : > { %v3750_v30 = vadd.f32 %v9579_v48, %v3749_v5  ;;  %v3992_v41 = vmax.f32 %v3758_v54, 0.0 }
 0x617   : > { %v7902_v12 = vpop.f32.mrf.mxu1 }
 0x618   : > { %v3990_v56 = vmax.f32 %v3750_v30, 0.0  ;;  %v4052_v44 = vpack.c.bf16 %v3992_v41, %v3991_v21  ;;  %v3771_v14 = vadd.f32 %v7902_v12, %v9579_v48 }
 0x619   : > { %v3762_v45 = vpop.f32.mrf.mxu1 }
 0x61a   : > { %v4051_v23 = vpack.c.bf16 %v3990_v56, %v3989_v6  ;;  %v3763_v53 = vadd.f32 %v9579_v48, %v3762_v45  ;;  %v3995_v57 = vmax.f32 %v3771_v14, 0.0 }
 0x61b   : > { %v7903_v60 = vpop.f32.mrf.mxu1 }
 0x61c   : > { %v3774_v43 = vadd.f32 %v7903_v60, %v9579_v48  ;;  %7976 = vmatprep.mubr.bf16.mxu0 %v4051_v23  ;;  %v3993_v52 = vmax.f32 %v3763_v53, 0.0 }
 0x61d   : > { %v3765_v1 = vpop.f32.mrf.mxu1  ;;  %7977 = vmatmul.mubr.bf16.gmra.mxu0 %v4052_v44 }
 0x61e   : > { %v3766_v33 = vadd.f32 %v9579_v48, %v3765_v1  ;;  %v3996_v11 = vmax.f32 %v3774_v43, 0.0 }
 0x61f   : > { %v7906_v16 = vpop.f32.mrf.mxu1 }
 0x620   : > { %v3994_v25 = vmax.f32 %v3766_v33, 0.0  ;;  %v4054_v35 = vpack.c.bf16 %v3996_v11, %v3995_v57  ;;  %v3787_v29 = vadd.f32 %v7906_v16, %v9579_v48 }
 0x621   : > { %v3778_v13 = vpop.f32.mrf.mxu1 }
 0x622   : > { %v4053_v2 = vpack.c.bf16 %v3994_v25, %v3993_v52  ;;  %v3779_v34 = vadd.f32 %v9579_v48, %v3778_v13  ;;  %v3999_v59 = vmax.f32 %v3787_v29, 0.0 }
 0x623   : > { %v7907_v58 = vpop.f32.mrf.mxu1 }
 0x624   : > { %v3790_v49 = vadd.f32 %v7907_v58, %v9579_v48  ;;  %7980 = vmatprep.mubr.bf16.mxu0 %v4053_v2  ;;  %v3997_v19 = vmax.f32 %v3779_v34, 0.0 }
 0x625   : > { %v3781_v63 = vpop.f32.mrf.mxu1  ;;  %7981 = vmatmul.mubr.bf16.gmra.mxu0 %v4054_v35 }
 0x626   : > { %v3782_v62 = vadd.f32 %v9579_v48, %v3781_v63  ;;  %v4000_v26 = vmax.f32 %v3790_v49, 0.0 }
 0x627   : > { %v7910_v22 = vpop.f32.mrf.mxu1 }
 0x628   : > { %v3998_v46 = vmax.f32 %v3782_v62, 0.0  ;;  %v4056_v18 = vpack.c.bf16 %v4000_v26, %v3999_v59  ;;  %v3803_v0 = vadd.f32 %v7910_v22, %v9579_v48 }
 0x629   : > { %v3794_v32 = vpop.f32.mrf.mxu1 }
 0x62a   : > { %v4055_v3 = vpack.c.bf16 %v3998_v46, %v3997_v19  ;;  %v3795_v4 = vadd.f32 %v9579_v48, %v3794_v32  ;;  %v4003_v28 = vmax.f32 %v3803_v0, 0.0 }
 0x62b   : > { %v7911_v36 = vpop.f32.mrf.mxu1 }
 0x62c   : > { %v3806_v17 = vadd.f32 %v7911_v36, %v9579_v48  ;;  %7984 = vmatprep.mubr.bf16.mxu0 %v4055_v3  ;;  %v4001_v9 = vmax.f32 %v3795_v4, 0.0 }
 0x62d   : > { %v3797_v7 = vpop.f32.mrf.mxu1  ;;  %7985 = vmatmul.mubr.bf16.gmra.mxu0 %v4056_v18 }
 0x62e   : > { %v3798_v24 = vadd.f32 %v9579_v48, %v3797_v7  ;;  %v4004_v61 = vmax.f32 %v3806_v17, 0.0 }
 0x62f   : > { %v7914_v8 = vpop.f32.mrf.mxu1 }
 0x630   : > { %v4002_v37 = vmax.f32 %v3798_v24, 0.0  ;;  %v4058_v55 = vpack.c.bf16 %v4004_v61, %v4003_v28  ;;  %v3819_v38 = vadd.f32 %v7914_v8, %v9579_v48 }
 0x631   : > { %v3810_v10 = vpop.f32.mrf.mxu1 }
 0x632   : > { %v4057_v39 = vpack.c.bf16 %v4002_v37, %v4001_v9  ;;  %v3811_v15 = vadd.f32 %v9579_v48, %v3810_v10  ;;  %v4007_v40 = vmax.f32 %v3819_v38, 0.0 }
 0x633   : > { %v7915_v27 = vpop.f32.mrf.mxu1 }
 0x634   : > { %v3822_v42 = vadd.f32 %v7915_v27, %v9579_v48  ;;  %7988 = vmatprep.mubr.bf16.mxu0 %v4057_v39  ;;  %v4005_v31 = vmax.f32 %v3811_v15, 0.0 }
 0x635   : > { %v3813_v51 = vpop.f32.mrf.mxu1  ;;  %7989 = vmatmul.mubr.bf16.gmra.mxu0 %v4058_v55 }
 0x636   : > { %v3814_v20 = vadd.f32 %v9579_v48, %v3813_v51  ;;  %v4008_v47 = vmax.f32 %v3822_v42, 0.0 }
 0x637   : > { %v7918_v54 = vpop.f32.mrf.mxu1 }
 0x638   : > { %v4006_v5 = vmax.f32 %v3814_v20, 0.0  ;;  %v4060_v12 = vpack.c.bf16 %v4008_v47, %v4007_v40  ;;  %v3835_v45 = vadd.f32 %v7918_v54, %v9579_v48 }
 0x639   : > { %v3826_v30 = vpop.f32.mrf.mxu1 }
 0x63a   : > { %v4059_v41 = vpack.c.bf16 %v4006_v5, %v4005_v31  ;;  %v3827_v56 = vadd.f32 %v9579_v48, %v3826_v30  ;;  %v4011_v14 = vmax.f32 %v3835_v45, 0.0 }
 0x63b   : > { %v7919_v6 = vpop.f32.mrf.mxu1 }
 0x63c   : > { %v3838_v21 = vadd.f32 %v7919_v6, %v9579_v48  ;;  %7992 = vmatprep.mubr.bf16.mxu0 %v4059_v41  ;;  %v4009_v53 = vmax.f32 %v3827_v56, 0.0 }
 0x63d   : > { %v3829_v50 = vpop.f32.mrf.mxu1  ;;  %7993 = vmatmul.mubr.bf16.gmra.mxu0 %v4060_v12 }
 0x63e   : > { %v3830_v23 = vadd.f32 %v9579_v48, %v3829_v50  ;;  %v4012_v44 = vmax.f32 %v3838_v21, 0.0 }
 0x63f   : > { %v7922_v60 = vpop.f32.mrf.mxu1 }
 0x640   : > { %v4010_v43 = vmax.f32 %v3830_v23, 0.0  ;;  %v4062_v11 = vpack.c.bf16 %v4012_v44, %v4011_v14  ;;  %v3851_v57 = vadd.f32 %v7922_v60, %v9579_v48 }
 0x641   : > { %v3842_v1 = vpop.f32.mrf.mxu1 }
 0x642   : > { %v4061_v33 = vpack.c.bf16 %v4010_v43, %v4009_v53  ;;  %v3843_v52 = vadd.f32 %v9579_v48, %v3842_v1  ;;  %v4015_v29 = vmax.f32 %v3851_v57, 0.0 }
 0x643   : > { %v7923_v16 = vpop.f32.mrf.mxu1 }
 0x644   : > { %v3854_v25 = vadd.f32 %v7923_v16, %v9579_v48  ;;  %7996 = vmatprep.mubr.bf16.mxu0 %v4061_v33  ;;  %v4013_v34 = vmax.f32 %v3843_v52, 0.0 }
 0x645   : > { %v3845_v13 = vpop.f32.mrf.mxu1  ;;  %7997 = vmatmul.mubr.bf16.gmra.mxu0 %v4062_v11 }
 0x646   : > { %v3846_v2 = vadd.f32 %v9579_v48, %v3845_v13  ;;  %v4016_v35 = vmax.f32 %v3854_v25, 0.0 }
 0x647   : > { %v7926_v58 = vpop.f32.mrf.mxu1 }
 0x648   : > { %v4014_v49 = vmax.f32 %v3846_v2, 0.0  ;;  %v4064_v26 = vpack.c.bf16 %v4016_v35, %v4015_v29  ;;  %v3867_v59 = vadd.f32 %v7926_v58, %v9579_v48 }
 0x649   : > { %v3858_v63 = vpop.f32.mrf.mxu1 }
 0x64a   : > { %v4063_v62 = vpack.c.bf16 %v4014_v49, %v4013_v34  ;;  %v3859_v19 = vadd.f32 %v9579_v48, %v3858_v63  ;;  %v4019_v0 = vmax.f32 %v3867_v59, 0.0 }
 0x64b   : > { %v7927_v22 = vpop.f32.mrf.mxu1 }
 0x64c   : > { %v3870_v46 = vadd.f32 %v7927_v22, %v9579_v48  ;;  %8000 = vmatprep.mubr.bf16.mxu0 %v4063_v62  ;;  %v4017_v4 = vmax.f32 %v3859_v19, 0.0 }
 0x64d   : > { %v3861_v32 = vpop.f32.mrf.mxu1  ;;  %8001 = vmatmul.mubr.bf16.gmra.mxu0 %v4064_v26 }
 0x64e   : > { %v3862_v3 = vadd.f32 %v9579_v48, %v3861_v32  ;;  %v4020_v18 = vmax.f32 %v3870_v46, 0.0 }
 0x64f   : > { %v7930_v36 = vpop.f32.mrf.mxu1 }
 0x650   : > { %v4018_v17 = vmax.f32 %v3862_v3, 0.0  ;;  %v4066_v61 = vpack.c.bf16 %v4020_v18, %v4019_v0  ;;  %v3883_v28 = vadd.f32 %v7930_v36, %v9579_v48 }
 0x651   : > { %v3874_v7 = vpop.f32.mrf.mxu1 }
 0x652   : > { %v4065_v24 = vpack.c.bf16 %v4018_v17, %v4017_v4  ;;  %v3875_v9 = vadd.f32 %v9579_v48, %v3874_v7  ;;  %v4023_v38 = vmax.f32 %v3883_v28, 0.0 }
 0x653   : > { %v7931_v8 = vpop.f32.mrf.mxu1 }
 0x654   : > { %v3886_v37 = vadd.f32 %v7931_v8, %v9579_v48  ;;  %8004 = vmatprep.mubr.bf16.mxu0 %v4065_v24  ;;  %v4021_v15 = vmax.f32 %v3875_v9, 0.0 }
 0x655   : > { %v3877_v10 = vpop.f32.mrf.mxu1  ;;  %8005 = vmatmul.mubr.bf16.gmra.mxu0 %v4066_v61 }
 0x656   : > { %v3878_v39 = vadd.f32 %v9579_v48, %v3877_v10  ;;  %v4024_v55 = vmax.f32 %v3886_v37, 0.0 }
 0x657   : > { %v7934_v27 = vpop.f32.mrf.mxu1 }
 0x658   : > { %v4022_v42 = vmax.f32 %v3878_v39, 0.0  ;;  %v4068_v47 = vpack.c.bf16 %v4024_v55, %v4023_v38  ;;  %v3899_v40 = vadd.f32 %v7934_v27, %v9579_v48 }
 0x659   : > { %v3890_v51 = vpop.f32.mrf.mxu1 }
 0x65a   : > { %v4067_v20 = vpack.c.bf16 %v4022_v42, %v4021_v15  ;;  %v3891_v31 = vadd.f32 %v9579_v48, %v3890_v51  ;;  %v4027_v45 = vmax.f32 %v3899_v40, 0.0 }
 0x65b   : > { %v7935_v54 = vpop.f32.mrf.mxu1 }
 0x65c   : > { %v3902_v5 = vadd.f32 %v7935_v54, %v9579_v48  ;;  %8008 = vmatprep.mubr.bf16.mxu0 %v4067_v20  ;;  %v4025_v56 = vmax.f32 %v3891_v31, 0.0 }
 0x65d   : > { %v3893_v30 = vpop.f32.mrf.mxu1  ;;  %8009 = vmatmul.mubr.bf16.gmra.mxu0 %v4068_v47 }
 0x65e   : > { %v3894_v41 = vadd.f32 %v9579_v48, %v3893_v30  ;;  %v4028_v12 = vmax.f32 %v3902_v5, 0.0 }
 0x65f   : > { %v7938_v6 = vpop.f32.mrf.mxu1 }
 0x660   : > { %v4026_v21 = vmax.f32 %v3894_v41, 0.0  ;;  %v4070_v44 = vpack.c.bf16 %v4028_v12, %v4027_v45  ;;  %v3915_v14 = vadd.f32 %v7938_v6, %v9579_v48 }
 0x661   : > { %v3906_v50 = vpop.f32.mrf.mxu1 }
 0x662   : > { %v4069_v23 = vpack.c.bf16 %v4026_v21, %v4025_v56  ;;  %v3907_v53 = vadd.f32 %v9579_v48, %v3906_v50  ;;  %v4031_v57 = vmax.f32 %v3915_v14, 0.0 }
 0x663   : > { %v7939_v60 = vpop.f32.mrf.mxu1 }
 0x664   : > { %v3918_v43 = vadd.f32 %v7939_v60, %v9579_v48  ;;  %8012 = vmatprep.mubr.bf16.mxu0 %v4069_v23  ;;  %v4029_v52 = vmax.f32 %v3907_v53, 0.0 }
 0x665   : > { %v3909_v1 = vpop.f32.mrf.mxu1  ;;  %8013 = vmatmul.mubr.bf16.gmra.mxu0 %v4070_v44 }
 0x666   : > { %v3910_v33 = vadd.f32 %v9579_v48, %v3909_v1  ;;  %v4032_v11 = vmax.f32 %v3918_v43, 0.0 }
 0x667   : > { %v7942_v16 = vpop.f32.mrf.mxu1 }
 0x668   : > { %v4030_v25 = vmax.f32 %v3910_v33, 0.0  ;;  %v4072_v35 = vpack.c.bf16 %v4032_v11, %v4031_v57  ;;  %v3931_v29 = vadd.f32 %v7942_v16, %v9579_v48  ;;  %v8605_v33 = vld [vmem:[%s8905_s5] sm:$0xff]   ;;  %v8549_v11 = vld [vmem:[#allocation4 + $0x2f8] sm:$0xff]  }
 0x669   : > { %v3922_v13 = vpop.f32.mrf.mxu1  ;;  %v8550_v16 = vld [vmem:[#allocation4 + $0x2b8] sm:$0xff]   ;;  %8116 = vmatprep.subr.bf16.mxu0 %v8549_v11 }
 0x66a   : > { %v4071_v2 = vpack.c.bf16 %v4030_v25, %v4029_v52  ;;  %v3923_v34 = vadd.f32 %v9579_v48, %v3922_v13  ;;  %v4035_v59 = vmax.f32 %v3931_v29, 0.0  ;;  %8196 = vmatprep.subr.bf16.mxu1 %v8550_v16  ;;  %8117 = vmatpush3.bf16.msra.mxu0 %v8549_v11  ;;  %v8551_v52 = vld [vmem:[#allocation4 + $0x2f0] sm:$0xff]   ;;  %v8553_v25 = vld [vmem:[#allocation4 + $0x2e8] sm:$0xff]   ;;  %v9646_v13 = vld [vmem:[#allocation6 + $0x7] ss:$0 sm:$0xff] }
 0x66b   : > { %v7943_v58 = vpop.f32.mrf.mxu1  ;;  %8118 = vmatprep.subr.bf16.mxu0 %v8551_v52  ;;  %v8555_v29 = vld [vmem:[#allocation4 + $0x2e0] sm:$0xff]  }
 0x66c   : > { %v3934_v49 = vadd.f32 %v7943_v58, %v9579_v48  ;;  %8016 = vmatprep.mubr.bf16.mxu0 %v4071_v2  ;;  %v4033_v19 = vmax.f32 %v3923_v34, 0.0 }
 0x66d   : > { %v3925_v63 = vpop.f32.mrf.mxu1  ;;  %8017 = vmatmul.mubr.bf16.gmra.mxu0 %v4072_v35 }
 0x66e   : > { %v3926_v62 = vadd.f32 %v9579_v48, %v3925_v63  ;;  %v4036_v26 = vmax.f32 %v3934_v49, 0.0  ;;  %8119 = vmatpush3.bf16.msra.mxu0 %v8551_v52  ;;  %v8557_v63 = vld [vmem:[#allocation4 + $0x2d8] sm:$0xff]  }
 0x66f   : > { %v7946_v22 = vpop.f32.mrf.mxu1  ;;  %8120 = vmatprep.subr.bf16.mxu0 %v8553_v25 }
 0x670   : > { %v4034_v46 = vmax.f32 %v3926_v62, 0.0  ;;  %v4074_v18 = vpack.c.bf16 %v4036_v26, %v4035_v59  ;;  %v3947_v0 = vadd.f32 %v7946_v22, %v9579_v48 }
 0x671   : > { %v3938_v32 = vpop.f32.mrf.mxu1 }
 0x672   : > { %v4073_v3 = vpack.c.bf16 %v4034_v46, %v4033_v19  ;;  %v3939_v4 = vadd.f32 %v9579_v48, %v3938_v32  ;;  %v4039_v28 = vmax.f32 %v3947_v0, 0.0  ;;  %8121 = vmatpush3.bf16.msra.mxu0 %v8553_v25 }
 0x673   : > { %v7947_v36 = vpop.f32.mrf.mxu1  ;;  %8122 = vmatprep.subr.bf16.mxu0 %v8555_v29 }
 0x674   : > { %v3950_v17 = vadd.f32 %v7947_v36, %v9579_v48  ;;  %8020 = vmatprep.mubr.bf16.mxu0 %v4073_v3  ;;  %v4037_v9 = vmax.f32 %v3939_v4, 0.0  ;;  %v8559_v3 = vld [vmem:[#allocation4 + $0x2d0] sm:$0xff]  }
 0x675   : > { %v3941_v7 = vpop.f32.mrf.mxu1  ;;  %8021 = vmatmul.mubr.bf16.gmra.mxu0 %v4074_v18 }
 0x676   : > { %v3942_v24 = vadd.f32 %v9579_v48, %v3941_v7  ;;  %v4040_v61 = vmax.f32 %v3950_v17, 0.0  ;;  %8123 = vmatpush3.bf16.msra.mxu0 %v8555_v29  ;;  %v8552_v17 = vld [vmem:[#allocation4 + $0x2b0] sm:$0xff]  }
 0x677   : > { %v7950_v8 = vpop.f32.mrf.mxu1  ;;  %8124 = vmatprep.subr.bf16.mxu0 %v8557_v63 }
 0x678   : > { %v4038_v37 = vmax.f32 %v3942_v24, 0.0  ;;  %v4076_v55 = vpack.c.bf16 %v4040_v61, %v4039_v28  ;;  %v3963_v38 = vadd.f32 %v7950_v8, %v9579_v48  ;;  %v8561_v8 = vld [vmem:[#allocation4 + $0x2c8] sm:$0xff]  }
 0x679   : > { %v3954_v10 = vpop.f32.mrf.mxu1 }
 0x67a   : > { %v4075_v39 = vpack.c.bf16 %v4038_v37, %v4037_v9  ;;  %v3955_v15 = vadd.f32 %v9579_v48, %v3954_v10  ;;  %v4043_v40 = vmax.f32 %v3963_v38, 0.0  ;;  %8125 = vmatpush3.bf16.msra.mxu0 %v8557_v63  ;;  %v8554_v10 = vld [vmem:[#allocation4 + $0x2a8] sm:$0xff]  }
 0x67b   : > { %v7951_v27 = vpop.f32.mrf.mxu1  ;;  %8126 = vmatprep.subr.bf16.mxu0 %v8559_v3 }
 0x67c   : > { %v3966_v42 = vadd.f32 %v7951_v27, %v9579_v48  ;;  %8024 = vmatprep.mubr.bf16.mxu0 %v4075_v39  ;;  %v4041_v31 = vmax.f32 %v3955_v15, 0.0 }
 0x67d   : > { %v3957_v51 = vpop.f32.mrf.mxu1  ;;  %8025 = vmatmul.mubr.bf16.gmra.mxu0 %v4076_v55 }
 0x67e   : > { %v3958_v20 = vadd.f32 %v9579_v48, %v3957_v51  ;;  %v4044_v47 = vmax.f32 %v3966_v42, 0.0  ;;  %8127 = vmatpush3.bf16.msra.mxu0 %v8559_v3  ;;  %v8563_v42 = vld [vmem:[#allocation4 + $0x2c0] sm:$0xff]  }
 0x67f   : > { %v7954_v54 = vpop.f32.mrf.mxu1  ;;  %8128 = vmatprep.subr.bf16.mxu0 %v8561_v8 }
 0x680   : > { %v4042_v5 = vmax.f32 %v3958_v20, 0.0  ;;  %v4078_v12 = vpack.c.bf16 %v4044_v47, %v4043_v40  ;;  %v3979_v45 = vadd.f32 %v7954_v54, %v9579_v48  ;;  %v8556_v47 = vld [vmem:[#allocation4 + $0x2a0] sm:$0xff]  }
 0x681   : > { %v3970_v30 = vpop.f32.mrf.mxu1 }
 0x682   : > { %v4077_v41 = vpack.c.bf16 %v4042_v5, %v4041_v31  ;;  %v3971_v56 = vadd.f32 %v9579_v48, %v3970_v30  ;;  %v4047_v43 = vmax.f32 %v3979_v45, 0.0  ;;  %8129 = vmatpush3.bf16.msra.mxu0 %v8561_v8 }
 0x683   : > { %v7955_v6 = vpop.f32.mrf.mxu1  ;;  %8130 = vmatprep.subr.bf16.mxu0 %v8563_v42 }
 0x684   : > { %v3982_v21 = vadd.f32 %v7955_v6, %v9579_v48  ;;  %8028 = vmatprep.mubr.bf16.mxu0 %v4077_v41  ;;  %v4045_v60 = vmax.f32 %v3971_v56, 0.0  ;;  %v8558_v6 = vld [vmem:[#allocation4 + $0x298] sm:$0xff]  }
 0x685   : > { %v3973_v50 = vpop.f32.mrf.mxu1  ;;  %8029 = vmatmul.mubr.bf16.gmra.mxu0 %v4078_v12 }
 0x686   : > { %v3974_v23 = vadd.f32 %v9579_v48, %v3973_v50  ;;  %v4048_v44 = vmax.f32 %v3982_v21, 0.0  ;;  %8131 = vmatpush3.bf16.msra.mxu0 %v8563_v42 }
 0x688   : > { %v4046_v53 = vmax.f32 %v3974_v23, 0.0  ;;  %v4080_v1 = vpack.c.bf16 %v4048_v44, %v4047_v43  ;;  %v8606_v43 = vld [vmem:[%s8905_s5 + $0x8] sm:$0xff]  }
 0x68a   : > { %v4079_v14 = vpack.c.bf16 %v4046_v53, %v4045_v60  ;;  %v8560_v53 = vld [vmem:[#allocation4 + $0x290] sm:$0xff]  }
 0x68c   : > { %8032 = vmatprep.mubr.bf16.mxu0 %v4079_v14 }
 0x68d   : > { %8033 = vmatmul.mubr.bf16.gmra.mxu0 %v4080_v1 }
 0x68e   : > { %8132 = vmatprep.mubr.bf16.mxu0 %v8605_v33  ;;  %v8607_v33 = vld [vmem:[%s8905_s5 + $0x10] sm:$0xff]  }
 0x695   : > { %8133 = vmatmul.mubr.bf16.vlgmr.msra.gmra.mxu0 %v8606_v43 }
 0x696   : > { %8136 = vmatprep.mubr.bf16.mxu0 %v8607_v33  ;;  %v8614_v33 = vld [vmem:[%s8905_s5 + $0x48] sm:$0xff]  }
 0x6d5   : > { %v7974_v48 = vpop.f32.mrf.mxu0 }
 0x6d6   : > { %v4194_v34 = vadd.f32 %v7974_v48, %v9646_v13 }
 0x6d7   : > { %v4185_v57 = vpop.f32.mrf.mxu0 }
 0x6d8   : > { %v4186_v35 = vadd.f32 %v9646_v13, %v4185_v57  ;;  %v4442_v59 = vmax.f32 %v4194_v34, 0.0  ;;  %v8562_v57 = vld [vmem:[#allocation4 + $0x288] sm:$0xff]  }
 0x6d9   : > { %v7975_v2 = vpop.f32.mrf.mxu0 }
 0x6da   : > { %v4197_v58 = vadd.f32 %v7975_v2, %v9646_v13  ;;  %v4440_v19 = vmax.f32 %v4186_v35, 0.0 }
 0x6db   : > { %v4188_v49 = vpop.f32.mrf.mxu0 }
 0x6dc   : > { %v4189_v62 = vadd.f32 %v9646_v13, %v4188_v49  ;;  %v4443_v26 = vmax.f32 %v4197_v58, 0.0 }
 0x6dd   : > { %v7978_v22 = vpop.f32.mrf.mxu0 }
 0x6de   : > { %v4441_v46 = vmax.f32 %v4189_v62, 0.0  ;;  %v4505_v36 = vpack.c.bf16 %v4443_v26, %v4442_v59  ;;  %v4210_v24 = vadd.f32 %v7978_v22, %v9646_v13  ;;  %v8564_v62 = vld [vmem:[#allocation4 + $0x280] sm:$0xff]   ;;  %v8608_v26 = vld [vmem:[%s8905_s5 + $0x18] sm:$0xff]  }
 0x6df   : > { %v4201_v32 = vpop.f32.mrf.mxu0  ;;  %8137 = vmatmul.mubr.bf16.gmra.mxu0 %v8608_v26 }
 0x6e0   : > { %v4504_v18 = vpack.c.bf16 %v4441_v46, %v4440_v19  ;;  %v4202_v0 = vadd.f32 %v9646_v13, %v4201_v32  ;;  %v4446_v27 = vmax.f32 %v4210_v24, 0.0  ;;  %v8609_v46 = vld [vmem:[%s8905_s5 + $0x20] sm:$0xff]  }
 0x6e1   : > { %v7979_v4 = vpop.f32.mrf.mxu0  ;;  %8140 = vmatprep.mubr.bf16.mxu0 %v8609_v46 }
 0x6e2   : > { %v4213_v7 = vadd.f32 %v7979_v4, %v9646_v13  ;;  %8052 = vmatprep.mubr.bf16.mxu1 %v4504_v18  ;;  %v4444_v39 = vmax.f32 %v4202_v0, 0.0 }
 0x6e3   : > { %v4204_v61 = vpop.f32.mrf.mxu0  ;;  %8053 = vmatmul.mubr.bf16.vlgmr.msra.gmra.mxu1 %v4505_v36 }
 0x6e4   : > { %v4205_v9 = vadd.f32 %v9646_v13, %v4204_v61  ;;  %8197 = vmatpush3.bf16.msra.mxu1 %v8550_v16  ;;  %v4447_v37 = vmax.f32 %v4213_v7, 0.0 }
 0x6e5   : > { %v7982_v28 = vpop.f32.mrf.mxu0  ;;  %8198 = vmatprep.subr.bf16.mxu1 %v8552_v17 }
 0x6e6   : > { %v4445_v55 = vmax.f32 %v4205_v9, 0.0  ;;  %v4507_v51 = vpack.c.bf16 %v4447_v37, %v4446_v27  ;;  %v4226_v5 = vadd.f32 %v7982_v28, %v9646_v13  ;;  %v8610_v9 = vld [vmem:[%s8905_s5 + $0x28] sm:$0xff]  }
 0x6e7   : > { %v4217_v15 = vpop.f32.mrf.mxu0  ;;  %8141 = vmatmul.mubr.bf16.gmra.mxu0 %v8610_v9 }
 0x6e8   : > { %v4506_v38 = vpack.c.bf16 %v4445_v55, %v4444_v39  ;;  %8199 = vmatpush3.bf16.msra.mxu1 %v8552_v17  ;;  %v4218_v54 = vadd.f32 %v9646_v13, %v4217_v15  ;;  %v4450_v45 = vmax.f32 %v4226_v5, 0.0 }
 0x6e9   : > { %v7983_v20 = vpop.f32.mrf.mxu0  ;;  %8200 = vmatprep.subr.bf16.mxu1 %v8554_v10 }
 0x6ea   : > { %v4229_v31 = vadd.f32 %v7983_v20, %v9646_v13  ;;  %8056 = vmatprep.mubr.bf16.mxu1 %v4506_v38  ;;  %v4448_v56 = vmax.f32 %v4218_v54, 0.0 }
 0x6eb   : > { %v4220_v40 = vpop.f32.mrf.mxu0  ;;  %8057 = vmatmul.mubr.bf16.gmra.mxu1 %v4507_v51 }
 0x6ec   : > { %v4221_v30 = vadd.f32 %v9646_v13, %v4220_v40  ;;  %8201 = vmatpush3.bf16.msra.mxu1 %v8554_v10  ;;  %v4451_v41 = vmax.f32 %v4229_v31, 0.0  ;;  %v8611_v10 = vld [vmem:[%s8905_s5 + $0x30] sm:$0xff]   ;;  %v8612_v40 = vld [vmem:[%s8905_s5 + $0x38] sm:$0xff]  }
 0x6ed   : > { %v7986_v12 = vpop.f32.mrf.mxu0  ;;  %8202 = vmatprep.subr.bf16.mxu1 %v8556_v47  ;;  %8144 = vmatprep.mubr.bf16.mxu0 %v8611_v10 }
 0x6ee   : > { %v4449_v21 = vmax.f32 %v4221_v30, 0.0  ;;  %v4509_v44 = vpack.c.bf16 %v4451_v41, %v4450_v45  ;;  %v4242_v11 = vadd.f32 %v7986_v12, %v9646_v13  ;;  %v8613_v12 = vld [vmem:[%s8905_s5 + $0x40] sm:$0xff]  }
 0x6ef   : > { %v4233_v50 = vpop.f32.mrf.mxu0  ;;  %8145 = vmatmul.mubr.bf16.gmra.mxu0 %v8612_v40 }
 0x6f0   : > { %v4508_v23 = vpack.c.bf16 %v4449_v21, %v4448_v56  ;;  %8203 = vmatpush3.bf16.msra.mxu1 %v8556_v47  ;;  %v4234_v14 = vadd.f32 %v9646_v13, %v4233_v50  ;;  %v4454_v58 = vmax.f32 %v4242_v11, 0.0  ;;  %8148 = vmatprep.mubr.bf16.mxu0 %v8613_v12 }
 0x6f1   : > { %v7987_v60 = vpop.f32.mrf.mxu0  ;;  %8204 = vmatprep.subr.bf16.mxu1 %v8558_v6 }
 0x6f2   : > { %v4245_v1 = vadd.f32 %v7987_v60, %v9646_v13  ;;  %8060 = vmatprep.mubr.bf16.mxu1 %v4508_v23  ;;  %v4452_v2 = vmax.f32 %v4234_v14, 0.0 }
 0x6f3   : > { %v4236_v16 = vpop.f32.mrf.mxu0  ;;  %8061 = vmatmul.mubr.bf16.gmra.mxu1 %v4509_v44 }
 0x6f4   : > { %v4237_v52 = vadd.f32 %v9646_v13, %v4236_v16  ;;  %8205 = vmatpush3.bf16.msra.mxu1 %v8558_v6  ;;  %v4455_v25 = vmax.f32 %v4245_v1, 0.0 }
 0x6f5   : > { %v7990_v48 = vpop.f32.mrf.mxu0  ;;  %8206 = vmatprep.subr.bf16.mxu1 %v8560_v53 }
 0x6f6   : > { %v4453_v35 = vmax.f32 %v4237_v52, 0.0  ;;  %v4511_v29 = vpack.c.bf16 %v4455_v25, %v4454_v58  ;;  %v4258_v59 = vadd.f32 %v7990_v48, %v9646_v13  ;;  %v8615_v52 = vld [vmem:[%s8905_s5 + $0x50] sm:$0xff]  }
 0x6f7   : > { %v4249_v34 = vpop.f32.mrf.mxu0  ;;  %8149 = vmatmul.mubr.bf16.gmra.mxu0 %v8614_v33 }
 0x6f8   : > { %v4510_v49 = vpack.c.bf16 %v4453_v35, %v4452_v2  ;;  %8207 = vmatpush3.bf16.msra.mxu1 %v8560_v53  ;;  %v4250_v22 = vadd.f32 %v9646_v13, %v4249_v34  ;;  %v4458_v0 = vmax.f32 %v4258_v59, 0.0  ;;  %8152 = vmatprep.mubr.bf16.mxu0 %v8615_v52  ;;  %v8617_v59 = vld [vmem:[%s8905_s5 + $0x60] sm:$0xff]  }
 0x6f9   : > { %v7991_v63 = vpop.f32.mrf.mxu0  ;;  %8208 = vmatprep.subr.bf16.mxu1 %v8562_v57 }
 0x6fa   : > { %v4261_v19 = vadd.f32 %v7991_v63, %v9646_v13  ;;  %8064 = vmatprep.mubr.bf16.mxu1 %v4510_v49  ;;  %v4456_v4 = vmax.f32 %v4250_v22, 0.0  ;;  %v8616_v22 = vld [vmem:[%s8905_s5 + $0x58] sm:$0xff]  }
 0x6fb   : > { %v4252_v32 = vpop.f32.mrf.mxu0  ;;  %8065 = vmatmul.mubr.bf16.gmra.mxu1 %v4511_v29 }
 0x6fc   : > { %v4253_v3 = vadd.f32 %v9646_v13, %v4252_v32  ;;  %8209 = vmatpush3.bf16.msra.mxu1 %v8562_v57  ;;  %v4459_v18 = vmax.f32 %v4261_v19, 0.0 }
 0x6fd   : > { %v7994_v36 = vpop.f32.mrf.mxu0  ;;  %8210 = vmatprep.subr.bf16.mxu1 %v8564_v62 }
 0x6fe   : > { %v4457_v17 = vmax.f32 %v4253_v3, 0.0  ;;  %v4513_v61 = vpack.c.bf16 %v4459_v18, %v4458_v0  ;;  %v4274_v39 = vadd.f32 %v7994_v36, %v9646_v13 }
 0x6ff   : > { %v4265_v7 = vpop.f32.mrf.mxu0  ;;  %8153 = vmatmul.mubr.bf16.gmra.mxu0 %v8616_v22 }
 0x700   : > { %v4512_v24 = vpack.c.bf16 %v4457_v17, %v4456_v4  ;;  %8211 = vmatpush3.bf16.msra.mxu1 %v8564_v62  ;;  %v4266_v37 = vadd.f32 %v9646_v13, %v4265_v7  ;;  %v4462_v20 = vmax.f32 %v4274_v39, 0.0  ;;  %8156 = vmatprep.mubr.bf16.mxu0 %v8617_v59  ;;  %v8619_v39 = vld [vmem:[%s8905_s5 + $0x70] sm:$0xff]  }
 0x701   : > { %v7995_v8 = vpop.f32.mrf.mxu0 }
 0x702   : > { %v4277_v28 = vadd.f32 %v7995_v8, %v9646_v13  ;;  %8068 = vmatprep.mubr.bf16.mxu1 %v4512_v24  ;;  %v4460_v38 = vmax.f32 %v4266_v37, 0.0  ;;  %v8618_v37 = vld [vmem:[%s8905_s5 + $0x68] sm:$0xff]  }
 0x703   : > { %v4268_v55 = vpop.f32.mrf.mxu0  ;;  %8069 = vmatmul.mubr.bf16.gmra.mxu1 %v4513_v61 }
 0x704   : > { %v4269_v27 = vadd.f32 %v9646_v13, %v4268_v55  ;;  %v4463_v15 = vmax.f32 %v4277_v28, 0.0 }
 0x705   : > { %v7998_v42 = vpop.f32.mrf.mxu0 }
 0x706   : > { %v4461_v51 = vmax.f32 %v4269_v27, 0.0  ;;  %v4515_v31 = vpack.c.bf16 %v4463_v15, %v4462_v20  ;;  %v4290_v6 = vadd.f32 %v7998_v42, %v9646_v13 }
 0x707   : > { %v4281_v47 = vpop.f32.mrf.mxu0  ;;  %8157 = vmatmul.mubr.bf16.gmra.mxu0 %v8618_v37 }
 0x708   : > { %v4514_v54 = vpack.c.bf16 %v4461_v51, %v4460_v38  ;;  %v4282_v30 = vadd.f32 %v9646_v13, %v4281_v47  ;;  %v4466_v60 = vmax.f32 %v4290_v6, 0.0  ;;  %8160 = vmatprep.mubr.bf16.mxu0 %v8619_v39  ;;  %v8621_v6 = vld [vmem:[%s8905_s5 + $0x80] sm:$0xff]  }
 0x709   : > { %v7999_v5 = vpop.f32.mrf.mxu0 }
 0x70a   : > { %v4293_v41 = vadd.f32 %v7999_v5, %v9646_v13  ;;  %8072 = vmatprep.mubr.bf16.mxu1 %v4514_v54  ;;  %v4464_v23 = vmax.f32 %v4282_v30, 0.0  ;;  %v8620_v30 = vld [vmem:[%s8905_s5 + $0x78] sm:$0xff]  }
 0x70b   : > { %v4284_v56 = vpop.f32.mrf.mxu0  ;;  %8073 = vmatmul.mubr.bf16.gmra.mxu1 %v4515_v31 }
 0x70c   : > { %v4285_v21 = vadd.f32 %v9646_v13, %v4284_v56  ;;  %v4467_v45 = vmax.f32 %v4293_v41, 0.0 }
 0x70d   : > { %v8002_v50 = vpop.f32.mrf.mxu0 }
 0x70e   : > { %v4465_v44 = vmax.f32 %v4285_v21, 0.0  ;;  %v4517_v14 = vpack.c.bf16 %v4467_v45, %v4466_v60  ;;  %v4306_v25 = vadd.f32 %v8002_v50, %v9646_v13 }
 0x70f   : > { %v4297_v53 = vpop.f32.mrf.mxu0  ;;  %8161 = vmatmul.mubr.bf16.gmra.mxu0 %v8620_v30 }
 0x710   : > { %v4516_v43 = vpack.c.bf16 %v4465_v44, %v4464_v23  ;;  %v4298_v11 = vadd.f32 %v9646_v13, %v4297_v53  ;;  %v4470_v49 = vmax.f32 %v4306_v25, 0.0  ;;  %8164 = vmatprep.mubr.bf16.mxu0 %v8621_v6  ;;  %v8623_v25 = vld [vmem:[%s8905_s5 + $0x90] sm:$0xff]  }
 0x711   : > { %v8003_v1 = vpop.f32.mrf.mxu0 }
 0x712   : > { %v4309_v16 = vadd.f32 %v8003_v1, %v9646_v13  ;;  %8076 = vmatprep.mubr.bf16.mxu1 %v4516_v43  ;;  %v4468_v58 = vmax.f32 %v4298_v11, 0.0  ;;  %v8622_v11 = vld [vmem:[%s8905_s5 + $0x88] sm:$0xff]  }
 0x713   : > { %v4300_v48 = vpop.f32.mrf.mxu0  ;;  %8077 = vmatmul.mubr.bf16.gmra.mxu1 %v4517_v14 }
 0x714   : > { %v4301_v57 = vadd.f32 %v9646_v13, %v4300_v48  ;;  %v4471_v2 = vmax.f32 %v4309_v16, 0.0 }
 0x715   : > { %v8006_v35 = vpop.f32.mrf.mxu0 }
 0x716   : > { %v4469_v34 = vmax.f32 %v4301_v57, 0.0  ;;  %v4519_v62 = vpack.c.bf16 %v4471_v2, %v4470_v49  ;;  %v4322_v32 = vadd.f32 %v8006_v35, %v9646_v13 }
 0x717   : > { %v4313_v29 = vpop.f32.mrf.mxu0  ;;  %8165 = vmatmul.mubr.bf16.gmra.mxu0 %v8622_v11 }
 0x718   : > { %v4518_v63 = vpack.c.bf16 %v4469_v34, %v4468_v58  ;;  %v4314_v19 = vadd.f32 %v9646_v13, %v4313_v29  ;;  %v4474_v7 = vmax.f32 %v4322_v32, 0.0  ;;  %8168 = vmatprep.mubr.bf16.mxu0 %v8623_v25  ;;  %v8625_v32 = vld [vmem:[%s8905_s5 + $0xa0] sm:$0xff]  }
 0x719   : > { %v8007_v26 = vpop.f32.mrf.mxu0 }
 0x71a   : > { %v4325_v46 = vadd.f32 %v8007_v26, %v9646_v13  ;;  %8080 = vmatprep.mubr.bf16.mxu1 %v4518_v63  ;;  %v4472_v17 = vmax.f32 %v4314_v19, 0.0  ;;  %v8624_v19 = vld [vmem:[%s8905_s5 + $0x98] sm:$0xff]  }
 0x71b   : > { %v4316_v3 = vpop.f32.mrf.mxu0  ;;  %8081 = vmatmul.mubr.bf16.gmra.mxu1 %v4519_v62 }
 0x71c   : > { %v4317_v18 = vadd.f32 %v9646_v13, %v4316_v3  ;;  %v4475_v36 = vmax.f32 %v4325_v46, 0.0 }
 0x71d   : > { %v8010_v4 = vpop.f32.mrf.mxu0 }
 0x71e   : > { %v4473_v0 = vmax.f32 %v4317_v18, 0.0  ;;  %v4521_v8 = vpack.c.bf16 %v4475_v36, %v4474_v7  ;;  %v4338_v55 = vadd.f32 %v8010_v4, %v9646_v13 }
 0x71f   : > { %v4329_v24 = vpop.f32.mrf.mxu0  ;;  %8169 = vmatmul.mubr.bf16.gmra.mxu0 %v8624_v19  ;;  %v8634_v19 = vld [vmem:[%s8905_s5 + $0xe8] sm:$0xff]  }
 0x720   : > { %v4520_v61 = vpack.c.bf16 %v4473_v0, %v4472_v17  ;;  %v4330_v28 = vadd.f32 %v9646_v13, %v4329_v24  ;;  %v4478_v47 = vmax.f32 %v4338_v55, 0.0  ;;  %8172 = vmatprep.mubr.bf16.mxu0 %v8625_v32  ;;  %v8627_v55 = vld [vmem:[%s8905_s5 + $0xb0] sm:$0xff]  }
 0x721   : > { %v8011_v9 = vpop.f32.mrf.mxu0  ;;  %v8566_v32 = vld [vmem:[#allocation4 + $0x330] sm:$0xff]  }
 0x722   : > { %v4341_v10 = vadd.f32 %v8011_v9, %v9646_v13  ;;  %8084 = vmatprep.mubr.bf16.mxu1 %v4520_v61  ;;  %v4476_v51 = vmax.f32 %v4330_v28, 0.0  ;;  %v8626_v28 = vld [vmem:[%s8905_s5 + $0xa8] sm:$0xff]  }
 0x723   : > { %v4332_v27 = vpop.f32.mrf.mxu0  ;;  %8085 = vmatmul.mubr.bf16.gmra.mxu1 %v4521_v8 }
 0x724   : > { %v4333_v15 = vadd.f32 %v9646_v13, %v4332_v27  ;;  %v4479_v42 = vmax.f32 %v4341_v10, 0.0 }
 0x725   : > { %v8014_v38 = vpop.f32.mrf.mxu0 }
 0x726   : > { %v4477_v20 = vmax.f32 %v4333_v15, 0.0  ;;  %v4523_v5 = vpack.c.bf16 %v4479_v42, %v4478_v47  ;;  %v4354_v56 = vadd.f32 %v8014_v38, %v9646_v13 }
 0x727   : > { %v4345_v54 = vpop.f32.mrf.mxu0  ;;  %8173 = vmatmul.mubr.bf16.gmra.mxu0 %v8626_v28 }
 0x728   : > { %v4522_v31 = vpack.c.bf16 %v4477_v20, %v4476_v51  ;;  %v4346_v41 = vadd.f32 %v9646_v13, %v4345_v54  ;;  %v4482_v53 = vmax.f32 %v4354_v56, 0.0  ;;  %8176 = vmatprep.mubr.bf16.mxu0 %v8627_v55  ;;  %v8629_v56 = vld [vmem:[%s8905_s5 + $0xc0] sm:$0xff]  }
 0x729   : > { %v8015_v40 = vpop.f32.mrf.mxu0  ;;  %v8568_v55 = vld [vmem:[#allocation4 + $0x320] sm:$0xff]  }
 0x72a   : > { %v4357_v12 = vadd.f32 %v8015_v40, %v9646_v13  ;;  %8088 = vmatprep.mubr.bf16.mxu1 %v4522_v31  ;;  %v4480_v44 = vmax.f32 %v4346_v41, 0.0  ;;  %v8628_v41 = vld [vmem:[%s8905_s5 + $0xb8] sm:$0xff]  }
 0x72b   : > { %v4348_v21 = vpop.f32.mrf.mxu0  ;;  %8089 = vmatmul.mubr.bf16.gmra.mxu1 %v4523_v5 }
 0x72c   : > { %v4349_v45 = vadd.f32 %v9646_v13, %v4348_v21  ;;  %v4483_v50 = vmax.f32 %v4357_v12, 0.0 }
 0x72d   : > { %v8018_v23 = vpop.f32.mrf.mxu0 }
 0x72e   : > { %v4481_v60 = vmax.f32 %v4349_v45, 0.0  ;;  %v4525_v1 = vpack.c.bf16 %v4483_v50, %v4482_v53  ;;  %v4370_v48 = vadd.f32 %v8018_v23, %v9646_v13 }
 0x72f   : > { %v4361_v43 = vpop.f32.mrf.mxu0  ;;  %8177 = vmatmul.mubr.bf16.gmra.mxu0 %v8628_v41 }
 0x730   : > { %v4524_v14 = vpack.c.bf16 %v4481_v60, %v4480_v44  ;;  %v4362_v16 = vadd.f32 %v9646_v13, %v4361_v43  ;;  %v4486_v29 = vmax.f32 %v4370_v48, 0.0  ;;  %8180 = vmatprep.mubr.bf16.mxu0 %v8629_v56  ;;  %v8631_v48 = vld [vmem:[%s8905_s5 + $0xd0] sm:$0xff]  }
 0x731   : > { %v8019_v33 = vpop.f32.mrf.mxu0 }
 0x732   : > { %v4373_v52 = vadd.f32 %v8019_v33, %v9646_v13  ;;  %8092 = vmatprep.mubr.bf16.mxu1 %v4524_v14  ;;  %v4484_v34 = vmax.f32 %v4362_v16, 0.0  ;;  %v8630_v16 = vld [vmem:[%s8905_s5 + $0xc8] sm:$0xff]  }
 0x733   : > { %v4364_v57 = vpop.f32.mrf.mxu0  ;;  %8093 = vmatmul.mubr.bf16.gmra.mxu1 %v4525_v1 }
 0x734   : > { %v4365_v2 = vadd.f32 %v9646_v13, %v4364_v57  ;;  %v4487_v35 = vmax.f32 %v4373_v52, 0.0 }
 0x735   : > { %v8022_v58 = vpop.f32.mrf.mxu0 }
 0x736   : > { %v4485_v49 = vmax.f32 %v4365_v2, 0.0  ;;  %v4527_v26 = vpack.c.bf16 %v4487_v35, %v4486_v29  ;;  %v4386_v3 = vadd.f32 %v8022_v58, %v9646_v13 }
 0x737   : > { %v4377_v63 = vpop.f32.mrf.mxu0  ;;  %8181 = vmatmul.mubr.bf16.gmra.mxu0 %v8630_v16 }
 0x738   : > { %v4526_v62 = vpack.c.bf16 %v4485_v49, %v4484_v34  ;;  %v4378_v46 = vadd.f32 %v9646_v13, %v4377_v63  ;;  %v4490_v24 = vmax.f32 %v4386_v3, 0.0  ;;  %8184 = vmatprep.mubr.bf16.mxu0 %v8631_v48  ;;  %v8567_v3 = vld [vmem:[#allocation4 + $0x328] sm:$0xff]  }
 0x739   : > { %v8023_v22 = vpop.f32.mrf.mxu0 }
 0x73a   : > { %v4389_v59 = vadd.f32 %v8023_v22, %v9646_v13  ;;  %8096 = vmatprep.mubr.bf16.mxu1 %v4526_v62  ;;  %v4488_v0 = vmax.f32 %v4378_v46, 0.0  ;;  %v8633_v22 = vld [vmem:[%s8905_s5 + $0xe0] sm:$0xff]   ;;  %v8635_v46 = vld [vmem:[%s8905_s5 + $0xf0] sm:$0xff]  }
 0x73b   : > { %v4380_v18 = vpop.f32.mrf.mxu0  ;;  %8097 = vmatmul.mubr.bf16.gmra.mxu1 %v4527_v26  ;;  %v8632_v26 = vld [vmem:[%s8905_s5 + $0xd8] sm:$0xff]  }
 0x73c   : > { %v4381_v36 = vadd.f32 %v9646_v13, %v4380_v18  ;;  %v4491_v4 = vmax.f32 %v4389_v59, 0.0  ;;  %v8636_v59 = vld [vmem:[%s8905_s5 + $0xf8] sm:$0xff]   ;;  %v9743_v18 = vld [vmem:[#allocation6 + $0x8] ss:$0 sm:$0xff] }
 0x73d   : > { %v8026_v17 = vpop.f32.mrf.mxu0 }
 0x73e   : > { %v4489_v7 = vmax.f32 %v4381_v36, 0.0  ;;  %v4529_v9 = vpack.c.bf16 %v4491_v4, %v4490_v24  ;;  %v4402_v27 = vadd.f32 %v8026_v17, %v9646_v13 }
 0x73f   : > { %v4393_v61 = vpop.f32.mrf.mxu0  ;;  %8185 = vmatmul.mubr.bf16.gmra.mxu0 %v8632_v26  ;;  %v8570_v26 = vld [vmem:[#allocation4 + $0x310] sm:$0xff]  }
 0x740   : > { %v4528_v8 = vpack.c.bf16 %v4489_v7, %v4488_v0  ;;  %v4394_v10 = vadd.f32 %v9646_v13, %v4393_v61  ;;  %v4494_v54 = vmax.f32 %v4402_v27, 0.0  ;;  %8188 = vmatprep.mubr.bf16.mxu0 %v8633_v22 }
 0x741   : > { %v8027_v37 = vpop.f32.mrf.mxu0 }
 0x742   : > { %v4405_v39 = vadd.f32 %v8027_v37, %v9646_v13  ;;  %8100 = vmatprep.mubr.bf16.mxu1 %v4528_v8  ;;  %v4492_v20 = vmax.f32 %v4394_v10, 0.0 }
 0x743   : > { %v4396_v15 = vpop.f32.mrf.mxu0  ;;  %8101 = vmatmul.mubr.bf16.gmra.mxu1 %v4529_v9 }
 0x744   : > { %v4397_v42 = vadd.f32 %v9646_v13, %v4396_v15  ;;  %v4495_v38 = vmax.f32 %v4405_v39, 0.0 }
 0x745   : > { %v8030_v51 = vpop.f32.mrf.mxu0 }
 0x746   : > { %v4493_v47 = vmax.f32 %v4397_v42, 0.0  ;;  %v4531_v40 = vpack.c.bf16 %v4495_v38, %v4494_v54  ;;  %v4418_v21 = vadd.f32 %v8030_v51, %v9646_v13 }
 0x747   : > { %v4409_v31 = vpop.f32.mrf.mxu0  ;;  %8189 = vmatmul.mubr.bf16.gmra.mxu0 %v8634_v19 }
 0x748   : > { %v4530_v5 = vpack.c.bf16 %v4493_v47, %v4492_v20  ;;  %v4410_v12 = vadd.f32 %v9646_v13, %v4409_v31  ;;  %v4498_v43 = vmax.f32 %v4418_v21, 0.0  ;;  %8192 = vmatprep.mubr.bf16.mxu0 %v8635_v46 }
 0x749   : > { %v8031_v30 = vpop.f32.mrf.mxu0 }
 0x74a   : > { %v4421_v6 = vadd.f32 %v8031_v30, %v9646_v13  ;;  %8104 = vmatprep.mubr.bf16.mxu1 %v4530_v5  ;;  %v4496_v60 = vmax.f32 %v4410_v12, 0.0 }
 0x74b   : > { %v4412_v45 = vpop.f32.mrf.mxu0  ;;  %8105 = vmatmul.mubr.bf16.gmra.mxu1 %v4531_v40 }
 0x74c   : > { %v4413_v50 = vadd.f32 %v9646_v13, %v4412_v45  ;;  %v4499_v23 = vmax.f32 %v4421_v6, 0.0 }
 0x74d   : > { %v8034_v44 = vpop.f32.mrf.mxu0 }
 0x74e   : > { %v4497_v53 = vmax.f32 %v4413_v50, 0.0  ;;  %v4533_v33 = vpack.c.bf16 %v4499_v23, %v4498_v43  ;;  %v4434_v57 = vadd.f32 %v8034_v44, %v9646_v13  ;;  %v8569_v44 = vld [vmem:[#allocation4 + $0x318] sm:$0xff]  }
 0x74f   : > { %v4425_v14 = vpop.f32.mrf.mxu0  ;;  %8193 = vmatmul.mubr.bf16.gmra.mxu0 %v8636_v59 }
 0x750   : > { %v4532_v1 = vpack.c.bf16 %v4497_v53, %v4496_v60  ;;  %v4426_v52 = vadd.f32 %v9646_v13, %v4425_v14  ;;  %v4502_v29 = vmax.f32 %v4434_v57, 0.0 }
 0x751   : > { %v8035_v11 = vpop.f32.mrf.mxu0 }
 0x752   : > { %v4437_v25 = vadd.f32 %v8035_v11, %v9646_v13  ;;  %8108 = vmatprep.mubr.bf16.mxu1 %v4532_v1  ;;  %v4500_v34 = vmax.f32 %v4426_v52, 0.0 }
 0x753   : > { %v4428_v2 = vpop.f32.mrf.mxu0  ;;  %8109 = vmatmul.mubr.bf16.gmra.mxu1 %v4533_v33 }
 0x754   : > { %v4429_v35 = vadd.f32 %v9646_v13, %v4428_v2  ;;  %v4503_v58 = vmax.f32 %v4437_v25, 0.0  ;;  %v8565_v13 = vld [vmem:[#allocation4 + $0x338] sm:$0xff]  }
 0x755   : > { %8276 = vmatprep.subr.bf16.mxu0 %v8565_v13 }
 0x756   : > { %v4501_v49 = vmax.f32 %v4429_v35, 0.0  ;;  %v4535_v62 = vpack.c.bf16 %v4503_v58, %v4502_v29  ;;  %8277 = vmatpush3.bf16.msra.mxu0 %v8565_v13 }
 0x757   : > { %8278 = vmatprep.subr.bf16.mxu0 %v8566_v32 }
 0x758   : > { %v4534_v63 = vpack.c.bf16 %v4501_v49, %v4500_v34 }
 0x75a   : > { %8112 = vmatprep.mubr.bf16.mxu1 %v4534_v63  ;;  %8279 = vmatpush3.bf16.msra.mxu0 %v8566_v32 }
 0x75b   : > { %8113 = vmatmul.mubr.bf16.gmra.mxu1 %v4535_v62  ;;  %8280 = vmatprep.subr.bf16.mxu0 %v8567_v3 }
 0x75e   : > { %8281 = vmatpush3.bf16.msra.mxu0 %v8567_v3 }
 0x75f   : > { %8282 = vmatprep.subr.bf16.mxu0 %v8568_v55 }
 0x762   : > { %8283 = vmatpush3.bf16.msra.mxu0 %v8568_v55  ;;  %v8571_v55 = vld [vmem:[#allocation4 + $0x308] sm:$0xff]  }
 0x763   : > { %8284 = vmatprep.subr.bf16.mxu0 %v8569_v44 }
 0x766   : > { %8285 = vmatpush3.bf16.msra.mxu0 %v8569_v44  ;;  %v8572_v44 = vld [vmem:[#allocation4 + $0x300] sm:$0xff]  }
 0x767   : > { %8286 = vmatprep.subr.bf16.mxu0 %v8570_v26 }
 0x76a   : > { %8287 = vmatpush3.bf16.msra.mxu0 %v8570_v26 }
 0x76b   : > { %8288 = vmatprep.subr.bf16.mxu0 %v8571_v55 }
 0x76e   : > { %8289 = vmatpush3.bf16.msra.mxu0 %v8571_v55 }
 0x76f   : > { %8290 = vmatprep.subr.bf16.mxu0 %v8572_v44 }
 0x772   : > { %8291 = vmatpush3.bf16.msra.mxu0 %v8572_v44 }
 0x7a3   : > { %v8054_v36 = vpop.f32.mrf.mxu1 }
 0x7a4   : > { %v4649_v4 = vadd.f32 %v8054_v36, %v9743_v18 }
 0x7a5   : > { %v4640_v17 = vpop.f32.mrf.mxu1 }
 0x7a6   : > { %v4641_v0 = vadd.f32 %v9743_v18, %v4640_v17  ;;  %6292 = vrot.lane.b32.xlu1 %v4649_v4, %s8764_s17 }
 0x7a7   : > { %v8055_v7 = vpop.f32.mrf.mxu1 }
 0x7a8   : > { %v4652_v24 = vadd.f32 %v8055_v7, %v9743_v18  ;;  %6288 = vrot.lane.b32.xlu0 %v4641_v0, %s8764_s17 }
 0x7a9   : > { %v4643_v61 = vpop.f32.mrf.mxu1 }
 0x7aa   : > { %v4644_v8 = vadd.f32 %v9743_v18, %v4643_v61  ;;  %6294 = vrot.lane.b32.xlu1 %v4652_v24, %s8764_s17  ;;  %v4896_v28 = vpack.c.bf16 %v4652_v24, %v4649_v4 }
 0x7ab   : > { %v8058_v9 = vpop.f32.mrf.mxu1 }
 0x7ac   : > { %v4895_v37 = vpack.c.bf16 %v4644_v8, %v4641_v0  ;;  %6290 = vrot.lane.b32.xlu0 %v4644_v8, %s8764_s17  ;;  %v4665_v39 = vadd.f32 %v8058_v9, %v9743_v18 }
 0x7ad   : > { %v4656_v10 = vpop.f32.mrf.mxu1 }
 0x7ae   : > { %8212 = vmatprep.mubr.bf16.mxu1 %v4895_v37  ;;  %v4657_v38 = vadd.f32 %v9743_v18, %v4656_v10 }
 0x7af   : > { %v8059_v27 = vpop.f32.mrf.mxu1  ;;  %8213 = vmatmul.mubr.bf16.vlgmr.msra.gmra.mxu1 %v4896_v28 }
 0x7b0   : > { %v4668_v15 = vadd.f32 %v8059_v27, %v9743_v18  ;;  %6300 = vrot.lane.b32.xlu0 %v4665_v39, %s8764_s17 }
 0x7b1   : > { %v4659_v42 = vpop.f32.mrf.mxu1 }
 0x7b2   : > { %v4660_v51 = vadd.f32 %v9743_v18, %v4659_v42  ;;  %6302 = vrot.lane.b32.xlu1 %v4668_v15, %s8764_s17  ;;  %v4898_v54 = vpack.c.bf16 %v4668_v15, %v4665_v39 }
 0x7b3   : > { %v8062_v20 = vpop.f32.mrf.mxu1 }
 0x7b4   : > { %v4897_v47 = vpack.c.bf16 %v4660_v51, %v4657_v38  ;;  %6296 = vrot.lane.b32.xlu0 %v4657_v38, %s8764_s17  ;;  %v4681_v5 = vadd.f32 %v8062_v20, %v9743_v18 }
 0x7b5   : > { %v4672_v31 = vpop.f32.mrf.mxu1 }
 0x7b6   : > { %6298 = vrot.lane.b32.xlu1 %v4660_v51, %s8764_s17  ;;  %8216 = vmatprep.mubr.bf16.mxu1 %v4897_v47  ;;  %v4673_v12 = vadd.f32 %v9743_v18, %v4672_v31 }
 0x7b7   : > { %v8063_v40 = vpop.f32.mrf.mxu1  ;;  %8217 = vmatmul.mubr.bf16.gmra.mxu1 %v4898_v54 }
 0x7b8   : > { %v4684_v30 = vadd.f32 %v8063_v40, %v9743_v18  ;;  %6308 = vrot.lane.b32.xlu0 %v4681_v5, %s8764_s17 }
 0x7b9   : > { %v4675_v41 = vpop.f32.mrf.mxu1 }
 0x7ba   : > { %v4676_v6 = vadd.f32 %v9743_v18, %v4675_v41  ;;  %6310 = vrot.lane.b32.xlu1 %v4684_v30, %s8764_s17  ;;  %v4900_v45 = vpack.c.bf16 %v4684_v30, %v4681_v5 }
 0x7bb   : > { %v8066_v56 = vpop.f32.mrf.mxu1 }
 0x7bc   : > { %v4899_v21 = vpack.c.bf16 %v4676_v6, %v4673_v12  ;;  %6304 = vrot.lane.b32.xlu0 %v4673_v12, %s8764_s17  ;;  %v4697_v23 = vadd.f32 %v8066_v56, %v9743_v18 }
 0x7bd   : > { %v4688_v50 = vpop.f32.mrf.mxu1 }
 0x7be   : > { %6306 = vrot.lane.b32.xlu1 %v4676_v6, %s8764_s17  ;;  %8220 = vmatprep.mubr.bf16.mxu1 %v4899_v21  ;;  %v4689_v14 = vadd.f32 %v9743_v18, %v4688_v50 }
 0x7bf   : > { %v8067_v60 = vpop.f32.mrf.mxu1  ;;  %8221 = vmatmul.mubr.bf16.gmra.mxu1 %v4900_v45 }
 0x7c0   : > { %v4700_v53 = vadd.f32 %v8067_v60, %v9743_v18  ;;  %6316 = vrot.lane.b32.xlu0 %v4697_v23, %s8764_s17 }
 0x7c1   : > { %v4691_v43 = vpop.f32.mrf.mxu1 }
 0x7c2   : > { %v4692_v1 = vadd.f32 %v9743_v18, %v4691_v43  ;;  %6318 = vrot.lane.b32.xlu1 %v4700_v53, %s8764_s17  ;;  %v4902_v16 = vpack.c.bf16 %v4700_v53, %v4697_v23 }
 0x7c3   : > { %v8070_v33 = vpop.f32.mrf.mxu1 }
 0x7c4   : > { %v4901_v11 = vpack.c.bf16 %v4692_v1, %v4689_v14  ;;  %6312 = vrot.lane.b32.xlu0 %v4689_v14, %s8764_s17  ;;  %v4713_v25 = vadd.f32 %v8070_v33, %v9743_v18  ;;  %v9820_v14 = vpop.f32.mrf.mxu0 }
 0x7c5   : > { %v4704_v52 = vpop.f32.mrf.mxu1 }
 0x7c6   : > { %6314 = vrot.lane.b32.xlu1 %v4692_v1, %s8764_s17  ;;  %8224 = vmatprep.mubr.bf16.mxu1 %v4901_v11  ;;  %v4705_v35 = vadd.f32 %v9743_v18, %v4704_v52 }
 0x7c7   : > { %v8071_v48 = vpop.f32.mrf.mxu1  ;;  %8225 = vmatmul.mubr.bf16.gmra.mxu1 %v4902_v16 }
 0x7c8   : > { %v4716_v57 = vadd.f32 %v8071_v48, %v9743_v18  ;;  %6324 = vrot.lane.b32.xlu0 %v4713_v25, %s8764_s17  ;;  %v9826_v48 = vpop.f32.mrf.mxu0 }
 0x7c9   : > { %v4707_v2 = vpop.f32.mrf.mxu1 }
 0x7ca   : > { %v4708_v58 = vadd.f32 %v9743_v18, %v4707_v2  ;;  %6326 = vrot.lane.b32.xlu1 %v4716_v57, %s8764_s17  ;;  %v4904_v29 = vpack.c.bf16 %v4716_v57, %v4713_v25 }
 0x7cb   : > { %v8074_v34 = vpop.f32.mrf.mxu1 }
 0x7cc   : > { %v4903_v49 = vpack.c.bf16 %v4708_v58, %v4705_v35  ;;  %6320 = vrot.lane.b32.xlu0 %v4705_v35, %s8764_s17  ;;  %v4729_v62 = vadd.f32 %v8074_v34, %v9743_v18  ;;  %v9832_v34 = vpop.f32.mrf.mxu0 }
 0x7cd   : > { %v4720_v63 = vpop.f32.mrf.mxu1 }
 0x7ce   : > { %6322 = vrot.lane.b32.xlu1 %v4708_v58, %s8764_s17  ;;  %8228 = vmatprep.mubr.bf16.mxu1 %v4903_v49  ;;  %v4721_v59 = vadd.f32 %v9743_v18, %v4720_v63 }
 0x7cf   : > { %v8075_v22 = vpop.f32.mrf.mxu1  ;;  %8229 = vmatmul.mubr.bf16.gmra.mxu1 %v4904_v29 }
 0x7d0   : > { %v4732_v19 = vadd.f32 %v8075_v22, %v9743_v18  ;;  %6332 = vrot.lane.b32.xlu0 %v4729_v62, %s8764_s17 }
 0x7d1   : > { %v4723_v46 = vpop.f32.mrf.mxu1 }
 0x7d2   : > { %v4724_v13 = vadd.f32 %v9743_v18, %v4723_v46  ;;  %6334 = vrot.lane.b32.xlu1 %v4732_v19, %s8764_s17  ;;  %v4906_v36 = vpack.c.bf16 %v4732_v19, %v4729_v62  ;;  %v9838_v19 = vpop.f32.mrf.mxu0 }
 0x7d3   : > { %v8078_v32 = vpop.f32.mrf.mxu1 }
 0x7d4   : > { %v4905_v3 = vpack.c.bf16 %v4724_v13, %v4721_v59  ;;  %6328 = vrot.lane.b32.xlu0 %v4721_v59, %s8764_s17  ;;  %v4745_v17 = vadd.f32 %v8078_v32, %v9743_v18 }
 0x7d5   : > { %v4736_v4 = vpop.f32.mrf.mxu1 }
 0x7d6   : > { %6330 = vrot.lane.b32.xlu1 %v4724_v13, %s8764_s17  ;;  %8232 = vmatprep.mubr.bf16.mxu1 %v4905_v3  ;;  %v4737_v61 = vadd.f32 %v9743_v18, %v4736_v4  ;;  %v9844_v3 = vpop.f32.mrf.mxu0 }
 0x7d7   : > { %v8079_v0 = vpop.f32.mrf.mxu1  ;;  %8233 = vmatmul.mubr.bf16.gmra.mxu1 %v4906_v36 }
 0x7d8   : > { %v4748_v7 = vadd.f32 %v8079_v0, %v9743_v18  ;;  %6340 = vrot.lane.b32.xlu0 %v4745_v17, %s8764_s17 }
 0x7d9   : > { %v4739_v24 = vpop.f32.mrf.mxu1 }
 0x7da   : > { %v4740_v8 = vadd.f32 %v9743_v18, %v4739_v24  ;;  %6342 = vrot.lane.b32.xlu1 %v4748_v7, %s8764_s17  ;;  %v4908_v28 = vpack.c.bf16 %v4748_v7, %v4745_v17 }
 0x7db   : > { %v8082_v9 = vpop.f32.mrf.mxu1 }
 0x7dc   : > { %v4907_v37 = vpack.c.bf16 %v4740_v8, %v4737_v61  ;;  %6336 = vrot.lane.b32.xlu0 %v4737_v61, %s8764_s17  ;;  %v4761_v39 = vadd.f32 %v8082_v9, %v9743_v18  ;;  %v9850_v61 = vpop.f32.mrf.mxu0 }
 0x7dd   : > { %v4752_v10 = vpop.f32.mrf.mxu1 }
 0x7de   : > { %6338 = vrot.lane.b32.xlu1 %v4740_v8, %s8764_s17  ;;  %8236 = vmatprep.mubr.bf16.mxu1 %v4907_v37  ;;  %v4753_v38 = vadd.f32 %v9743_v18, %v4752_v10  ;;  %v9856_v10 = vpop.f32.mrf.mxu0 }
 0x7df   : > { %v8083_v27 = vpop.f32.mrf.mxu1  ;;  %8237 = vmatmul.mubr.bf16.gmra.mxu1 %v4908_v28 }
 0x7e0   : > { %v4764_v15 = vadd.f32 %v8083_v27, %v9743_v18  ;;  %6348 = vrot.lane.b32.xlu0 %v4761_v39, %s8764_s17 }
 0x7e1   : > { %v4755_v42 = vpop.f32.mrf.mxu1 }
 0x7e2   : > { %v4756_v51 = vadd.f32 %v9743_v18, %v4755_v42  ;;  %6350 = vrot.lane.b32.xlu1 %v4764_v15, %s8764_s17  ;;  %v4910_v54 = vpack.c.bf16 %v4764_v15, %v4761_v39 }
 0x7e3   : > { %v8086_v20 = vpop.f32.mrf.mxu1 }
 0x7e4   : > { %v4909_v47 = vpack.c.bf16 %v4756_v51, %v4753_v38  ;;  %6344 = vrot.lane.b32.xlu0 %v4753_v38, %s8764_s17  ;;  %v4777_v5 = vadd.f32 %v8086_v20, %v9743_v18 }
 0x7e5   : > { %v4768_v31 = vpop.f32.mrf.mxu1 }
 0x7e6   : > { %6346 = vrot.lane.b32.xlu1 %v4756_v51, %s8764_s17  ;;  %8240 = vmatprep.mubr.bf16.mxu1 %v4909_v47  ;;  %v4769_v12 = vadd.f32 %v9743_v18, %v4768_v31  ;;  %v9862_v51 = vpop.f32.mrf.mxu0 }
 0x7e7   : > { %v8087_v40 = vpop.f32.mrf.mxu1  ;;  %8241 = vmatmul.mubr.bf16.gmra.mxu1 %v4910_v54 }
 0x7e8   : > { %v4780_v30 = vadd.f32 %v8087_v40, %v9743_v18  ;;  %6356 = vrot.lane.b32.xlu0 %v4777_v5, %s8764_s17 }
 0x7e9   : > { %v4771_v41 = vpop.f32.mrf.mxu1 }
 0x7ea   : > { %v4772_v6 = vadd.f32 %v9743_v18, %v4771_v41  ;;  %6358 = vrot.lane.b32.xlu1 %v4780_v30, %s8764_s17  ;;  %v4912_v45 = vpack.c.bf16 %v4780_v30, %v4777_v5  ;;  %v9868_v5 = vpop.f32.mrf.mxu0 }
 0x7eb   : > { %v8090_v56 = vpop.f32.mrf.mxu1 }
 0x7ec   : > { %v4911_v21 = vpack.c.bf16 %v4772_v6, %v4769_v12  ;;  %6352 = vrot.lane.b32.xlu0 %v4769_v12, %s8764_s17  ;;  %v4793_v23 = vadd.f32 %v8090_v56, %v9743_v18 }
 0x7ed   : > { %v4784_v50 = vpop.f32.mrf.mxu1 }
 0x7ee   : > { %6354 = vrot.lane.b32.xlu1 %v4772_v6, %s8764_s17  ;;  %8244 = vmatprep.mubr.bf16.mxu1 %v4911_v21  ;;  %v4785_v1 = vadd.f32 %v9743_v18, %v4784_v50  ;;  %v9874_v21 = vpop.f32.mrf.mxu0 }
 0x7ef   : > { %v8091_v60 = vpop.f32.mrf.mxu1  ;;  %8245 = vmatmul.mubr.bf16.gmra.mxu1 %v4912_v45 }
 0x7f0   : > { %v4796_v53 = vadd.f32 %v8091_v60, %v9743_v18  ;;  %6364 = vrot.lane.b32.xlu0 %v4793_v23, %s8764_s17  ;;  %v9880_v60 = vpop.f32.mrf.mxu0 }
 0x7f1   : > { %v4787_v43 = vpop.f32.mrf.mxu1 }
 0x7f2   : > { %v4788_v33 = vadd.f32 %v9743_v18, %v4787_v43  ;;  %6366 = vrot.lane.b32.xlu1 %v4796_v53, %s8764_s17  ;;  %v4914_v52 = vpack.c.bf16 %v4796_v53, %v4793_v23 }
 0x7f3   : > { %v8094_v11 = vpop.f32.mrf.mxu1 }
 0x7f4   : > { %v4913_v16 = vpack.c.bf16 %v4788_v33, %v4785_v1  ;;  %6360 = vrot.lane.b32.xlu0 %v4785_v1, %s8764_s17  ;;  %v4809_v57 = vadd.f32 %v8094_v11, %v9743_v18 }
 0x7f5   : > { %v4800_v25 = vpop.f32.mrf.mxu1 }
 0x7f6   : > { %6362 = vrot.lane.b32.xlu1 %v4788_v33, %s8764_s17  ;;  %8248 = vmatprep.mubr.bf16.mxu1 %v4913_v16  ;;  %v4801_v49 = vadd.f32 %v9743_v18, %v4800_v25 }
 0x7f7   : > { %v8095_v2 = vpop.f32.mrf.mxu1  ;;  %8249 = vmatmul.mubr.bf16.gmra.mxu1 %v4914_v52  ;;  %v9886_v52 = vpop.f32.mrf.mxu0 }
 0x7f8   : > { %v4812_v35 = vadd.f32 %v8095_v2, %v9743_v18  ;;  %6372 = vrot.lane.b32.xlu0 %v4809_v57, %s8764_s17 }
 0x7f9   : > { %v4803_v58 = vpop.f32.mrf.mxu1 }
 0x7fa   : > { %v4804_v29 = vadd.f32 %v9743_v18, %v4803_v58  ;;  %6374 = vrot.lane.b32.xlu1 %v4812_v35, %s8764_s17  ;;  %v4916_v26 = vpack.c.bf16 %v4812_v35, %v4809_v57  ;;  %v9892_v58 = vpop.f32.mrf.mxu0 }
 0x7fb   : > { %v8098_v63 = vpop.f32.mrf.mxu1 }
 0x7fc   : > { %v4915_v62 = vpack.c.bf16 %v4804_v29, %v4801_v49  ;;  %6368 = vrot.lane.b32.xlu0 %v4801_v49, %s8764_s17  ;;  %v4825_v46 = vadd.f32 %v8098_v63, %v9743_v18 }
 0x7fd   : > { %v4816_v22 = vpop.f32.mrf.mxu1 }
 0x7fe   : > { %6370 = vrot.lane.b32.xlu1 %v4804_v29, %s8764_s17  ;;  %8252 = vmatprep.mubr.bf16.mxu1 %v4915_v62  ;;  %v4817_v36 = vadd.f32 %v9743_v18, %v4816_v22 }
 0x7ff   : > { %v8099_v59 = vpop.f32.mrf.mxu1  ;;  %8253 = vmatmul.mubr.bf16.gmra.mxu1 %v4916_v26  ;;  %v9898_v26 = vpop.f32.mrf.mxu0 }
 0x800   : > { %v4828_v13 = vadd.f32 %v8099_v59, %v9743_v18  ;;  %6380 = vrot.lane.b32.xlu0 %v4825_v46, %s8764_s17 }
 0x801   : > { %v4819_v32 = vpop.f32.mrf.mxu1  ;;  %v9901_v22 = vpop.f32.mrf.mxu0 }
 0x802   : > { %v4820_v4 = vadd.f32 %v9743_v18, %v4819_v32  ;;  %6382 = vrot.lane.b32.xlu1 %v4828_v13, %s8764_s17  ;;  %v4918_v7 = vpack.c.bf16 %v4828_v13, %v4825_v46 }
 0x803   : > { %v8102_v17 = vpop.f32.mrf.mxu1  ;;  %v9903_v46 = vpop.f32.mrf.mxu0 }
 0x804   : > { %v4917_v0 = vpack.c.bf16 %v4820_v4, %v4817_v36  ;;  %6376 = vrot.lane.b32.xlu0 %v4817_v36, %s8764_s17  ;;  %v4841_v8 = vadd.f32 %v8102_v17, %v9743_v18 }
 0x805   : > { %v4832_v24 = vpop.f32.mrf.mxu1  ;;  %v9905_v59 = vpop.f32.mrf.mxu0 }
 0x806   : > { %6378 = vrot.lane.b32.xlu1 %v4820_v4, %s8764_s17  ;;  %8256 = vmatprep.mubr.bf16.mxu1 %v4917_v0  ;;  %v4833_v39 = vadd.f32 %v9743_v18, %v4832_v24 }
 0x807   : > { %v8103_v9 = vpop.f32.mrf.mxu1  ;;  %8257 = vmatmul.mubr.bf16.gmra.mxu1 %v4918_v7  ;;  %v9907_v13 = vpop.f32.mrf.mxu0 }
 0x808   : > { %v4844_v37 = vadd.f32 %v8103_v9, %v9743_v18  ;;  %6388 = vrot.lane.b32.xlu0 %v4841_v8, %s8764_s17 }
 0x809   : > { %v4835_v28 = vpop.f32.mrf.mxu1 }
 0x80a   : > { %v4836_v55 = vadd.f32 %v9743_v18, %v4835_v28  ;;  %6390 = vrot.lane.b32.xlu1 %v4844_v37, %s8764_s17  ;;  %v4920_v42 = vpack.c.bf16 %v4844_v37, %v4841_v8 }
 0x80b   : > { %v8106_v27 = vpop.f32.mrf.mxu1 }
 0x80c   : > { %v4919_v15 = vpack.c.bf16 %v4836_v55, %v4833_v39  ;;  %6384 = vrot.lane.b32.xlu0 %v4833_v39, %s8764_s17  ;;  %v4857_v20 = vadd.f32 %v8106_v27, %v9743_v18 }
 0x80d   : > { %v4848_v38 = vpop.f32.mrf.mxu1 }
 0x80e   : > { %6386 = vrot.lane.b32.xlu1 %v4836_v55, %s8764_s17  ;;  %8260 = vmatprep.mubr.bf16.mxu1 %v4919_v15  ;;  %v4849_v40 = vadd.f32 %v9743_v18, %v4848_v38 }
 0x80f   : > { %v8107_v47 = vpop.f32.mrf.mxu1  ;;  %8261 = vmatmul.mubr.bf16.gmra.mxu1 %v4920_v42 }
 0x810   : > { %v4860_v54 = vadd.f32 %v8107_v47, %v9743_v18  ;;  %6396 = vrot.lane.b32.xlu0 %v4857_v20, %s8764_s17 }
 0x811   : > { %v4851_v31 = vpop.f32.mrf.mxu1 }
 0x812   : > { %v4852_v30 = vadd.f32 %v9743_v18, %v4851_v31  ;;  %6398 = vrot.lane.b32.xlu1 %v4860_v54, %s8764_s17  ;;  %v4922_v6 = vpack.c.bf16 %v4860_v54, %v4857_v20  ;;  %v9941_v54 = vld [vmem:[#allocation6 + $0x9] ss:$0 sm:$0xff] }
 0x813   : > { %v8110_v41 = vpop.f32.mrf.mxu1 }
 0x814   : > { %v4921_v12 = vpack.c.bf16 %v4852_v30, %v4849_v40  ;;  %6392 = vrot.lane.b32.xlu0 %v4849_v40, %s8764_s17  ;;  %v4873_v45 = vadd.f32 %v8110_v41, %v9743_v18 }
 0x815   : > { %v4864_v56 = vpop.f32.mrf.mxu1 }
 0x816   : > { %6394 = vrot.lane.b32.xlu1 %v4852_v30, %s8764_s17  ;;  %8264 = vmatprep.mubr.bf16.mxu1 %v4921_v12  ;;  %v4865_v53 = vadd.f32 %v9743_v18, %v4864_v56 }
 0x817   : > { %v8111_v50 = vpop.f32.mrf.mxu1  ;;  %8265 = vmatmul.mubr.bf16.gmra.mxu1 %v4922_v6 }
 0x818   : > { %v4876_v23 = vadd.f32 %v8111_v50, %v9743_v18  ;;  %6404 = vrot.lane.b32.xlu0 %v4873_v45, %s8764_s17 }
 0x819   : > { %v4867_v44 = vpop.f32.mrf.mxu1 }
 0x81a   : > { %v4868_v43 = vadd.f32 %v9743_v18, %v4867_v44  ;;  %6406 = vrot.lane.b32.xlu1 %v4876_v23, %s8764_s17  ;;  %v4924_v11 = vpack.c.bf16 %v4876_v23, %v4873_v45 }
 0x81b   : > { %v8114_v1 = vpop.f32.mrf.mxu1 }
 0x81c   : > { %v4923_v33 = vpack.c.bf16 %v4868_v43, %v4865_v53  ;;  %6400 = vrot.lane.b32.xlu0 %v4865_v53, %s8764_s17  ;;  %v4889_v49 = vadd.f32 %v8114_v1, %v9743_v18 }
 0x81d   : > { %v4880_v16 = vpop.f32.mrf.mxu1 }
 0x81e   : > { %v4881_v25 = vadd.f32 %v9743_v18, %v4880_v16  ;;  %6402 = vrot.lane.b32.xlu1 %v4868_v43, %s8764_s17  ;;  %8268 = vmatprep.mubr.bf16.mxu1 %v4923_v33 }
 0x81f   : > { %v8115_v57 = vpop.f32.mrf.mxu1  ;;  %8269 = vmatmul.mubr.bf16.gmra.mxu1 %v4924_v11 }
 0x820   : > { %6408 = vrot.lane.b32.xlu0 %v4881_v25, %s8764_s17  ;;  %v4892_v2 = vadd.f32 %v8115_v57, %v9743_v18 }
 0x821   : > { %v4883_v35 = vpop.f32.mrf.mxu1 }
 0x822   : > { %v4884_v29 = vadd.f32 %v9743_v18, %v4883_v35  ;;  %v4926_v62 = vpack.c.bf16 %v4892_v2, %v4889_v49  ;;  %v9909_v18 = vpop.f32.mrf.mxu0 }
 0x824   : > { %v4925_v63 = vpack.c.bf16 %v4884_v29, %v4881_v25  ;;  %6410 = vrot.lane.b32.xlu1 %v4884_v29, %s8764_s17  ;;  %6412 = vrot.lane.b32.xlu0 %v4889_v49, %s8764_s17  ;;  %v9911_v32 = vpop.f32.mrf.mxu0 }
 0x826   : > { %8272 = vmatprep.mubr.bf16.mxu1 %v4925_v63  ;;  %v9913_v36 = vpop.f32.mrf.mxu0 }
 0x827   : > { %8273 = vmatmul.mubr.bf16.gmra.mxu1 %v4926_v62 }
 0x828   : > { %6414 = vrot.lane.b32.xlu1 %v4892_v2, %s8764_s17  ;;  %v9915_v4 = vpop.f32.mrf.mxu0 }
 0x82a   : > { %v9917_v17 = vpop.f32.mrf.mxu0 }
 0x82c   : > { %v9919_v0 = vpop.f32.mrf.mxu0 }
 0x82e   : > { %v9921_v7 = vpop.f32.mrf.mxu0 }
 0x830   : > { %v9923_v24 = vpop.f32.mrf.mxu0 }
 0x832   : > { %v9925_v8 = vpop.f32.mrf.mxu0 }
 0x834   : > { %v9927_v9 = vpop.f32.mrf.mxu0 }
 0x836   : > { %v9929_v37 = vpop.f32.mrf.mxu0 }
 0x838   : > { %v9931_v28 = vpop.f32.mrf.mxu0 }
 0x83a   : > { %v9933_v39 = vpop.f32.mrf.mxu0 }
 0x83c   : > { %v9935_v55 = vpop.f32.mrf.mxu0 }
 0x83e   : > { %v9937_v42 = vpop.f32.mrf.mxu0 }
 0x840   : > { %v9944_v30 = vpop.f32.mrf.mxu0 }
 0x842   : > { %v9951_v23 = vpop.f32.mrf.mxu0 }
 0x844   : > { %v9956_v57 = vpop.f32.mrf.mxu0 }
 0x846   : > { %v9963_v62 = vpop.f32.mrf.mxu0 }
 0x86f   : > { %v8214_v27 = vpop.f32.mrf.mxu1 }
 0x870   : > { %v5389_v20 = vadd.f32 %v8214_v27, %v9820_v14 }
 0x871   : > { %v5380_v15 = vpop.f32.mrf.mxu1 }
 0x872   : > { %v5381_v38 = vadd.f32 %v5380_v15, %v9826_v48  ;;  %v5642_v56 = vadd.f32 %v9941_v54, %v5389_v20 }
 0x873   : > { %v8215_v47 = vpop.f32.mrf.mxu1 }
 0x874   : > { %v5392_v31 = vadd.f32 %v8215_v47, %v9832_v34  ;;  %v5640_v41 = vadd.f32 %v9941_v54, %v5381_v38  ;;  %v5706_v43 = vmax.f32 %v5642_v56, 0.0 }
 0x875   : > { %v5383_v40 = vpop.f32.mrf.mxu1 }
 0x876   : > { %v5643_v12 = vadd.f32 %v9941_v54, %v5392_v31  ;;  %v5384_v6 = vadd.f32 %v5383_v40, %v9838_v19  ;;  %v5704_v44 = vmax.f32 %v5640_v41, 0.0 }
 0x877   : > { %v8218_v45 = vpop.f32.mrf.mxu1 }
 0x878   : > { %v5641_v48 = vadd.f32 %v9941_v54, %v5384_v6  ;;  %v5707_v14 = vmax.f32 %v5643_v12, 0.0  ;;  %v5405_v1 = vadd.f32 %v8218_v45, %v9844_v3  ;;  %v9968_v6 = vpop.f32.mrf.mxu0 }
 0x879   : > { %v5396_v50 = vpop.f32.mrf.mxu1 }
 0x87a   : > { %v5705_v34 = vmax.f32 %v5641_v48, 0.0  ;;  %v5397_v53 = vadd.f32 %v5396_v50, %v9850_v61  ;;  %v5769_v16 = vpack.c.bf16 %v5707_v14, %v5706_v43  ;;  %v5646_v61 = vadd.f32 %v9941_v54, %v5405_v1 }
 0x87b   : > { %v8219_v33 = vpop.f32.mrf.mxu1 }
 0x87c   : > { %v5408_v11 = vadd.f32 %v8219_v33, %v9856_v10  ;;  %v5768_v19 = vpack.c.bf16 %v5705_v34, %v5704_v44  ;;  %v5644_v2 = vadd.f32 %v9941_v54, %v5397_v53  ;;  %v5710_v20 = vmax.f32 %v5646_v61, 0.0  ;;  %v9975_v44 = vpop.f32.mrf.mxu0 }
 0x87d   : > { %v5399_v25 = vpop.f32.mrf.mxu1 }
 0x87e   : > { %v5647_v35 = vadd.f32 %v9941_v54, %v5408_v11  ;;  %v5400_v49 = vadd.f32 %v5399_v25, %v9862_v51  ;;  %8292 = vmatprep.mubr.bf16.mxu0 %v5768_v19  ;;  %v5708_v27 = vmax.f32 %v5644_v2, 0.0  ;;  %v9980_v2 = vpop.f32.mrf.mxu0 }
 0x87f   : > { %v8222_v29 = vpop.f32.mrf.mxu1  ;;  %8293 = vmatmul.mubr.bf16.vlgmr.msra.gmra.mxu0 %v5769_v16 }
 0x880   : > { %v5645_v3 = vadd.f32 %v9941_v54, %v5400_v49  ;;  %v5711_v63 = vmax.f32 %v5647_v35, 0.0  ;;  %v5421_v47 = vadd.f32 %v8222_v29, %v9868_v5 }
 0x881   : > { %v5412_v10 = vpop.f32.mrf.mxu1 }
 0x882   : > { %v5709_v15 = vmax.f32 %v5645_v3, 0.0  ;;  %v5413_v38 = vadd.f32 %v5412_v10, %v9874_v21  ;;  %v5771_v41 = vpack.c.bf16 %v5711_v63, %v5710_v20  ;;  %v5650_v21 = vadd.f32 %v9941_v54, %v5421_v47  ;;  %v9987_v63 = vpop.f32.mrf.mxu0 }
 0x883   : > { %v8223_v31 = vpop.f32.mrf.mxu1 }
 0x884   : > { %v5424_v51 = vadd.f32 %v8223_v31, %v9880_v60  ;;  %v5770_v40 = vpack.c.bf16 %v5709_v15, %v5708_v27  ;;  %v5648_v56 = vadd.f32 %v9941_v54, %v5413_v38  ;;  %v5714_v1 = vmax.f32 %v5650_v21, 0.0 }
 0x885   : > { %v5415_v12 = vpop.f32.mrf.mxu1 }
 0x886   : > { %v5651_v45 = vadd.f32 %v9941_v54, %v5424_v51  ;;  %v5416_v48 = vadd.f32 %v5415_v12, %v9886_v52  ;;  %8296 = vmatprep.mubr.bf16.mxu0 %v5770_v40  ;;  %v5712_v34 = vmax.f32 %v5648_v56, 0.0 }
 0x887   : > { %v8226_v14 = vpop.f32.mrf.mxu1  ;;  %8297 = vmatmul.mubr.bf16.gmra.mxu0 %v5771_v41  ;;  %v9992_v41 = vpop.f32.mrf.mxu0 }
 0x888   : > { %v5649_v5 = vadd.f32 %v9941_v54, %v5416_v48  ;;  %v5715_v50 = vmax.f32 %v5651_v45, 0.0  ;;  %v5437_v33 = vadd.f32 %v8226_v14, %v9892_v58 }
 0x889   : > { %v5428_v60 = vpop.f32.mrf.mxu1  ;;  %v9999_v14 = vpop.f32.mrf.mxu0 }
 0x88a   : > { %v5713_v53 = vmax.f32 %v5649_v5, 0.0  ;;  %v5429_v43 = vadd.f32 %v5428_v60, %v9898_v26  ;;  %v5773_v16 = vpack.c.bf16 %v5715_v50, %v5714_v1  ;;  %v5654_v26 = vadd.f32 %v9941_v54, %v5437_v33 }
 0x88b   : > { %v8227_v11 = vpop.f32.mrf.mxu1 }
 0x88c   : > { %v5440_v52 = vadd.f32 %v8227_v11, %v9901_v22  ;;  %v5772_v19 = vpack.c.bf16 %v5713_v53, %v5712_v34  ;;  %v5652_v35 = vadd.f32 %v9941_v54, %v5429_v43  ;;  %v5718_v38 = vmax.f32 %v5654_v26, 0.0 }
 0x88d   : > { %v5431_v25 = vpop.f32.mrf.mxu1 }
 0x88e   : > { %v5655_v49 = vadd.f32 %v9941_v54, %v5440_v52  ;;  %v5432_v61 = vadd.f32 %v5431_v25, %v9903_v46  ;;  %8300 = vmatprep.mubr.bf16.mxu0 %v5772_v19  ;;  %v5716_v10 = vmax.f32 %v5652_v35, 0.0  ;;  %v10004_v52 = vpop.f32.mrf.mxu0 }
 0x88f   : > { %v8230_v29 = vpop.f32.mrf.mxu1  ;;  %8301 = vmatmul.mubr.bf16.gmra.mxu0 %v5773_v16 }
 0x890   : > { %v5653_v58 = vadd.f32 %v9941_v54, %v5432_v61  ;;  %v5719_v3 = vmax.f32 %v5655_v49, 0.0  ;;  %v5453_v20 = vadd.f32 %v8230_v29, %v9905_v59  ;;  %v10011_v61 = vpop.f32.mrf.mxu0 }
 0x891   : > { %v5444_v22 = vpop.f32.mrf.mxu1 }
 0x892   : > { %v5717_v27 = vmax.f32 %v5653_v58, 0.0  ;;  %v5445_v15 = vadd.f32 %v5444_v22, %v9907_v13  ;;  %v5775_v51 = vpack.c.bf16 %v5719_v3, %v5718_v38  ;;  %v5658_v13 = vadd.f32 %v9941_v54, %v5453_v20  ;;  %v10016_v20 = vpop.f32.mrf.mxu0 }
 0x893   : > { %v8231_v47 = vpop.f32.mrf.mxu1 }
 0x894   : > { %v5456_v46 = vadd.f32 %v8231_v47, %v9909_v18  ;;  %v5774_v31 = vpack.c.bf16 %v5717_v27, %v5716_v10  ;;  %v5656_v12 = vadd.f32 %v9941_v54, %v5445_v15  ;;  %v5722_v34 = vmax.f32 %v5658_v13, 0.0 }
 0x895   : > { %v5447_v40 = vpop.f32.mrf.mxu1 }
 0x896   : > { %v5659_v56 = vadd.f32 %v9941_v54, %v5456_v46  ;;  %v5448_v45 = vadd.f32 %v5447_v40, %v9911_v32  ;;  %8304 = vmatprep.mubr.bf16.mxu0 %v5774_v31  ;;  %v5720_v5 = vmax.f32 %v5656_v12, 0.0  ;;  %v10023_v12 = vpop.f32.mrf.mxu0 }
 0x897   : > { %v8234_v48 = vpop.f32.mrf.mxu1  ;;  %8305 = vmatmul.mubr.bf16.gmra.mxu0 %v5775_v51 }
 0x898   : > { %v5657_v59 = vadd.f32 %v9941_v54, %v5448_v45  ;;  %v5723_v21 = vmax.f32 %v5659_v56, 0.0  ;;  %v5469_v53 = vadd.f32 %v8234_v48, %v9913_v36 }
 0x899   : > { %v5460_v18 = vpop.f32.mrf.mxu1 }
 0x89a   : > { %v5721_v50 = vmax.f32 %v5657_v59, 0.0  ;;  %v5461_v60 = vadd.f32 %v5460_v18, %v9915_v4  ;;  %v5777_v33 = vpack.c.bf16 %v5723_v21, %v5722_v34  ;;  %v5662_v4 = vadd.f32 %v9941_v54, %v5469_v53 }
 0x89b   : > { %v8235_v43 = vpop.f32.mrf.mxu1 }
 0x89c   : > { %v5472_v32 = vadd.f32 %v8235_v43, %v9917_v17  ;;  %v5776_v1 = vpack.c.bf16 %v5721_v50, %v5720_v5  ;;  %v5660_v19 = vadd.f32 %v9941_v54, %v5461_v60  ;;  %v5726_v3 = vmax.f32 %v5662_v4, 0.0  ;;  %v10028_v60 = vpop.f32.mrf.mxu0 }
 0x89d   : > { %v5463_v11 = vpop.f32.mrf.mxu1 }
 0x89e   : > { %v5663_v16 = vadd.f32 %v9941_v54, %v5472_v32  ;;  %v5464_v25 = vadd.f32 %v5463_v11, %v9919_v0  ;;  %8308 = vmatprep.mubr.bf16.mxu0 %v5776_v1  ;;  %v5724_v26 = vmax.f32 %v5660_v19, 0.0 }
 0x89f   : > { %v8238_v35 = vpop.f32.mrf.mxu1  ;;  %8309 = vmatmul.mubr.bf16.gmra.mxu0 %v5777_v33  ;;  %v10035_v33 = vpop.f32.mrf.mxu0 }
 0x8a0   : > { %v5661_v36 = vadd.f32 %v9941_v54, %v5464_v25  ;;  %v5727_v49 = vmax.f32 %v5663_v16, 0.0  ;;  %v5485_v22 = vadd.f32 %v8238_v35, %v9921_v7 }
 0x8a1   : > { %v5476_v17 = vpop.f32.mrf.mxu1 }
 0x8a2   : > { %v5725_v29 = vmax.f32 %v5661_v36, 0.0  ;;  %v5477_v58 = vadd.f32 %v5476_v17, %v9923_v24  ;;  %v5779_v15 = vpack.c.bf16 %v5727_v49, %v5726_v3  ;;  %v5666_v24 = vadd.f32 %v9941_v54, %v5485_v22 }
 0x8a3   : > { %v8239_v10 = vpop.f32.mrf.mxu1 }
 0x8a4   : > { %v5488_v0 = vadd.f32 %v8239_v10, %v9925_v8  ;;  %v5778_v27 = vpack.c.bf16 %v5725_v29, %v5724_v26  ;;  %v5664_v47 = vadd.f32 %v9941_v54, %v5477_v58  ;;  %v5730_v48 = vmax.f32 %v5666_v24, 0.0  ;;  %v10040_v26 = vpop.f32.mrf.mxu0 }
 0x8a5   : > { %v5479_v38 = vpop.f32.mrf.mxu1 }
 0x8a6   : > { %v5667_v46 = vadd.f32 %v9941_v54, %v5488_v0  ;;  %v5480_v31 = vadd.f32 %v5479_v38, %v9927_v9  ;;  %8312 = vmatprep.mubr.bf16.mxu0 %v5778_v27  ;;  %v5728_v56 = vmax.f32 %v5664_v47, 0.0  ;;  %v10047_v0 = vpop.f32.mrf.mxu0 }
 0x8a7   : > { %v8242_v51 = vpop.f32.mrf.mxu1  ;;  %8313 = vmatmul.mubr.bf16.gmra.mxu0 %v5779_v15 }
 0x8a8   : > { %v5665_v7 = vadd.f32 %v9941_v54, %v5480_v31  ;;  %v5731_v40 = vmax.f32 %v5667_v46, 0.0  ;;  %v5501_v59 = vadd.f32 %v8242_v51, %v9929_v37 }
 0x8a9   : > { %v5492_v8 = vpop.f32.mrf.mxu1 }
 0x8aa   : > { %v5729_v45 = vmax.f32 %v5665_v7, 0.0  ;;  %v5493_v13 = vadd.f32 %v5492_v8, %v9931_v28  ;;  %v5781_v5 = vpack.c.bf16 %v5731_v40, %v5730_v48  ;;  %v5670_v28 = vadd.f32 %v9941_v54, %v5501_v59  ;;  %v10052_v40 = vpop.f32.mrf.mxu0 }
 0x8ab   : > { %v8243_v21 = vpop.f32.mrf.mxu1 }
 0x8ac   : > { %v5504_v9 = vadd.f32 %v8243_v21, %v9933_v39  ;;  %v5780_v18 = vpack.c.bf16 %v5729_v45, %v5728_v56  ;;  %v5668_v34 = vadd.f32 %v9941_v54, %v5493_v13  ;;  %v5734_v25 = vmax.f32 %v5670_v28, 0.0  ;;  %v10059_v59 = vpop.f32.mrf.mxu0 }
 0x8ad   : > { %v5495_v50 = vpop.f32.mrf.mxu1 }
 0x8ae   : > { %v5671_v53 = vadd.f32 %v9941_v54, %v5504_v9  ;;  %v5496_v43 = vadd.f32 %v5495_v50, %v9935_v55  ;;  %8316 = vmatprep.mubr.bf16.mxu0 %v5780_v18  ;;  %v5732_v11 = vmax.f32 %v5668_v34, 0.0 }
 0x8af   : > { %v8246_v32 = vpop.f32.mrf.mxu1  ;;  %8317 = vmatmul.mubr.bf16.gmra.mxu0 %v5781_v5 }
 0x8b0   : > { %v5669_v37 = vadd.f32 %v9941_v54, %v5496_v43  ;;  %v5735_v1 = vmax.f32 %v5671_v53, 0.0  ;;  %v5517_v4 = vadd.f32 %v8246_v32, %v9937_v42  ;;  %v5251_v32 = vpop.f32.mrf.mxu0 }
 0x8b1   : > { %v5508_v39 = vpop.f32.mrf.mxu1 }
 0x8b2   : > { %v5733_v19 = vmax.f32 %v5669_v37, 0.0  ;;  %v5509_v16 = vadd.f32 %v5508_v39, %v9944_v30  ;;  %v5783_v49 = vpack.c.bf16 %v5735_v1, %v5734_v25  ;;  %v5674_v30 = vadd.f32 %v9941_v54, %v5517_v4 }
 0x8b3   : > { %v8247_v35 = vpop.f32.mrf.mxu1 }
 0x8b4   : > { %v5520_v55 = vadd.f32 %v8247_v35, %v9951_v23  ;;  %v5782_v36 = vpack.c.bf16 %v5733_v19, %v5732_v11  ;;  %v5672_v29 = vadd.f32 %v9941_v54, %v5509_v16  ;;  %v5738_v47 = vmax.f32 %v5674_v30, 0.0 }
 0x8b5   : > { %v5511_v17 = vpop.f32.mrf.mxu1 }
 0x8b6   : > { %v5675_v58 = vadd.f32 %v9941_v54, %v5520_v55  ;;  %v5512_v3 = vadd.f32 %v5511_v17, %v9956_v57  ;;  %8320 = vmatprep.mubr.bf16.mxu0 %v5782_v36  ;;  %v5736_v27 = vmax.f32 %v5672_v29, 0.0 }
 0x8b7   : > { %v8250_v22 = vpop.f32.mrf.mxu1  ;;  %8321 = vmatmul.mubr.bf16.gmra.mxu0 %v5783_v49 }
 0x8b8   : > { %v5673_v42 = vadd.f32 %v9941_v54, %v5512_v3  ;;  %v5739_v10 = vmax.f32 %v5675_v58, 0.0  ;;  %v5533_v46 = vadd.f32 %v8250_v22, %v9963_v62 }
 0x8b9   : > { %v5524_v23 = vpop.f32.mrf.mxu1 }
 0x8ba   : > { %v5737_v15 = vmax.f32 %v5673_v42, 0.0  ;;  %v5525_v38 = vadd.f32 %v5524_v23, %v9968_v6  ;;  %v5785_v51 = vpack.c.bf16 %v5739_v10, %v5738_v47  ;;  %v5678_v6 = vadd.f32 %v9941_v54, %v5533_v46 }
 0x8bb   : > { %v8251_v31 = vpop.f32.mrf.mxu1 }
 0x8bc   : > { %v5536_v57 = vadd.f32 %v8251_v31, %v9975_v44  ;;  %v5784_v24 = vpack.c.bf16 %v5737_v15, %v5736_v27  ;;  %v5676_v8 = vadd.f32 %v9941_v54, %v5525_v38  ;;  %v5742_v5 = vmax.f32 %v5678_v6, 0.0 }
 0x8bd   : > { %v5527_v7 = vpop.f32.mrf.mxu1 }
 0x8be   : > { %v5679_v56 = vadd.f32 %v9941_v54, %v5536_v57  ;;  %v5528_v45 = vadd.f32 %v5527_v7, %v9980_v2  ;;  %8324 = vmatprep.mubr.bf16.mxu0 %v5784_v24  ;;  %v5740_v21 = vmax.f32 %v5676_v8, 0.0 }
 0x8bf   : > { %v8254_v13 = vpop.f32.mrf.mxu1  ;;  %8325 = vmatmul.mubr.bf16.gmra.mxu0 %v5785_v51 }
 0x8c0   : > { %v5677_v62 = vadd.f32 %v9941_v54, %v5528_v45  ;;  %v5743_v48 = vmax.f32 %v5679_v56, 0.0  ;;  %v5549_v50 = vadd.f32 %v8254_v13, %v9987_v63 }
 0x8c1   : > { %v5540_v44 = vpop.f32.mrf.mxu1 }
 0x8c2   : > { %v5741_v9 = vmax.f32 %v5677_v62, 0.0  ;;  %v5541_v18 = vadd.f32 %v5540_v44, %v9992_v41  ;;  %v5787_v43 = vpack.c.bf16 %v5743_v48, %v5742_v5  ;;  %v5682_v11 = vadd.f32 %v9941_v54, %v5549_v50 }
 0x8c3   : > { %v8255_v34 = vpop.f32.mrf.mxu1 }
 0x8c4   : > { %v5552_v2 = vadd.f32 %v8255_v34, %v9999_v14  ;;  %v5786_v53 = vpack.c.bf16 %v5741_v9, %v5740_v21  ;;  %v5680_v37 = vadd.f32 %v9941_v54, %v5541_v18  ;;  %v8187_v14 = vpop.f32.mrf.mxu0  ;;  %v5746_v55 = vmax.f32 %v5682_v11, 0.0 }
 0x8c5   : > { %v5543_v28 = vpop.f32.mrf.mxu1 }
 0x8c6   : > { %v5683_v1 = vadd.f32 %v9941_v54, %v5552_v2  ;;  %v5544_v39 = vadd.f32 %v5543_v28, %v10004_v52  ;;  %8328 = vmatprep.mubr.bf16.mxu0 %v5786_v53  ;;  %v5744_v25 = vmax.f32 %v5680_v37, 0.0  ;;  %v5254_v3 = vpop.f32.mrf.mxu0 }
 0x8c7   : > { %v8258_v41 = vpop.f32.mrf.mxu1  ;;  %8329 = vmatmul.mubr.bf16.gmra.mxu0 %v5787_v43 }
 0x8c8   : > { %v5681_v63 = vadd.f32 %v9941_v54, %v5544_v39  ;;  %v5747_v19 = vmax.f32 %v5683_v1, 0.0  ;;  %v5565_v36 = vadd.f32 %v8258_v41, %v10011_v61 }
 0x8c9   : > { %v5556_v16 = vpop.f32.mrf.mxu1 }
 0x8ca   : > { %v5745_v4 = vmax.f32 %v5681_v63, 0.0  ;;  %v5557_v35 = vadd.f32 %v5556_v16, %v10016_v20  ;;  %v5789_v29 = vpack.c.bf16 %v5747_v19, %v5746_v55  ;;  %v5686_v10 = vadd.f32 %v9941_v54, %v5565_v36 }
 0x8cb   : > { %v8259_v49 = vpop.f32.mrf.mxu1 }
 0x8cc   : > { %v5568_v52 = vadd.f32 %v8259_v49, %v10023_v12  ;;  %v5788_v17 = vpack.c.bf16 %v5745_v4, %v5744_v25  ;;  %v5684_v30 = vadd.f32 %v9941_v54, %v5557_v35  ;;  %v8190_v12 = vpop.f32.mrf.mxu0  ;;  %v5750_v46 = vmax.f32 %v5686_v10, 0.0 }
 0x8cd   : > { %v5559_v58 = vpop.f32.mrf.mxu1 }
 0x8ce   : > { %v5687_v22 = vadd.f32 %v9941_v54, %v5568_v52  ;;  %v5560_v42 = vadd.f32 %v5559_v58, %v10028_v60  ;;  %8332 = vmatprep.mubr.bf16.mxu0 %v5788_v17  ;;  %v5748_v15 = vmax.f32 %v5684_v30, 0.0  ;;  %v5267_v8 = vpop.f32.mrf.mxu0 }
 0x8cf   : > { %v8262_v20 = vpop.f32.mrf.mxu1  ;;  %8333 = vmatmul.mubr.bf16.gmra.mxu0 %v5789_v29 }
 0x8d0   : > { %v5685_v61 = vadd.f32 %v9941_v54, %v5560_v42  ;;  %v5751_v23 = vmax.f32 %v5687_v22, 0.0  ;;  %v5581_v31 = vadd.f32 %v8262_v20, %v10035_v33 }
 0x8d1   : > { %v5572_v27 = vpop.f32.mrf.mxu1 }
 0x8d2   : > { %v5749_v38 = vmax.f32 %v5685_v61, 0.0  ;;  %v5573_v47 = vadd.f32 %v5572_v27, %v10040_v26  ;;  %v5791_v51 = vpack.c.bf16 %v5751_v23, %v5750_v46  ;;  %v5690_v13 = vadd.f32 %v9941_v54, %v5581_v31 }
 0x8d3   : > { %v8263_v57 = vpop.f32.mrf.mxu1 }
 0x8d4   : > { %v5584_v60 = vadd.f32 %v8263_v57, %v10047_v0  ;;  %v5790_v24 = vpack.c.bf16 %v5749_v38, %v5748_v15  ;;  %v5688_v56 = vadd.f32 %v9941_v54, %v5573_v47  ;;  %v8191_v0 = vpop.f32.mrf.mxu0  ;;  %v5754_v18 = vmax.f32 %v5690_v13, 0.0 }
 0x8d5   : > { %v5575_v7 = vpop.f32.mrf.mxu1 }
 0x8d6   : > { %v5691_v45 = vadd.f32 %v9941_v54, %v5584_v60  ;;  %v5576_v6 = vadd.f32 %v5575_v7, %v10052_v40  ;;  %8336 = vmatprep.mubr.bf16.mxu0 %v5790_v24  ;;  %v5752_v44 = vmax.f32 %v5688_v56, 0.0  ;;  %v5270_v43 = vpop.f32.mrf.mxu0 }
 0x8d7   : > { %v8266_v26 = vpop.f32.mrf.mxu1  ;;  %8337 = vmatmul.mubr.bf16.gmra.mxu0 %v5791_v51 }
 0x8d8   : > { %v5689_v33 = vadd.f32 %v9941_v54, %v5576_v6  ;;  %v5755_v62 = vmax.f32 %v5691_v45, 0.0  ;;  %v5597_v5 = vadd.f32 %v8266_v26, %v10059_v59  ;;  %v8194_v59 = vpop.f32.mrf.mxu0 }
 0x8d9   : > { %v5588_v48 = vpop.f32.mrf.mxu1 }
 0x8da   : > { %v5753_v21 = vmax.f32 %v5689_v33, 0.0  ;;  %v5589_v9 = vadd.f32 %v5588_v48, %v5251_v32  ;;  %v5793_v40 = vpack.c.bf16 %v5755_v62, %v5754_v18  ;;  %v5694_v39 = vadd.f32 %v9941_v54, %v5597_v5  ;;  %v5283_v52 = vpop.f32.mrf.mxu0 }
 0x8db   : > { %v8267_v50 = vpop.f32.mrf.mxu1 }
 0x8dc   : > { %v5600_v34 = vadd.f32 %v8267_v50, %v8187_v14  ;;  %v5792_v2 = vpack.c.bf16 %v5753_v21, %v5752_v44  ;;  %v5692_v28 = vadd.f32 %v9941_v54, %v5589_v9  ;;  %v5758_v25 = vmax.f32 %v5694_v39, 0.0  ;;  %v8195_v20 = vpop.f32.mrf.mxu0  ;;  %v6293_v21 = vpop.permute.xlu1 %6292 }
 0x8dd   : > { %v5591_v53 = vpop.f32.mrf.mxu1 }
 0x8de   : > { %v5695_v37 = vadd.f32 %v9941_v54, %v5600_v34  ;;  %v5592_v1 = vadd.f32 %v5591_v53, %v5254_v3  ;;  %8340 = vmatprep.mubr.bf16.mxu0 %v5792_v2  ;;  %v5756_v19 = vmax.f32 %v5692_v28, 0.0  ;;  %v5286_v60 = vpop.f32.mrf.mxu0 }
 0x8df   : > { %v8270_v11 = vpop.f32.mrf.mxu1  ;;  %8341 = vmatmul.mubr.bf16.gmra.mxu0 %v5793_v40 }
 0x8e0   : > { %v5693_v32 = vadd.f32 %v9941_v54, %v5592_v1  ;;  %v5759_v41 = vmax.f32 %v5695_v37, 0.0  ;;  %v5613_v4 = vadd.f32 %v8270_v11, %v8190_v12  ;;  %v6295_v18 = vpop.permute.xlu1 %6294 }
 0x8e1   : > { %v5604_v63 = vpop.f32.mrf.mxu1 }
 0x8e2   : > { %v5757_v16 = vmax.f32 %v5693_v32, 0.0  ;;  %v5605_v14 = vadd.f32 %v5604_v63, %v5267_v8  ;;  %v5795_v49 = vpack.c.bf16 %v5759_v41, %v5758_v25  ;;  %v5698_v30 = vadd.f32 %v9941_v54, %v5613_v4  ;;  %v10126_v63 = vld [vmem:[#allocation6 + $0xa] ss:$0 sm:$0xff] }
 0x8e3   : > { %v8271_v35 = vpop.f32.mrf.mxu1 }
 0x8e4   : > { %v5616_v55 = vadd.f32 %v8271_v35, %v8191_v0  ;;  %v5794_v36 = vpack.c.bf16 %v5757_v16, %v5756_v19  ;;  %v5696_v29 = vadd.f32 %v9941_v54, %v5605_v14  ;;  %v5762_v15 = vmax.f32 %v5698_v30, 0.0  ;;  %v6289_v0 = vpop.permute.xlu0 %6288  ;;  %v6303_v5 = vpop.permute.xlu1 %6302 }
 0x8e5   : > { %v5607_v17 = vpop.f32.mrf.mxu1 }
 0x8e6   : > { %v5699_v58 = vadd.f32 %v9941_v54, %v5616_v55  ;;  %v5608_v3 = vadd.f32 %v5607_v17, %v5270_v43  ;;  %8344 = vmatprep.mubr.bf16.mxu0 %v5794_v36  ;;  %v5760_v23 = vmax.f32 %v5696_v29, 0.0 }
 0x8e7   : > { %v8274_v22 = vpop.f32.mrf.mxu1  ;;  %8345 = vmatmul.mubr.bf16.gmra.mxu0 %v5795_v49 }
 0x8e8   : > { %v5697_v42 = vadd.f32 %v9941_v54, %v5608_v3  ;;  %v5763_v10 = vmax.f32 %v5699_v58, 0.0  ;;  %v5629_v38 = vadd.f32 %v8274_v22, %v8194_v59  ;;  %v6291_v44 = vpop.permute.xlu0 %6290  ;;  %v6299_v34 = vpop.permute.xlu1 %6298 }
 0x8e9   : > { %v5620_v61 = vpop.f32.mrf.mxu1 }
 0x8ea   : > { %v5761_v27 = vmax.f32 %v5697_v42, 0.0  ;;  %v5621_v12 = vadd.f32 %v5620_v61, %v5283_v52  ;;  %v5797_v57 = vpack.c.bf16 %v5763_v10, %v5762_v15  ;;  %v5702_v56 = vadd.f32 %v9941_v54, %v5629_v38 }
 0x8eb   : > { %v8275_v47 = vpop.f32.mrf.mxu1 }
 0x8ec   : > { %v5632_v46 = vadd.f32 %v8275_v47, %v8195_v20  ;;  %v5796_v31 = vpack.c.bf16 %v5761_v27, %v5760_v23  ;;  %v5700_v51 = vadd.f32 %v9941_v54, %v5621_v12  ;;  %v5766_v33 = vmax.f32 %v5702_v56, 0.0  ;;  %v6301_v9 = vpop.permute.xlu0 %6300 }
 0x8ed   : > { %v5623_v24 = vpop.f32.mrf.mxu1 }
 0x8ee   : > { %v5703_v7 = vadd.f32 %v9941_v54, %v5632_v46  ;;  %v5624_v8 = vadd.f32 %v5623_v24, %v5286_v60  ;;  %8348 = vmatprep.mubr.bf16.mxu0 %v5796_v31  ;;  %v5764_v13 = vmax.f32 %v5700_v51, 0.0 }
 0x8ef   : > { %8349 = vmatmul.mubr.bf16.gmra.mxu0 %v5797_v57 }
 0x8f0   : > { %v5701_v45 = vadd.f32 %v9941_v54, %v5624_v8  ;;  %v5767_v6 = vmax.f32 %v5703_v7, 0.0  ;;  %v6297_v50 = vpop.permute.xlu0 %6296  ;;  %v10100_v54 = vpop.permute.xlu1 %6310 }
 0x8f2   : > { %v5765_v26 = vmax.f32 %v5701_v45, 0.0  ;;  %v5799_v48 = vpack.c.bf16 %v5767_v6, %v5766_v33 }
 0x8f4   : > { %v5798_v62 = vpack.c.bf16 %v5765_v26, %v5764_v13  ;;  %v10098_v2 = vpop.permute.xlu0 %6308  ;;  %v10104_v53 = vpop.permute.xlu1 %6306 }
 0x8f6   : > { %8352 = vmatprep.mubr.bf16.mxu0 %v5798_v62 }
 0x8f7   : > { %8353 = vmatmul.mubr.bf16.gmra.mxu0 %v5799_v48 }
 0x8f8   : > { %v10102_v40 = vpop.permute.xlu0 %6304  ;;  %v10108_v28 = vpop.permute.xlu1 %6318 }
 0x8fc   : > { %v10106_v43 = vpop.permute.xlu0 %6316  ;;  %v10112_v1 = vpop.permute.xlu1 %6314 }
 0x900   : > { %v10110_v37 = vpop.permute.xlu0 %6312  ;;  %v10118_v11 = vpop.permute.xlu1 %6326 }
 0x904   : > { %v10114_v39 = vpop.permute.xlu0 %6324  ;;  %v10122_v41 = vpop.permute.xlu1 %6322 }
 0x908   : > { %v10120_v32 = vpop.permute.xlu0 %6320  ;;  %v10134_v25 = vpop.permute.xlu1 %6334 }
 0x90c   : > { %v10124_v59 = vpop.permute.xlu0 %6332  ;;  %v10153_v29 = vpop.permute.xlu1 %6330 }
 0x910   : > { %v10136_v4 = vpop.permute.xlu0 %6328  ;;  %v10172_v61 = vpop.permute.xlu1 %6342 }
 0x914   : > { %v10155_v58 = vpop.permute.xlu0 %6340  ;;  %v10192_v31 = vpop.permute.xlu1 %6338 }
 0x918   : > { %v10174_v23 = vpop.permute.xlu0 %6336  ;;  %v10214_v45 = vpop.permute.xlu1 %6350 }
 0x91c   : > { %v10194_v57 = vpop.permute.xlu0 %6348 }
 0x920   : > { %v10216_v6 = vpop.permute.xlu0 %6344 }
 0x93f   : > { %v8294_v19 = vpop.f32.mrf.mxu0 }
 0x940   : > { %v5913_v16 = vadd.f32 %v8294_v19, %v10126_v63 }
 0x941   : > { %v5904_v14 = vpop.f32.mrf.mxu0 }
 0x942   : > { %6162 = vst.msk [vmem:[%s10131_s25 + $0x10] sm:$0xff] %vm6159_vm0, %v5913_v16  ;;  %v5905_v35 = vadd.f32 %v10126_v63, %v5904_v14 }
 0x943   : > { %6483 = vst.msk [vmem:[%s10131_s25 + $0x10] sm:$0xff] %vm6480_vm1, %v6293_v21  ;;  %v8295_v55 = vpop.f32.mrf.mxu0  ;;  %v10238_v21 = vpop.permute.xlu0 %6356 }
 0x944   : > { %6160 = vst.msk [vmem:[%s10131_s25] sm:$0xff] %vm6159_vm0, %v5905_v35  ;;  %v5916_v36 = vadd.f32 %v8295_v55, %v10126_v63 }
 0x945   : > { %6481 = vst.msk [vmem:[%s10131_s25] sm:$0xff] %vm6480_vm1, %v6289_v0  ;;  %v5907_v49 = vpop.f32.mrf.mxu0 }
 0x946   : > { %6163 = vst.msk [vmem:[%s10131_s25 + $0x18] sm:$0xff] %vm6159_vm0, %v5916_v36  ;;  %v5908_v52 = vadd.f32 %v10126_v63, %v5907_v49 }
 0x947   : > { %6484 = vst.msk [vmem:[%s10131_s25 + $0x18] sm:$0xff] %vm6480_vm1, %v6295_v18  ;;  %v8298_v17 = vpop.f32.mrf.mxu0 }
 0x948   : > { %6161 = vst.msk [vmem:[%s10131_s25 + $0x8] sm:$0xff] %vm6159_vm0, %v5908_v52  ;;  %v5929_v3 = vadd.f32 %v8298_v17, %v10126_v63 }
 0x949   : > { %6482 = vst.msk [vmem:[%s10131_s25 + $0x8] sm:$0xff] %vm6480_vm1, %v6291_v44  ;;  %v5920_v30 = vpop.f32.mrf.mxu0  ;;  %v10236_v44 = vpop.permute.xlu1 %6346 }
 0x94a   : > { %6166 = vst.msk [vmem:[%s10131_s25 + $0x30] sm:$0xff] %vm6159_vm0, %v5929_v3  ;;  %v5921_v22 = vadd.f32 %v10126_v63, %v5920_v30 }
 0x94b   : > { %6487 = vst.msk [vmem:[%s10131_s25 + $0x30] sm:$0xff] %vm6480_vm1, %v6301_v9  ;;  %v8299_v42 = vpop.f32.mrf.mxu0 }
 0x94c   : > { %6164 = vst.msk [vmem:[%s10131_s25 + $0x20] sm:$0xff] %vm6159_vm0, %v5921_v22  ;;  %v5932_v10 = vadd.f32 %v8299_v42, %v10126_v63 }
 0x94d   : > { %6485 = vst.msk [vmem:[%s10131_s25 + $0x20] sm:$0xff] %vm6480_vm1, %v6297_v50  ;;  %v5923_v20 = vpop.f32.mrf.mxu0 }
 0x94e   : > { %6167 = vst.msk [vmem:[%s10131_s25 + $0x38] sm:$0xff] %vm6159_vm0, %v5932_v10  ;;  %v5924_v27 = vadd.f32 %v10126_v63, %v5923_v20 }
 0x94f   : > { %6488 = vst.msk [vmem:[%s10131_s25 + $0x38] sm:$0xff] %vm6480_vm1, %v6303_v5  ;;  %v8302_v12 = vpop.f32.mrf.mxu0 }
 0x950   : > { %6165 = vst.msk [vmem:[%s10131_s25 + $0x28] sm:$0xff] %vm6159_vm0, %v5924_v27  ;;  %v5945_v15 = vadd.f32 %v8302_v12, %v10126_v63 }
 0x951   : > { %6486 = vst.msk [vmem:[%s10131_s25 + $0x28] sm:$0xff] %vm6480_vm1, %v6299_v34  ;;  %v5936_v38 = vpop.f32.mrf.mxu0 }
 0x952   : > { %6170 = vst.msk [vmem:[%s10131_s25 + $0x50] sm:$0xff] %vm6159_vm0, %v5945_v15  ;;  %v5937_v47 = vadd.f32 %v10126_v63, %v5936_v38 }
 0x953   : > { %6491 = vst.msk [vmem:[%s10131_s25 + $0x50] sm:$0xff] %vm6480_vm1, %v10098_v2  ;;  %v8303_v46 = vpop.f32.mrf.mxu0 }
 0x954   : > { %6168 = vst.msk [vmem:[%s10131_s25 + $0x40] sm:$0xff] %vm6159_vm0, %v5937_v47  ;;  %v5948_v60 = vadd.f32 %v8303_v46, %v10126_v63 }
 0x955   : > { %6489 = vst.msk [vmem:[%s10131_s25 + $0x40] sm:$0xff] %vm6480_vm1, %v10102_v40  ;;  %v5939_v24 = vpop.f32.mrf.mxu0  ;;  %v10260_v40 = vpop.permute.xlu0 %6352 }
 0x956   : > { %6171 = vst.msk [vmem:[%s10131_s25 + $0x58] sm:$0xff] %vm6159_vm0, %v5948_v60  ;;  %v5940_v51 = vadd.f32 %v10126_v63, %v5939_v24 }
 0x957   : > { %6492 = vst.msk [vmem:[%s10131_s25 + $0x58] sm:$0xff] %vm6480_vm1, %v10100_v54  ;;  %v8306_v7 = vpop.f32.mrf.mxu0  ;;  %v10258_v54 = vpop.permute.xlu1 %6358 }
 0x958   : > { %6169 = vst.msk [vmem:[%s10131_s25 + $0x48] sm:$0xff] %vm6159_vm0, %v5940_v51  ;;  %v5961_v8 = vadd.f32 %v8306_v7, %v10126_v63 }
 0x959   : > { %6490 = vst.msk [vmem:[%s10131_s25 + $0x48] sm:$0xff] %vm6480_vm1, %v10104_v53  ;;  %v5952_v56 = vpop.f32.mrf.mxu0 }
 0x95a   : > { %6174 = vst.msk [vmem:[%s10131_s25 + $0x70] sm:$0xff] %vm6159_vm0, %v5961_v8  ;;  %v5953_v13 = vadd.f32 %v10126_v63, %v5952_v56 }
 0x95b   : > { %6495 = vst.msk [vmem:[%s10131_s25 + $0x70] sm:$0xff] %vm6480_vm1, %v10106_v43  ;;  %v8307_v26 = vpop.f32.mrf.mxu0 }
 0x95c   : > { %6172 = vst.msk [vmem:[%s10131_s25 + $0x60] sm:$0xff] %vm6159_vm0, %v5953_v13  ;;  %v5964_v33 = vadd.f32 %v8307_v26, %v10126_v63 }
 0x95d   : > { %6493 = vst.msk [vmem:[%s10131_s25 + $0x60] sm:$0xff] %vm6480_vm1, %v10110_v37  ;;  %v5955_v62 = vpop.f32.mrf.mxu0 }
 0x95e   : > { %6175 = vst.msk [vmem:[%s10131_s25 + $0x78] sm:$0xff] %vm6159_vm0, %v5964_v33  ;;  %v5956_v48 = vadd.f32 %v10126_v63, %v5955_v62 }
 0x95f   : > { %6496 = vst.msk [vmem:[%s10131_s25 + $0x78] sm:$0xff] %vm6480_vm1, %v10108_v28  ;;  %v8310_v0 = vpop.f32.mrf.mxu0 }
 0x960   : > { %6173 = vst.msk [vmem:[%s10131_s25 + $0x68] sm:$0xff] %vm6159_vm0, %v5956_v48  ;;  %v5977_v9 = vadd.f32 %v8310_v0, %v10126_v63 }
 0x961   : > { %6494 = vst.msk [vmem:[%s10131_s25 + $0x68] sm:$0xff] %vm6480_vm1, %v10112_v1  ;;  %v5968_v18 = vpop.f32.mrf.mxu0 }
 0x962   : > { %6178 = vst.msk [vmem:[%s10131_s25 + $0x90] sm:$0xff] %vm6159_vm0, %v5977_v9  ;;  %v5969_v5 = vadd.f32 %v10126_v63, %v5968_v18 }
 0x963   : > { %6499 = vst.msk [vmem:[%s10131_s25 + $0x90] sm:$0xff] %vm6480_vm1, %v10114_v39  ;;  %v8311_v50 = vpop.f32.mrf.mxu0 }
 0x964   : > { %6176 = vst.msk [vmem:[%s10131_s25 + $0x80] sm:$0xff] %vm6159_vm0, %v5969_v5  ;;  %v5980_v34 = vadd.f32 %v8311_v50, %v10126_v63 }
 0x965   : > { %6497 = vst.msk [vmem:[%s10131_s25 + $0x80] sm:$0xff] %vm6480_vm1, %v10120_v32  ;;  %v5971_v2 = vpop.f32.mrf.mxu0  ;;  %v10282_v32 = vpop.permute.xlu0 %6364 }
 0x966   : > { %6179 = vst.msk [vmem:[%s10131_s25 + $0x98] sm:$0xff] %vm6159_vm0, %v5980_v34  ;;  %v5972_v53 = vadd.f32 %v10126_v63, %v5971_v2 }
 0x967   : > { %6500 = vst.msk [vmem:[%s10131_s25 + $0x98] sm:$0xff] %vm6480_vm1, %v10118_v11  ;;  %v8314_v43 = vpop.f32.mrf.mxu0  ;;  %v10280_v11 = vpop.permute.xlu1 %6354 }
 0x968   : > { %6177 = vst.msk [vmem:[%s10131_s25 + $0x88] sm:$0xff] %vm6159_vm0, %v5972_v53  ;;  %v5993_v28 = vadd.f32 %v8314_v43, %v10126_v63 }
 0x969   : > { %6498 = vst.msk [vmem:[%s10131_s25 + $0x88] sm:$0xff] %vm6480_vm1, %v10122_v41  ;;  %v5984_v37 = vpop.f32.mrf.mxu0  ;;  %v10304_v55 = vpop.permute.xlu0 %6360 }
 0x96a   : > { %6182 = vst.msk [vmem:[%s10131_s25 + $0xb0] sm:$0xff] %vm6159_vm0, %v5993_v28  ;;  %v5985_v1 = vadd.f32 %v10126_v63, %v5984_v37 }
 0x96b   : > { %6503 = vst.msk [vmem:[%s10131_s25 + $0xb0] sm:$0xff] %vm6480_vm1, %v10124_v59  ;;  %v8315_v39 = vpop.f32.mrf.mxu0  ;;  %v10302_v35 = vpop.permute.xlu1 %6366 }
 0x96c   : > { %6180 = vst.msk [vmem:[%s10131_s25 + $0xa0] sm:$0xff] %vm6159_vm0, %v5985_v1  ;;  %v5996_v41 = vadd.f32 %v8315_v39, %v10126_v63 }
 0x96d   : > { %6501 = vst.msk [vmem:[%s10131_s25 + $0xa0] sm:$0xff] %vm6480_vm1, %v10136_v4  ;;  %v5987_v19 = vpop.f32.mrf.mxu0  ;;  %v10324_v3 = vpop.permute.xlu0 %6372 }
 0x96e   : > { %6183 = vst.msk [vmem:[%s10131_s25 + $0xb8] sm:$0xff] %vm6159_vm0, %v5996_v41  ;;  %v5988_v59 = vadd.f32 %v10126_v63, %v5987_v19 }
 0x96f   : > { %6504 = vst.msk [vmem:[%s10131_s25 + $0xb8] sm:$0xff] %vm6480_vm1, %v10134_v25  ;;  %v8318_v16 = vpop.f32.mrf.mxu0 }
 0x970   : > { %6181 = vst.msk [vmem:[%s10131_s25 + $0xa8] sm:$0xff] %vm6159_vm0, %v5988_v59  ;;  %v6009_v14 = vadd.f32 %v8318_v16, %v10126_v63 }
 0x971   : > { %6502 = vst.msk [vmem:[%s10131_s25 + $0xa8] sm:$0xff] %vm6480_vm1, %v10153_v29  ;;  %v6000_v4 = vpop.f32.mrf.mxu0  ;;  %v6369_v27 = vpop.permute.xlu0 %6368 }
 0x972   : > { %6186 = vst.msk [vmem:[%s10131_s25 + $0xd0] sm:$0xff] %vm6159_vm0, %v6009_v14  ;;  %v6001_v25 = vadd.f32 %v10126_v63, %v6000_v4 }
 0x973   : > { %6507 = vst.msk [vmem:[%s10131_s25 + $0xd0] sm:$0xff] %vm6480_vm1, %v10155_v58  ;;  %v8319_v36 = vpop.f32.mrf.mxu0  ;;  %v6363_v58 = vpop.permute.xlu1 %6362 }
 0x974   : > { %6184 = vst.msk [vmem:[%s10131_s25 + $0xc0] sm:$0xff] %vm6159_vm0, %v6001_v25  ;;  %v6012_v49 = vadd.f32 %v8319_v36, %v10126_v63 }
 0x975   : > { %6505 = vst.msk [vmem:[%s10131_s25 + $0xc0] sm:$0xff] %vm6480_vm1, %v10174_v23  ;;  %v6003_v52 = vpop.f32.mrf.mxu0  ;;  %v6381_v60 = vpop.permute.xlu0 %6380 }
 0x976   : > { %6187 = vst.msk [vmem:[%s10131_s25 + $0xd8] sm:$0xff] %vm6159_vm0, %v6012_v49  ;;  %v6004_v17 = vadd.f32 %v10126_v63, %v6003_v52 }
 0x977   : > { %6508 = vst.msk [vmem:[%s10131_s25 + $0xd8] sm:$0xff] %vm6480_vm1, %v10172_v61  ;;  %v8322_v29 = vpop.f32.mrf.mxu0  ;;  %v6375_v23 = vpop.permute.xlu1 %6374 }
 0x978   : > { %6185 = vst.msk [vmem:[%s10131_s25 + $0xc8] sm:$0xff] %vm6159_vm0, %v6004_v17  ;;  %v6025_v30 = vadd.f32 %v8322_v29, %v10126_v63 }
 0x979   : > { %6506 = vst.msk [vmem:[%s10131_s25 + $0xc8] sm:$0xff] %vm6480_vm1, %v10192_v31  ;;  %v6016_v22 = vpop.f32.mrf.mxu0  ;;  %v6377_v13 = vpop.permute.xlu0 %6376 }
 0x97a   : > { %6190 = vst.msk [vmem:[%s10131_s25 + $0xf0] sm:$0xff] %vm6159_vm0, %v6025_v30  ;;  %v6017_v42 = vadd.f32 %v10126_v63, %v6016_v22 }
 0x97b   : > { %6511 = vst.msk [vmem:[%s10131_s25 + $0xf0] sm:$0xff] %vm6480_vm1, %v10194_v57  ;;  %v8323_v10 = vpop.f32.mrf.mxu0  ;;  %v6371_v57 = vpop.permute.xlu1 %6370 }
 0x97c   : > { %6188 = vst.msk [vmem:[%s10131_s25 + $0xe0] sm:$0xff] %vm6159_vm0, %v6017_v42  ;;  %v6028_v20 = vadd.f32 %v8323_v10, %v10126_v63 }
 0x97d   : > { %6509 = vst.msk [vmem:[%s10131_s25 + $0xe0] sm:$0xff] %vm6480_vm1, %v10216_v6  ;;  %v6019_v61 = vpop.f32.mrf.mxu0  ;;  %v6389_v9 = vpop.permute.xlu0 %6388 }
 0x97e   : > { %6191 = vst.msk [vmem:[%s10131_s25 + $0xf8] sm:$0xff] %vm6159_vm0, %v6028_v20  ;;  %v6020_v12 = vadd.f32 %v10126_v63, %v6019_v61 }
 0x97f   : > { %6512 = vst.msk [vmem:[%s10131_s25 + $0xf8] sm:$0xff] %vm6480_vm1, %v10214_v45  ;;  %v8326_v15 = vpop.f32.mrf.mxu0  ;;  %v6383_v6 = vpop.permute.xlu1 %6382 }
 0x980   : > { %6189 = vst.msk [vmem:[%s10131_s25 + $0xe8] sm:$0xff] %vm6159_vm0, %v6020_v12  ;;  %v6041_v38 = vadd.f32 %v8326_v15, %v10126_v63 }
 0x981   : > { %6510 = vst.msk [vmem:[%s10131_s25 + $0xe8] sm:$0xff] %vm6480_vm1, %v10236_v44  ;;  %v6032_v47 = vpop.f32.mrf.mxu0  ;;  %v6385_v53 = vpop.permute.xlu0 %6384 }
 0x982   : > { %6194 = vst.msk [vmem:[%s10131_s25 + $0x110] sm:$0xff] %vm6159_vm0, %v6041_v38  ;;  %v6033_v46 = vadd.f32 %v10126_v63, %v6032_v47 }
 0x983   : > { %6515 = vst.msk [vmem:[%s10131_s25 + $0x110] sm:$0xff] %vm6480_vm1, %v10238_v21  ;;  %v8327_v31 = vpop.f32.mrf.mxu0  ;;  %v6379_v21 = vpop.permute.xlu1 %6378 }
 0x984   : > { %6192 = vst.msk [vmem:[%s10131_s25 + $0x100] sm:$0xff] %vm6159_vm0, %v6033_v46  ;;  %v6044_v24 = vadd.f32 %v8327_v31, %v10126_v63 }
 0x985   : > { %6513 = vst.msk [vmem:[%s10131_s25 + $0x100] sm:$0xff] %vm6480_vm1, %v10260_v40  ;;  %v6035_v51 = vpop.f32.mrf.mxu0  ;;  %v6397_v41 = vpop.permute.xlu0 %6396 }
 0x986   : > { %6195 = vst.msk [vmem:[%s10131_s25 + $0x118] sm:$0xff] %vm6159_vm0, %v6044_v24  ;;  %v6036_v7 = vadd.f32 %v10126_v63, %v6035_v51 }
 0x987   : > { %6516 = vst.msk [vmem:[%s10131_s25 + $0x118] sm:$0xff] %vm6480_vm1, %v10258_v54  ;;  %v8330_v8 = vpop.f32.mrf.mxu0  ;;  %v6391_v40 = vpop.permute.xlu1 %6390 }
 0x988   : > { %6193 = vst.msk [vmem:[%s10131_s25 + $0x108] sm:$0xff] %vm6159_vm0, %v6036_v7  ;;  %v6057_v56 = vadd.f32 %v8330_v8, %v10126_v63 }
 0x989   : > { %6514 = vst.msk [vmem:[%s10131_s25 + $0x108] sm:$0xff] %vm6480_vm1, %v10280_v11  ;;  %v6048_v45 = vpop.f32.mrf.mxu0  ;;  %v6393_v25 = vpop.permute.xlu0 %6392 }
 0x98a   : > { %6198 = vst.msk [vmem:[%s10131_s25 + $0x130] sm:$0xff] %vm6159_vm0, %v6057_v56  ;;  %v6049_v26 = vadd.f32 %v10126_v63, %v6048_v45 }
 0x98b   : > { %6519 = vst.msk [vmem:[%s10131_s25 + $0x130] sm:$0xff] %vm6480_vm1, %v10282_v32  ;;  %v8331_v33 = vpop.f32.mrf.mxu0  ;;  %v6387_v32 = vpop.permute.xlu1 %6386 }
 0x98c   : > { %6196 = vst.msk [vmem:[%s10131_s25 + $0x120] sm:$0xff] %vm6159_vm0, %v6049_v26  ;;  %v6060_v62 = vadd.f32 %v8331_v33, %v10126_v63 }
 0x98d   : > { %6517 = vst.msk [vmem:[%s10131_s25 + $0x120] sm:$0xff] %vm6480_vm1, %v10304_v55  ;;  %v6051_v48 = vpop.f32.mrf.mxu0  ;;  %v6405_v30 = vpop.permute.xlu0 %6404 }
 0x98e   : > { %6199 = vst.msk [vmem:[%s10131_s25 + $0x138] sm:$0xff] %vm6159_vm0, %v6060_v62  ;;  %v6052_v0 = vadd.f32 %v10126_v63, %v6051_v48 }
 0x98f   : > { %6520 = vst.msk [vmem:[%s10131_s25 + $0x138] sm:$0xff] %vm6480_vm1, %v10302_v35  ;;  %v8334_v44 = vpop.f32.mrf.mxu0  ;;  %v6399_v55 = vpop.permute.xlu1 %6398 }
 0x990   : > { %6197 = vst.msk [vmem:[%s10131_s25 + $0x128] sm:$0xff] %vm6159_vm0, %v6052_v0  ;;  %v6073_v18 = vadd.f32 %v8334_v44, %v10126_v63 }
 0x991   : > { %6518 = vst.msk [vmem:[%s10131_s25 + $0x128] sm:$0xff] %vm6480_vm1, %v6363_v58  ;;  %v6064_v5 = vpop.f32.mrf.mxu0  ;;  %v6401_v12 = vpop.permute.xlu0 %6400 }
 0x992   : > { %6202 = vst.msk [vmem:[%s10131_s25 + $0x150] sm:$0xff] %vm6159_vm0, %v6073_v18  ;;  %v6065_v50 = vadd.f32 %v10126_v63, %v6064_v5 }
 0x993   : > { %6523 = vst.msk [vmem:[%s10131_s25 + $0x150] sm:$0xff] %vm6480_vm1, %v10324_v3  ;;  %v8335_v34 = vpop.f32.mrf.mxu0  ;;  %v6395_v3 = vpop.permute.xlu1 %6394 }
 0x994   : > { %6200 = vst.msk [vmem:[%s10131_s25 + $0x140] sm:$0xff] %vm6159_vm0, %v6065_v50  ;;  %v6076_v2 = vadd.f32 %v8335_v34, %v10126_v63 }
 0x995   : > { %6521 = vst.msk [vmem:[%s10131_s25 + $0x140] sm:$0xff] %vm6480_vm1, %v6369_v27  ;;  %v6067_v54 = vpop.f32.mrf.mxu0  ;;  %v6409_v24 = vpop.permute.xlu0 %6408 }
 0x996   : > { %6203 = vst.msk [vmem:[%s10131_s25 + $0x158] sm:$0xff] %vm6159_vm0, %v6076_v2  ;;  %v6068_v43 = vadd.f32 %v10126_v63, %v6067_v54 }
 0x997   : > { %6524 = vst.msk [vmem:[%s10131_s25 + $0x158] sm:$0xff] %vm6480_vm1, %v6375_v23  ;;  %v8338_v28 = vpop.f32.mrf.mxu0  ;;  %v6407_v27 = vpop.permute.xlu1 %6406 }
 0x998   : > { %6201 = vst.msk [vmem:[%s10131_s25 + $0x148] sm:$0xff] %vm6159_vm0, %v6068_v43  ;;  %v6089_v37 = vadd.f32 %v8338_v28, %v10126_v63 }
 0x999   : > { %6522 = vst.msk [vmem:[%s10131_s25 + $0x148] sm:$0xff] %vm6480_vm1, %v6371_v57  ;;  %v6080_v1 = vpop.f32.mrf.mxu0  ;;  %v6413_v26 = vpop.permute.xlu0 %6412 }
 0x99a   : > { %6206 = vst.msk [vmem:[%s10131_s25 + $0x170] sm:$0xff] %vm6159_vm0, %v6089_v37  ;;  %v6081_v39 = vadd.f32 %v10126_v63, %v6080_v1 }
 0x99b   : > { %6527 = vst.msk [vmem:[%s10131_s25 + $0x170] sm:$0xff] %vm6480_vm1, %v6381_v60  ;;  %v8339_v11 = vpop.f32.mrf.mxu0  ;;  %v6403_v60 = vpop.permute.xlu1 %6402 }
 0x99c   : > { %6204 = vst.msk [vmem:[%s10131_s25 + $0x160] sm:$0xff] %vm6159_vm0, %v6081_v39  ;;  %v6092_v19 = vadd.f32 %v8339_v11, %v10126_v63 }
 0x99d   : > { %6525 = vst.msk [vmem:[%s10131_s25 + $0x160] sm:$0xff] %vm6480_vm1, %v6377_v13  ;;  %v6083_v59 = vpop.f32.mrf.mxu0 }
 0x99e   : > { %6207 = vst.msk [vmem:[%s10131_s25 + $0x178] sm:$0xff] %vm6159_vm0, %v6092_v19  ;;  %v6084_v16 = vadd.f32 %v10126_v63, %v6083_v59 }
 0x99f   : > { %6528 = vst.msk [vmem:[%s10131_s25 + $0x178] sm:$0xff] %vm6480_vm1, %v6383_v6  ;;  %v8342_v14 = vpop.f32.mrf.mxu0  ;;  %v6411_v45 = vpop.permute.xlu1 %6410 }
 0x9a0   : > { %6205 = vst.msk [vmem:[%s10131_s25 + $0x168] sm:$0xff] %vm6159_vm0, %v6084_v16  ;;  %v6105_v4 = vadd.f32 %v8342_v14, %v10126_v63 }
 0x9a1   : > { %6526 = vst.msk [vmem:[%s10131_s25 + $0x168] sm:$0xff] %vm6480_vm1, %v6379_v21  ;;  %v6096_v35 = vpop.f32.mrf.mxu0 }
 0x9a2   : > { %6210 = vst.msk [vmem:[%s10131_s25 + $0x190] sm:$0xff] %vm6159_vm0, %v6105_v4  ;;  %v6097_v36 = vadd.f32 %v10126_v63, %v6096_v35 }
 0x9a3   : > { %6531 = vst.msk [vmem:[%s10131_s25 + $0x190] sm:$0xff] %vm6480_vm1, %v6389_v9  ;;  %v8343_v49 = vpop.f32.mrf.mxu0  ;;  %v6415_v44 = vpop.permute.xlu1 %6414 }
 0x9a4   : > { %6208 = vst.msk [vmem:[%s10131_s25 + $0x180] sm:$0xff] %vm6159_vm0, %v6097_v36  ;;  %v6108_v52 = vadd.f32 %v8343_v49, %v10126_v63 }
 0x9a5   : > { %6529 = vst.msk [vmem:[%s10131_s25 + $0x180] sm:$0xff] %vm6480_vm1, %v6385_v53  ;;  %v6099_v17 = vpop.f32.mrf.mxu0 }
 0x9a6   : > { %6211 = vst.msk [vmem:[%s10131_s25 + $0x198] sm:$0xff] %vm6159_vm0, %v6108_v52  ;;  %v6100_v29 = vadd.f32 %v10126_v63, %v6099_v17 }
 0x9a7   : > { %6532 = vst.msk [vmem:[%s10131_s25 + $0x198] sm:$0xff] %vm6480_vm1, %v6391_v40  ;;  %v8346_v58 = vpop.f32.mrf.mxu0 }
 0x9a8   : > { %6209 = vst.msk [vmem:[%s10131_s25 + $0x188] sm:$0xff] %vm6159_vm0, %v6100_v29  ;;  %v6121_v22 = vadd.f32 %v8346_v58, %v10126_v63 }
 0x9a9   : > { %6530 = vst.msk [vmem:[%s10131_s25 + $0x188] sm:$0xff] %vm6480_vm1, %v6387_v32  ;;  %v6112_v42 = vpop.f32.mrf.mxu0 }
 0x9aa   : > { %6214 = vst.msk [vmem:[%s10131_s25 + $0x1b0] sm:$0xff] %vm6159_vm0, %v6121_v22  ;;  %v6113_v10 = vadd.f32 %v10126_v63, %v6112_v42 }
 0x9ab   : > { %6535 = vst.msk [vmem:[%s10131_s25 + $0x1b0] sm:$0xff] %vm6480_vm1, %v6397_v41  ;;  %v8347_v20 = vpop.f32.mrf.mxu0 }
 0x9ac   : > { %6212 = vst.msk [vmem:[%s10131_s25 + $0x1a0] sm:$0xff] %vm6159_vm0, %v6113_v10  ;;  %v6124_v61 = vadd.f32 %v8347_v20, %v10126_v63 }
 0x9ad   : > { %6533 = vst.msk [vmem:[%s10131_s25 + $0x1a0] sm:$0xff] %vm6480_vm1, %v6393_v25  ;;  %v6115_v23 = vpop.f32.mrf.mxu0 }
 0x9ae   : > { %6215 = vst.msk [vmem:[%s10131_s25 + $0x1b8] sm:$0xff] %vm6159_vm0, %v6124_v61  ;;  %v6116_v15 = vadd.f32 %v10126_v63, %v6115_v23 }
 0x9af   : > { %6536 = vst.msk [vmem:[%s10131_s25 + $0x1b8] sm:$0xff] %vm6480_vm1, %v6399_v55  ;;  %v8350_v38 = vpop.f32.mrf.mxu0 }
 0x9b0   : > { %6213 = vst.msk [vmem:[%s10131_s25 + $0x1a8] sm:$0xff] %vm6159_vm0, %v6116_v15  ;;  %v6137_v47 = vadd.f32 %v8350_v38, %v10126_v63 }
 0x9b1   : > { %6534 = vst.msk [vmem:[%s10131_s25 + $0x1a8] sm:$0xff] %vm6480_vm1, %v6395_v3  ;;  %v6128_v46 = vpop.f32.mrf.mxu0 }
 0x9b2   : > { %6218 = vst.msk [vmem:[%s10131_s25 + $0x1d0] sm:$0xff] %vm6159_vm0, %v6137_v47  ;;  %v6129_v31 = vadd.f32 %v10126_v63, %v6128_v46 }
 0x9b3   : > { %6539 = vst.msk [vmem:[%s10131_s25 + $0x1d0] sm:$0xff] %vm6480_vm1, %v6405_v30  ;;  %v8351_v57 = vpop.f32.mrf.mxu0 }
 0x9b4   : > { %6216 = vst.msk [vmem:[%s10131_s25 + $0x1c0] sm:$0xff] %vm6159_vm0, %v6129_v31  ;;  %v6140_v51 = vadd.f32 %v8351_v57, %v10126_v63 }
 0x9b5   : > { %6537 = vst.msk [vmem:[%s10131_s25 + $0x1c0] sm:$0xff] %vm6480_vm1, %v6401_v12  ;;  %v6131_v7 = vpop.f32.mrf.mxu0 }
 0x9b6   : > { %6219 = vst.msk [vmem:[%s10131_s25 + $0x1d8] sm:$0xff] %vm6159_vm0, %v6140_v51  ;;  %v6132_v8 = vadd.f32 %v10126_v63, %v6131_v7 }
 0x9b7   : > { %6540 = vst.msk [vmem:[%s10131_s25 + $0x1d8] sm:$0xff] %vm6480_vm1, %v6407_v27  ;;  %v8354_v56 = vpop.f32.mrf.mxu0 }
 0x9b8   : > { %6217 = vst.msk [vmem:[%s10131_s25 + $0x1c8] sm:$0xff] %vm6159_vm0, %v6132_v8  ;;  %v6153_v6 = vadd.f32 %v8354_v56, %v10126_v63 }
 0x9b9   : > { %6538 = vst.msk [vmem:[%s10131_s25 + $0x1c8] sm:$0xff] %vm6480_vm1, %v6403_v60  ;;  %v6144_v13 = vpop.f32.mrf.mxu0 }
 0x9ba   : > { %6222 = vst.msk [vmem:[%s10131_s25 + $0x1f0] sm:$0xff] %vm6159_vm0, %v6153_v6  ;;  %v6145_v33 = vadd.f32 %v10126_v63, %v6144_v13 }
 0x9bb   : > { %6543 = vst.msk [vmem:[%s10131_s25 + $0x1f0] sm:$0xff] %vm6480_vm1, %v6413_v26  ;;  %v8355_v62 = vpop.f32.mrf.mxu0 }
 0x9bc   : > { %6220 = vst.msk [vmem:[%s10131_s25 + $0x1e0] sm:$0xff] %vm6159_vm0, %v6145_v33  ;;  %v6156_v48 = vadd.f32 %v8355_v62, %v10126_v63 }
 0x9bd   : > { %6541 = vst.msk [vmem:[%s10131_s25 + $0x1e0] sm:$0xff] %vm6480_vm1, %v6409_v24  ;;  %v6147_v0 = vpop.f32.mrf.mxu0 }
 0x9be   : > { %6223 = vst.msk [vmem:[%s10131_s25 + $0x1f8] sm:$0xff] %vm6159_vm0, %v6156_v48  ;;  %v6148_v21 = vadd.f32 %v10126_v63, %v6147_v0 }
 0x9bf   : > { %6544 = vst.msk [vmem:[%s10131_s25 + $0x1f8] sm:$0xff] %vm6480_vm1, %v6415_v44 }
 0x9c0   : > { %6221 = vst.msk [vmem:[%s10131_s25 + $0x1e8] sm:$0xff] %vm6159_vm0, %v6148_v21 }
 0x9c1   : > { %6542 = vst.msk [vmem:[%s10131_s25 + $0x1e8] sm:$0xff] %vm6480_vm1, %v6411_v45 }
 0x9c2 PF: > { %p14_p7 = scmp.ge.s32.totalorder %s8853_s8, 6   ;;  %s10552_s12 = smov %s8747_s13 }
 0x9c3   : > { %s10553_s13 = smov %s8751_s14  ;;  %s10554_s14 = smov %s8862_s11 }
 0x9c4   : > { %s10555_s15 = smov %s8853_s8  ;;  %16 = sbr.rel (!%p14_p7) target bundleno = 4 (0x4), region = 92 }
 0x9c9   :  { %6567 = vsyncpa [#allocation3], 1 }
 0x9ca   :  { %6569 = vsyncpa [#allocation3 + $0x1], 1 }
 0x9cb   :  { %6570 = vsyncpa [#allocation5], 1 }

</bundles_post_ra>
